<compile_context>
chip_gen: v6e
topology: v6e:2x2x1
jax: 0.10.0
libtpu: 0.0.40
codegen_flags: <defaults>
</compile_context>

<pallas_src>
import functools
import math

import jax
import jax.numpy as jnp
from jax.experimental import pallas as pl
from jax.experimental.pallas import tpu as pltpu


# ----------------------------------------------------------------------------
# Fused forward kernel (one batch element per grid step)
# ----------------------------------------------------------------------------

def _fused_forward_kernel(dlg_ref, crd_ref, *rest,
                          hops, num_head, num_layers, n_eval, num_rnk):
    """Whole forward pass for one batch element, fully resident in VMEM.

    rest layout (all VMEM refs):
      w_text, b_text, w_acb, b_acb, w_img, b_img, w_req, b_req,
      <12 refs per encoder layer> * num_layers,
      <w, b> per eval-MLP layer * n_eval,
      w_rnk_hidden, b_rnk_hidden, w_rnk_out, b_rnk_out,
      out_ref
    """
    f32 = jnp.float32
    o_ref = rest[-1]
    it = iter(rest[:-1])

    w_text, b_text = next(it), next(it)
    w_acb, b_acb = next(it), next(it)
    w_img, b_img = next(it), next(it)
    w_req, b_req = next(it), next(it)
    layer_refs = [tuple(next(it) for _ in range(12)) for _ in range(num_layers)]
    eval_refs = [(next(it), next(it)) for _ in range(n_eval)]
    w_rh, b_rh = next(it), next(it)
    w_ro, b_ro = next(it), next(it)

    def softmax_last(s):
        s = s - jnp.max(s, axis=-1, keepdims=True)
        p = jnp.exp(s)
        return p * pl.reciprocal(jnp.sum(p, axis=-1, keepdims=True), approx=True)

    # ---------------- RequirementNet (MemN2N) ----------------
    dlg = dlg_ref[0]                                                   # (M, E)
    txt = jnp.maximum(
        jnp.dot(dlg, w_text[...], preferred_element_type=f32) + b_text[...],
        0.0)                                                           # (M, T)

    # fused [A | C | B] projection: one wide matmul instead of three narrow ones.
    acb = jnp.dot(txt, w_acb[...], preferred_element_type=f32) + b_acb[...]
    key_size = w_acb.shape[1] // 3
    mem_key = acb[:, :key_size]                                        # (M, K)
    mem_val = acb[:, key_size:2 * key_size]                            # (M, K)
    # mean(txt) @ W_B + b_B  ==  mean(txt @ W_B + b_B)
    u = jnp.mean(acb[:, 2 * key_size:], axis=0, keepdims=True)         # (1, K)

    for _ in range(hops):                                              # static unroll
        sc = jnp.einsum("ak,mk->am", u, mem_key,
                        preferred_element_type=f32)                    # (1, M)
        p = softmax_last(sc)
        u = u + jnp.dot(p, mem_val, preferred_element_type=f32)        # (1, K)

    # ---------------- PolicyNet ----------------
    crd = crd_ref[0]                                                   # (R, C, F)
    tok = jnp.einsum("rcf,fd->rcd", crd, w_img[...],
                     preferred_element_type=f32) + b_img[...]          # (R, C, D)
    req_proj = jnp.dot(u, w_req[...], preferred_element_type=f32) + b_req[...]
    x = tok + req_proj                                                 # (R, C, D)

    d_model = w_img.shape[1]
    hd = d_model // num_head
    scale = 1.0 / math.sqrt(hd)

    def layer_norm(y, g_ref, b_ref):
        mu = jnp.mean(y, axis=-1, keepdims=True)
        var = jnp.mean((y - mu) ** 2, axis=-1, keepdims=True)
        return (y - mu) * jax.lax.rsqrt(var + 1e-5) * g_ref[...] + b_ref[...]

    for (wqkv, bqkv, wo, bo, w1, b1, w2, b2, g1, be1, g2, be2) in layer_refs:
        # fused QKV projection -> (R, C, 3D)
        qkv = jnp.einsum("ncd,de->nce", x, wqkv[...],
                         preferred_element_type=f32) + bqkv[...]
        q = qkv[..., :d_model]
        k = qkv[..., d_model:2 * d_model]
        v = qkv[..., 2 * d_model:]
        wo_full = wo[...]

        # per-head attention; output projection accumulated per head (no concat)
        attn = jnp.zeros_like(x)
        for h in range(num_head):                                      # static unroll
            lo, hi = h * hd, (h + 1) * hd
            qh, kh, vh = q[..., lo:hi], k[..., lo:hi], v[..., lo:hi]
            s = jnp.einsum("nsd,ntd->nst", qh, kh,
                           preferred_element_type=f32) * scale         # (R, C, C)
            s = softmax_last(s)
            ho = jnp.einsum("nst,ntd->nsd", s, vh,
                            preferred_element_type=f32)                # (R, C, hd)
            attn = attn + jnp.einsum("nsd,de->nse", ho, wo_full[lo:hi, :],
                                     preferred_element_type=f32)
        attn = attn + bo[...]

        x1 = layer_norm(x + attn, g1, be1)
        h1 = jnp.maximum(jnp.einsum("ncd,dh->nch", x1, w1[...],
                                    preferred_element_type=f32) + b1[...], 0.0)
        ffn = jnp.einsum("nch,hd->ncd", h1, w2[...],
                         preferred_element_type=f32) + b2[...]
        x = layer_norm(x1 + ffn, g2, be2)

    pooled = jnp.mean(x, axis=1)                                       # (R, D)

    hh = pooled
    for (we, be) in eval_refs:                                         # eval MLP
        hh = jnp.maximum(
            jnp.dot(hh, we[...], preferred_element_type=f32) + be[...], 0.0)

    # rank MLP: concat over candidates == sum of per-candidate row-block matmuls
    e_out = hh.shape[-1]
    hr = jnp.zeros((1, w_rh.shape[1]), f32)
    for r in range(num_rnk):                                           # static unroll
        hr = hr + jnp.dot(hh[r:r + 1, :],
                          w_rh[r * e_out:(r + 1) * e_out, :],
                          preferred_element_type=f32)
    hr = jnp.maximum(hr + b_rh[...], 0.0)
    logits = jnp.dot(hr, w_ro[...], preferred_element_type=f32) + b_ro[...]

    o_ref[0] = logits.astype(o_ref.dtype)                              # (1, P)


# ----------------------------------------------------------------------------
# Parameter init (matches nn.init.normal_(std=0.01) for dim>1, zeros for biases,
# ones/zeros for layernorm scale/shift).  QKV and A/C/B weights are stored fused.
# ----------------------------------------------------------------------------

def _dense(key, fan_in, fan_out):
    w = 0.01 * jax.random.normal(key, (fan_in, fan_out), jnp.float32)
    b = jnp.zeros((1, fan_out), jnp.float32)
    return w, b


def init_params(key, cfg):
    E, T, K = cfg["emb_size"], cfg["text_feat_size"], cfg["key_size"]
    D, Hf = cfg["d_model"], cfg["hidden_size"]
    F, R = cfg["img_feat_size"], cfg["num_rnk"]
    eval_nodes, rnk_nodes = cfg["eval_node"]

    keys = iter(jax.random.split(key, 64))
    p = {}

    # RequirementNet
    p["w_text"], p["b_text"] = _dense(next(keys), E, T)
    p["w_acb"], p["b_acb"] = _dense(next(keys), T, 3 * K)      # [A | C | B] fused

    # PolicyNet projections
    p["w_img"], p["b_img"] = _dense(next(keys), F, D)
    p["w_req"], p["b_req"] = _dense(next(keys), K, D)

    # Transformer encoder layers (QKV fused into one (D, 3D) weight)
    layers = []
    for _ in range(cfg["num_layers"]):
        wqkv, bqkv = _dense(next(keys), D, 3 * D)
        wo, bo = _dense(next(keys), D, D)
        w1, b1 = _dense(next(keys), D, Hf)
        w2, b2 = _dense(next(keys), Hf, D)
        g1 = jnp.ones((1, D), jnp.float32)
        be1 = jnp.zeros((1, D), jnp.float32)
        g2 = jnp.ones((1, D), jnp.float32)
        be2 = jnp.zeros((1, D), jnp.float32)
        layers.append((wqkv, bqkv, wo, bo, w1, b1, w2, b2, g1, be1, g2, be2))
    p["layers"] = layers

    # Eval MLP (per candidate)
    eval_mlp = []
    fan_in = D
    for n_out in eval_nodes:
        eval_mlp.append(_dense(next(keys), fan_in, n_out))
        fan_in = n_out
    p["eval_mlp"] = eval_mlp

    # Rank MLP: concat of per-candidate eval vectors -> factorial(num_rnk) logits
    p["rnk_hidden"] = _dense(next(keys), R * eval_nodes[-1], rnk_nodes[0])
    p["rnk_out"] = _dense(next(keys), rnk_nodes[0], math.factorial(R))
    return p


def _flatten_params(p):
    flat = [p["w_text"], p["b_text"], p["w_acb"], p["b_acb"],
            p["w_img"], p["b_img"], p["w_req"], p["b_req"]]
    for layer in p["layers"]:
        flat.extend(layer)
    for we, be in p["eval_mlp"]:
        flat.extend([we, be])
    flat.extend([p["rnk_hidden"][0], p["rnk_hidden"][1],
                 p["rnk_out"][0], p["rnk_out"][1]])
    return flat


# ----------------------------------------------------------------------------
# Forward pass: ONE fused pallas_call, grid=(batch,), parallel over TensorCores.
# ----------------------------------------------------------------------------

def model_forward(params, dlg, crd, cfg):
    B = dlg.shape[0]
    R = cfg["num_rnk"]
    P = math.factorial(R)
    flat_w = _flatten_params(params)

    def _const_spec(a):
        nd = a.ndim
        return pl.BlockSpec(a.shape, lambda b, _nd=nd: (0,) * _nd)

    in_specs = (
        [pl.BlockSpec((1,) + dlg.shape[1:], lambda b: (b, 0, 0)),
         pl.BlockSpec((1,) + crd.shape[1:], lambda b: (b, 0, 0, 0))]
        + [_const_spec(a) for a in flat_w])
    out_specs = pl.BlockSpec((1, 1, P), lambda b: (b, 0, 0))

    kernel = functools.partial(
        _fused_forward_kernel,
        hops=cfg["hops"], num_head=cfg["num_head"],
        num_layers=cfg["num_layers"], n_eval=len(params["eval_mlp"]),
        num_rnk=R)

    out = pl.pallas_call(
        kernel,
        out_shape=jax.ShapeDtypeStruct((B, 1, P), jnp.float32),
        grid=(B,),
        in_specs=in_specs,
        out_specs=out_specs,
        compiler_params=pltpu.CompilerParams(
            dimension_semantics=("parallel",)),
    )(dlg, crd, *flat_w)
    return out.reshape(B, P)


# ----------------------------------------------------------------------------

if __name__ == "__main__":
    cfg = dict(
        emb_size=32, key_size=32, mem_size=8, hops=2,
        eval_node=([64, 32], [48]), num_rnk=3, num_feature=4, num_cordi=4,
        num_layers=2, d_model=32, hidden_size=64, num_head=4,
        dropout_prob=0.1, text_feat_size=32, img_feat_size=32,
    )

    root = jax.random.PRNGKey(0)
    pkey, dkey, ckey = jax.random.split(root, 3)

    params = init_params(pkey, cfg)
    dlg = jax.random.normal(dkey, (2, cfg["mem_size"], cfg["emb_size"]), jnp.float32)
    crd = jax.random.normal(
        ckey, (2, cfg["num_rnk"], cfg["num_cordi"], cfg["img_feat_size"]), jnp.float32)

    logits = model_forward(params, dlg, crd, cfg)
    jax.block_until_ready(logits)

    assert logits.shape == (2, math.factorial(cfg["num_rnk"]))
    assert bool(jnp.all(jnp.isfinite(logits)))
    print("KERNEL_OK")
</pallas_src>

<mosaic_0001>
module attributes {stable_mosaic.version = 11 : i64} {
  func.func @_fused_forward_kernel(%arg0: i32, %arg1: memref<1x8x32xf32, #tpu.memory_space<vmem>>, %arg2: memref<1x3x4x32xf32, #tpu.memory_space<vmem>>, %arg3: memref<32x32xf32, #tpu.memory_space<vmem>>, %arg4: memref<1x32xf32, #tpu.memory_space<vmem>>, %arg5: memref<32x96xf32, #tpu.memory_space<vmem>>, %arg6: memref<1x96xf32, #tpu.memory_space<vmem>>, %arg7: memref<32x32xf32, #tpu.memory_space<vmem>>, %arg8: memref<1x32xf32, #tpu.memory_space<vmem>>, %arg9: memref<32x32xf32, #tpu.memory_space<vmem>>, %arg10: memref<1x32xf32, #tpu.memory_space<vmem>>, %arg11: memref<32x96xf32, #tpu.memory_space<vmem>>, %arg12: memref<1x96xf32, #tpu.memory_space<vmem>>, %arg13: memref<32x32xf32, #tpu.memory_space<vmem>>, %arg14: memref<1x32xf32, #tpu.memory_space<vmem>>, %arg15: memref<32x64xf32, #tpu.memory_space<vmem>>, %arg16: memref<1x64xf32, #tpu.memory_space<vmem>>, %arg17: memref<64x32xf32, #tpu.memory_space<vmem>>, %arg18: memref<1x32xf32, #tpu.memory_space<vmem>>, %arg19: memref<1x32xf32, #tpu.memory_space<vmem>>, %arg20: memref<1x32xf32, #tpu.memory_space<vmem>>, %arg21: memref<1x32xf32, #tpu.memory_space<vmem>>, %arg22: memref<1x32xf32, #tpu.memory_space<vmem>>, %arg23: memref<32x96xf32, #tpu.memory_space<vmem>>, %arg24: memref<1x96xf32, #tpu.memory_space<vmem>>, %arg25: memref<32x32xf32, #tpu.memory_space<vmem>>, %arg26: memref<1x32xf32, #tpu.memory_space<vmem>>, %arg27: memref<32x64xf32, #tpu.memory_space<vmem>>, %arg28: memref<1x64xf32, #tpu.memory_space<vmem>>, %arg29: memref<64x32xf32, #tpu.memory_space<vmem>>, %arg30: memref<1x32xf32, #tpu.memory_space<vmem>>, %arg31: memref<1x32xf32, #tpu.memory_space<vmem>>, %arg32: memref<1x32xf32, #tpu.memory_space<vmem>>, %arg33: memref<1x32xf32, #tpu.memory_space<vmem>>, %arg34: memref<1x32xf32, #tpu.memory_space<vmem>>, %arg35: memref<32x64xf32, #tpu.memory_space<vmem>>, %arg36: memref<1x64xf32, #tpu.memory_space<vmem>>, %arg37: memref<64x32xf32, #tpu.memory_space<vmem>>, %arg38: memref<1x32xf32, #tpu.memory_space<vmem>>, %arg39: memref<96x48xf32, #tpu.memory_space<vmem>>, %arg40: memref<1x48xf32, #tpu.memory_space<vmem>>, %arg41: memref<48x6xf32, #tpu.memory_space<vmem>>, %arg42: memref<1x6xf32, #tpu.memory_space<vmem>>, %arg43: memref<1x1x6xf32, #tpu.memory_space<vmem>>) attributes {dimension_semantics = [#tpu.dimension_semantics<parallel>], iteration_bounds = array<i64: 2>, scalar_prefetch = 0 : i64, scratch_operands = 0 : i64, tpu.core_type = #tpu.core_type<tc>, window_params = [{transform_indices = @transform_0, window_bounds = array<i64: 1, 8, 32>}, {transform_indices = @transform_1, window_bounds = array<i64: 1, 3, 4, 32>}, {pipeline_mode = #tpu.pipeline_mode<synchronous>, transform_indices = @transform_2, window_bounds = array<i64: 32, 32>}, {pipeline_mode = #tpu.pipeline_mode<synchronous>, transform_indices = @transform_3, window_bounds = array<i64: 1, 32>}, {pipeline_mode = #tpu.pipeline_mode<synchronous>, transform_indices = @transform_4, window_bounds = array<i64: 32, 96>}, {pipeline_mode = #tpu.pipeline_mode<synchronous>, transform_indices = @transform_5, window_bounds = array<i64: 1, 96>}, {pipeline_mode = #tpu.pipeline_mode<synchronous>, transform_indices = @transform_6, window_bounds = array<i64: 32, 32>}, {pipeline_mode = #tpu.pipeline_mode<synchronous>, transform_indices = @transform_7, window_bounds = array<i64: 1, 32>}, {pipeline_mode = #tpu.pipeline_mode<synchronous>, transform_indices = @transform_8, window_bounds = array<i64: 32, 32>}, {pipeline_mode = #tpu.pipeline_mode<synchronous>, transform_indices = @transform_9, window_bounds = array<i64: 1, 32>}, {pipeline_mode = #tpu.pipeline_mode<synchronous>, transform_indices = @transform_10, window_bounds = array<i64: 32, 96>}, {pipeline_mode = #tpu.pipeline_mode<synchronous>, transform_indices = @transform_11, window_bounds = array<i64: 1, 96>}, {pipeline_mode = #tpu.pipeline_mode<synchronous>, transform_indices = @transform_12, window_bounds = array<i64: 32, 32>}, {pipeline_mode = #tpu.pipeline_mode<synchronous>, transform_indices = @transform_13, window_bounds = array<i64: 1, 32>}, {pipeline_mode = #tpu.pipeline_mode<synchronous>, transform_indices = @transform_14, window_bounds = array<i64: 32, 64>}, {pipeline_mode = #tpu.pipeline_mode<synchronous>, transform_indices = @transform_15, window_bounds = array<i64: 1, 64>}, {pipeline_mode = #tpu.pipeline_mode<synchronous>, transform_indices = @transform_16, window_bounds = array<i64: 64, 32>}, {pipeline_mode = #tpu.pipeline_mode<synchronous>, transform_indices = @transform_17, window_bounds = array<i64: 1, 32>}, {pipeline_mode = #tpu.pipeline_mode<synchronous>, transform_indices = @transform_18, window_bounds = array<i64: 1, 32>}, {pipeline_mode = #tpu.pipeline_mode<synchronous>, transform_indices = @transform_19, window_bounds = array<i64: 1, 32>}, {pipeline_mode = #tpu.pipeline_mode<synchronous>, transform_indices = @transform_20, window_bounds = array<i64: 1, 32>}, {pipeline_mode = #tpu.pipeline_mode<synchronous>, transform_indices = @transform_21, window_bounds = array<i64: 1, 32>}, {pipeline_mode = #tpu.pipeline_mode<synchronous>, transform_indices = @transform_22, window_bounds = array<i64: 32, 96>}, {pipeline_mode = #tpu.pipeline_mode<synchronous>, transform_indices = @transform_23, window_bounds = array<i64: 1, 96>}, {pipeline_mode = #tpu.pipeline_mode<synchronous>, transform_indices = @transform_24, window_bounds = array<i64: 32, 32>}, {pipeline_mode = #tpu.pipeline_mode<synchronous>, transform_indices = @transform_25, window_bounds = array<i64: 1, 32>}, {pipeline_mode = #tpu.pipeline_mode<synchronous>, transform_indices = @transform_26, window_bounds = array<i64: 32, 64>}, {pipeline_mode = #tpu.pipeline_mode<synchronous>, transform_indices = @transform_27, window_bounds = array<i64: 1, 64>}, {pipeline_mode = #tpu.pipeline_mode<synchronous>, transform_indices = @transform_28, window_bounds = array<i64: 64, 32>}, {pipeline_mode = #tpu.pipeline_mode<synchronous>, transform_indices = @transform_29, window_bounds = array<i64: 1, 32>}, {pipeline_mode = #tpu.pipeline_mode<synchronous>, transform_indices = @transform_30, window_bounds = array<i64: 1, 32>}, {pipeline_mode = #tpu.pipeline_mode<synchronous>, transform_indices = @transform_31, window_bounds = array<i64: 1, 32>}, {pipeline_mode = #tpu.pipeline_mode<synchronous>, transform_indices = @transform_32, window_bounds = array<i64: 1, 32>}, {pipeline_mode = #tpu.pipeline_mode<synchronous>, transform_indices = @transform_33, window_bounds = array<i64: 1, 32>}, {pipeline_mode = #tpu.pipeline_mode<synchronous>, transform_indices = @transform_34, window_bounds = array<i64: 32, 64>}, {pipeline_mode = #tpu.pipeline_mode<synchronous>, transform_indices = @transform_35, window_bounds = array<i64: 1, 64>}, {pipeline_mode = #tpu.pipeline_mode<synchronous>, transform_indices = @transform_36, window_bounds = array<i64: 64, 32>}, {pipeline_mode = #tpu.pipeline_mode<synchronous>, transform_indices = @transform_37, window_bounds = array<i64: 1, 32>}, {pipeline_mode = #tpu.pipeline_mode<synchronous>, transform_indices = @transform_38, window_bounds = array<i64: 96, 48>}, {pipeline_mode = #tpu.pipeline_mode<synchronous>, transform_indices = @transform_39, window_bounds = array<i64: 1, 48>}, {pipeline_mode = #tpu.pipeline_mode<synchronous>, transform_indices = @transform_40, window_bounds = array<i64: 48, 6>}, {pipeline_mode = #tpu.pipeline_mode<synchronous>, transform_indices = @transform_41, window_bounds = array<i64: 1, 6>}, {transform_indices = @transform_42, window_bounds = array<i64: 1, 1, 6>}]} {
    %c0 = arith.constant 0 : index
    %c0_0 = arith.constant 0 : index
    %c0_1 = arith.constant 0 : index
    %0 = vector.load %arg1[%c0, %c0_0, %c0_1] : memref<1x8x32xf32, #tpu.memory_space<vmem>>, vector<1x8x32xf32>
    %1 = vector.shape_cast %0 : vector<1x8x32xf32> to vector<8x32xf32>
    %c0_2 = arith.constant 0 : index
    %c0_3 = arith.constant 0 : index
    %2 = vector.load %arg3[%c0_2, %c0_3] : memref<32x32xf32, #tpu.memory_space<vmem>>, vector<32x32xf32>
    %cst = arith.constant dense<0.000000e+00> : vector<8x32xf32>
    %3 = tpu.matmul %1, %2, %cst {dimension_numbers = #tpu.dot_dimension_numbers<[1], [0], [0], [1], [0, 0, 1, 1], [], []>} : vector<8x32xf32>, vector<32x32xf32>, vector<8x32xf32> -> vector<8x32xf32>
    %c0_4 = arith.constant 0 : index
    %c0_5 = arith.constant 0 : index
    %4 = vector.load %arg4[%c0_4, %c0_5] : memref<1x32xf32, #tpu.memory_space<vmem>>, vector<1x32xf32>
    %5 = vector.broadcast %4 : vector<1x32xf32> to vector<8x32xf32>
    %6 = arith.addf %3, %5 : vector<8x32xf32>
    %cst_6 = arith.constant 0.000000e+00 : f32
    %7 = vector.broadcast %cst_6 : f32 to vector<8x32xf32>
    %8 = arith.maximumf %6, %7 : vector<8x32xf32>
    %c0_7 = arith.constant 0 : index
    %c0_8 = arith.constant 0 : index
    %9 = vector.load %arg5[%c0_7, %c0_8] : memref<32x96xf32, #tpu.memory_space<vmem>>, vector<32x96xf32>
    %cst_9 = arith.constant dense<0.000000e+00> : vector<8x96xf32>
    %10 = tpu.matmul %8, %9, %cst_9 {dimension_numbers = #tpu.dot_dimension_numbers<[1], [0], [0], [1], [0, 0, 1, 1], [], []>} : vector<8x32xf32>, vector<32x96xf32>, vector<8x96xf32> -> vector<8x96xf32>
    %c0_10 = arith.constant 0 : index
    %c0_11 = arith.constant 0 : index
    %11 = vector.load %arg6[%c0_10, %c0_11] : memref<1x96xf32, #tpu.memory_space<vmem>>, vector<1x96xf32>
    %12 = vector.broadcast %11 : vector<1x96xf32> to vector<8x96xf32>
    %13 = arith.addf %10, %12 : vector<8x96xf32>
    %14 = vector.extract_strided_slice %13 {offsets = [0, 0], sizes = [8, 32], strides = [1, 1]} : vector<8x96xf32> to vector<8x32xf32>
    %15 = vector.extract_strided_slice %13 {offsets = [0, 32], sizes = [8, 32], strides = [1, 1]} : vector<8x96xf32> to vector<8x32xf32>
    %16 = vector.extract_strided_slice %13 {offsets = [0, 64], sizes = [8, 32], strides = [1, 1]} : vector<8x96xf32> to vector<8x32xf32>
    %cst_12 = arith.constant dense<0.000000e+00> : vector<32xf32>
    %17 = vector.multi_reduction <add>, %16, %cst_12 [0] : vector<8x32xf32> to vector<32xf32>
    %18 = vector.shape_cast %17 : vector<32xf32> to vector<1x32xf32>
    %cst_13 = arith.constant 8.000000e+00 : f32
    %19 = vector.broadcast %cst_13 : f32 to vector<1x32xf32>
    %20 = arith.divf %18, %19 : vector<1x32xf32>
    "tpu.trace_start"() <{level = 10 : i32, message = "ak,mk->am"}> : () -> ()
    %cst_14 = arith.constant dense<0.000000e+00> : vector<1x8xf32>
    %21 = tpu.matmul %20, %14, %cst_14 {dimension_numbers = #tpu.dot_dimension_numbers<[1], [1], [0], [0], [0, 0, 1, 0], [], []>} : vector<1x32xf32>, vector<8x32xf32>, vector<1x8xf32> -> vector<1x8xf32>
    "tpu.trace_stop"() : () -> ()
    %cst_15 = arith.constant dense<0xFF800000> : vector<1xf32>
    %22 = vector.multi_reduction <maximumf>, %21, %cst_15 [1] : vector<1x8xf32> to vector<1xf32>
    %23 = vector.shape_cast %22 : vector<1xf32> to vector<1x1xf32>
    %24 = vector.broadcast %23 : vector<1x1xf32> to vector<1x8xf32>
    %25 = arith.subf %21, %24 : vector<1x8xf32>
    %26 = math.exp %25 : vector<1x8xf32>
    %cst_16 = arith.constant dense<0.000000e+00> : vector<1xf32>
    %27 = vector.multi_reduction <add>, %26, %cst_16 [1] : vector<1x8xf32> to vector<1xf32>
    %28 = vector.shape_cast %27 : vector<1xf32> to vector<1x1xf32>
    %29 = tpu.reciprocal %28 {approx = true} : vector<1x1xf32> -> vector<1x1xf32>
    %30 = vector.broadcast %29 : vector<1x1xf32> to vector<1x8xf32>
    %31 = arith.mulf %26, %30 : vector<1x8xf32>
    %cst_17 = arith.constant dense<0.000000e+00> : vector<1x32xf32>
    %32 = tpu.matmul %31, %15, %cst_17 {dimension_numbers = #tpu.dot_dimension_numbers<[1], [0], [0], [1], [0, 0, 1, 1], [], []>} : vector<1x8xf32>, vector<8x32xf32>, vector<1x32xf32> -> vector<1x32xf32>
    %33 = arith.addf %20, %32 : vector<1x32xf32>
    "tpu.trace_start"() <{level = 10 : i32, message = "ak,mk->am"}> : () -> ()
    %cst_18 = arith.constant dense<0.000000e+00> : vector<1x8xf32>
    %34 = tpu.matmul %33, %14, %cst_18 {dimension_numbers = #tpu.dot_dimension_numbers<[1], [1], [0], [0], [0, 0, 1, 0], [], []>} : vector<1x32xf32>, vector<8x32xf32>, vector<1x8xf32> -> vector<1x8xf32>
    "tpu.trace_stop"() : () -> ()
    %cst_19 = arith.constant dense<0xFF800000> : vector<1xf32>
    %35 = vector.multi_reduction <maximumf>, %34, %cst_19 [1] : vector<1x8xf32> to vector<1xf32>
    %36 = vector.shape_cast %35 : vector<1xf32> to vector<1x1xf32>
    %37 = vector.broadcast %36 : vector<1x1xf32> to vector<1x8xf32>
    %38 = arith.subf %34, %37 : vector<1x8xf32>
    %39 = math.exp %38 : vector<1x8xf32>
    %cst_20 = arith.constant dense<0.000000e+00> : vector<1xf32>
    %40 = vector.multi_reduction <add>, %39, %cst_20 [1] : vector<1x8xf32> to vector<1xf32>
    %41 = vector.shape_cast %40 : vector<1xf32> to vector<1x1xf32>
    %42 = tpu.reciprocal %41 {approx = true} : vector<1x1xf32> -> vector<1x1xf32>
    %43 = vector.broadcast %42 : vector<1x1xf32> to vector<1x8xf32>
    %44 = arith.mulf %39, %43 : vector<1x8xf32>
    %cst_21 = arith.constant dense<0.000000e+00> : vector<1x32xf32>
    %45 = tpu.matmul %44, %15, %cst_21 {dimension_numbers = #tpu.dot_dimension_numbers<[1], [0], [0], [1], [0, 0, 1, 1], [], []>} : vector<1x8xf32>, vector<8x32xf32>, vector<1x32xf32> -> vector<1x32xf32>
    %46 = arith.addf %33, %45 : vector<1x32xf32>
    %c0_22 = arith.constant 0 : index
    %c0_23 = arith.constant 0 : index
    %c0_24 = arith.constant 0 : index
    %c0_25 = arith.constant 0 : index
    %47 = vector.load %arg2[%c0_22, %c0_23, %c0_24, %c0_25] : memref<1x3x4x32xf32, #tpu.memory_space<vmem>>, vector<1x3x4x32xf32>
    %48 = vector.shape_cast %47 : vector<1x3x4x32xf32> to vector<3x4x32xf32>
    %c0_26 = arith.constant 0 : index
    %c0_27 = arith.constant 0 : index
    %49 = vector.load %arg7[%c0_26, %c0_27] : memref<32x32xf32, #tpu.memory_space<vmem>>, vector<32x32xf32>
    "tpu.trace_start"() <{level = 10 : i32, message = "rcf,fd->rcd"}> : () -> ()
    %cst_28 = arith.constant dense<0.000000e+00> : vector<3x4x32xf32>
    %50 = tpu.matmul %48, %49, %cst_28 {dimension_numbers = #tpu.dot_dimension_numbers<[2], [0], [0, 1], [1], [0, 0, 0, 1, 1, 1], [], []>} : vector<3x4x32xf32>, vector<32x32xf32>, vector<3x4x32xf32> -> vector<3x4x32xf32>
    "tpu.trace_stop"() : () -> ()
    %c0_29 = arith.constant 0 : index
    %c0_30 = arith.constant 0 : index
    %51 = vector.load %arg8[%c0_29, %c0_30] : memref<1x32xf32, #tpu.memory_space<vmem>>, vector<1x32xf32>
    %52 = vector.shape_cast %51 : vector<1x32xf32> to vector<1x1x32xf32>
    %53 = vector.broadcast %52 : vector<1x1x32xf32> to vector<3x4x32xf32>
    %54 = arith.addf %50, %53 : vector<3x4x32xf32>
    %c0_31 = arith.constant 0 : index
    %c0_32 = arith.constant 0 : index
    %55 = vector.load %arg9[%c0_31, %c0_32] : memref<32x32xf32, #tpu.memory_space<vmem>>, vector<32x32xf32>
    %cst_33 = arith.constant dense<0.000000e+00> : vector<1x32xf32>
    %56 = tpu.matmul %46, %55, %cst_33 {dimension_numbers = #tpu.dot_dimension_numbers<[1], [0], [0], [1], [0, 0, 1, 1], [], []>} : vector<1x32xf32>, vector<32x32xf32>, vector<1x32xf32> -> vector<1x32xf32>
    %c0_34 = arith.constant 0 : index
    %c0_35 = arith.constant 0 : index
    %57 = vector.load %arg10[%c0_34, %c0_35] : memref<1x32xf32, #tpu.memory_space<vmem>>, vector<1x32xf32>
    %58 = arith.addf %56, %57 : vector<1x32xf32>
    %59 = vector.shape_cast %58 : vector<1x32xf32> to vector<1x1x32xf32>
    %60 = vector.broadcast %59 : vector<1x1x32xf32> to vector<3x4x32xf32>
    %61 = arith.addf %54, %60 : vector<3x4x32xf32>
    %c0_36 = arith.constant 0 : index
    %c0_37 = arith.constant 0 : index
    %62 = vector.load %arg11[%c0_36, %c0_37] : memref<32x96xf32, #tpu.memory_space<vmem>>, vector<32x96xf32>
    "tpu.trace_start"() <{level = 10 : i32, message = "ncd,de->nce"}> : () -> ()
    %cst_38 = arith.constant dense<0.000000e+00> : vector<3x4x96xf32>
    %63 = tpu.matmul %61, %62, %cst_38 {dimension_numbers = #tpu.dot_dimension_numbers<[2], [0], [0, 1], [1], [0, 0, 0, 1, 1, 1], [], []>} : vector<3x4x32xf32>, vector<32x96xf32>, vector<3x4x96xf32> -> vector<3x4x96xf32>
    "tpu.trace_stop"() : () -> ()
    %c0_39 = arith.constant 0 : index
    %c0_40 = arith.constant 0 : index
    %64 = vector.load %arg12[%c0_39, %c0_40] : memref<1x96xf32, #tpu.memory_space<vmem>>, vector<1x96xf32>
    %65 = vector.shape_cast %64 : vector<1x96xf32> to vector<1x1x96xf32>
    %66 = vector.broadcast %65 : vector<1x1x96xf32> to vector<3x4x96xf32>
    %67 = arith.addf %63, %66 : vector<3x4x96xf32>
    %68 = vector.extract_strided_slice %67 {offsets = [0, 0, 0], sizes = [3, 4, 32], strides = [1, 1, 1]} : vector<3x4x96xf32> to vector<3x4x32xf32>
    %69 = vector.extract_strided_slice %67 {offsets = [0, 0, 32], sizes = [3, 4, 32], strides = [1, 1, 1]} : vector<3x4x96xf32> to vector<3x4x32xf32>
    %70 = vector.extract_strided_slice %67 {offsets = [0, 0, 64], sizes = [3, 4, 32], strides = [1, 1, 1]} : vector<3x4x96xf32> to vector<3x4x32xf32>
    %c0_41 = arith.constant 0 : index
    %c0_42 = arith.constant 0 : index
    %71 = vector.load %arg13[%c0_41, %c0_42] : memref<32x32xf32, #tpu.memory_space<vmem>>, vector<32x32xf32>
    %cst_43 = arith.constant 0.000000e+00 : f32
    %72 = vector.broadcast %cst_43 : f32 to vector<3x4x32xf32>
    %73 = vector.extract_strided_slice %68 {offsets = [0, 0, 0], sizes = [3, 4, 8], strides = [1, 1, 1]} : vector<3x4x32xf32> to vector<3x4x8xf32>
    %74 = vector.extract_strided_slice %69 {offsets = [0, 0, 0], sizes = [3, 4, 8], strides = [1, 1, 1]} : vector<3x4x32xf32> to vector<3x4x8xf32>
    %75 = vector.extract_strided_slice %70 {offsets = [0, 0, 0], sizes = [3, 4, 8], strides = [1, 1, 1]} : vector<3x4x32xf32> to vector<3x4x8xf32>
    "tpu.trace_start"() <{level = 10 : i32, message = "nsd,ntd->nst"}> : () -> ()
    %cst_44 = arith.constant dense<0.000000e+00> : vector<3x4x4xf32>
    %76 = tpu.matmul %73, %74, %cst_44 {dimension_numbers = #tpu.dot_dimension_numbers<[2], [2], [1], [1], [0, 0, 0, 1, 1, 1], [0], [0]>} : vector<3x4x8xf32>, vector<3x4x8xf32>, vector<3x4x4xf32> -> vector<3x4x4xf32>
    "tpu.trace_stop"() : () -> ()
    %cst_45 = arith.constant 0.353553385 : f32
    %77 = vector.broadcast %cst_45 : f32 to vector<3x4x4xf32>
    %78 = arith.mulf %76, %77 : vector<3x4x4xf32>
    %cst_46 = arith.constant dense<0xFF800000> : vector<3x4xf32>
    %79 = vector.multi_reduction <maximumf>, %78, %cst_46 [2] : vector<3x4x4xf32> to vector<3x4xf32>
    %80 = vector.shape_cast %79 : vector<3x4xf32> to vector<3x4x1xf32>
    %81 = vector.broadcast %80 : vector<3x4x1xf32> to vector<3x4x4xf32>
    %82 = arith.subf %78, %81 : vector<3x4x4xf32>
    %83 = math.exp %82 : vector<3x4x4xf32>
    %cst_47 = arith.constant dense<0.000000e+00> : vector<3x4xf32>
    %84 = vector.multi_reduction <add>, %83, %cst_47 [2] : vector<3x4x4xf32> to vector<3x4xf32>
    %85 = vector.shape_cast %84 : vector<3x4xf32> to vector<3x4x1xf32>
    %86 = tpu.reciprocal %85 {approx = true} : vector<3x4x1xf32> -> vector<3x4x1xf32>
    %87 = vector.broadcast %86 : vector<3x4x1xf32> to vector<3x4x4xf32>
    %88 = arith.mulf %83, %87 : vector<3x4x4xf32>
    "tpu.trace_start"() <{level = 10 : i32, message = "nst,ntd->nsd"}> : () -> ()
    %cst_48 = arith.constant dense<0.000000e+00> : vector<3x4x8xf32>
    %89 = tpu.matmul %88, %75, %cst_48 {dimension_numbers = #tpu.dot_dimension_numbers<[2], [1], [1], [2], [0, 0, 0, 1, 1, 2], [0], [0]>} : vector<3x4x4xf32>, vector<3x4x8xf32>, vector<3x4x8xf32> -> vector<3x4x8xf32>
    "tpu.trace_stop"() : () -> ()
    %90 = vector.extract_strided_slice %71 {offsets = [0, 0], sizes = [8, 32], strides = [1, 1]} : vector<32x32xf32> to vector<8x32xf32>
    "tpu.trace_start"() <{level = 10 : i32, message = "nsd,de->nse"}> : () -> ()
    %cst_49 = arith.constant dense<0.000000e+00> : vector<3x4x32xf32>
    %91 = tpu.matmul %89, %90, %cst_49 {dimension_numbers = #tpu.dot_dimension_numbers<[2], [0], [0, 1], [1], [0, 0, 0, 1, 1, 1], [], []>} : vector<3x4x8xf32>, vector<8x32xf32>, vector<3x4x32xf32> -> vector<3x4x32xf32>
    "tpu.trace_stop"() : () -> ()
    %92 = arith.addf %72, %91 : vector<3x4x32xf32>
    %93 = vector.extract_strided_slice %68 {offsets = [0, 0, 8], sizes = [3, 4, 8], strides = [1, 1, 1]} : vector<3x4x32xf32> to vector<3x4x8xf32>
    %94 = vector.extract_strided_slice %69 {offsets = [0, 0, 8], sizes = [3, 4, 8], strides = [1, 1, 1]} : vector<3x4x32xf32> to vector<3x4x8xf32>
    %95 = vector.extract_strided_slice %70 {offsets = [0, 0, 8], sizes = [3, 4, 8], strides = [1, 1, 1]} : vector<3x4x32xf32> to vector<3x4x8xf32>
    "tpu.trace_start"() <{level = 10 : i32, message = "nsd,ntd->nst"}> : () -> ()
    %cst_50 = arith.constant dense<0.000000e+00> : vector<3x4x4xf32>
    %96 = tpu.matmul %93, %94, %cst_50 {dimension_numbers = #tpu.dot_dimension_numbers<[2], [2], [1], [1], [0, 0, 0, 1, 1, 1], [0], [0]>} : vector<3x4x8xf32>, vector<3x4x8xf32>, vector<3x4x4xf32> -> vector<3x4x4xf32>
    "tpu.trace_stop"() : () -> ()
    %cst_51 = arith.constant 0.353553385 : f32
    %97 = vector.broadcast %cst_51 : f32 to vector<3x4x4xf32>
    %98 = arith.mulf %96, %97 : vector<3x4x4xf32>
    %cst_52 = arith.constant dense<0xFF800000> : vector<3x4xf32>
    %99 = vector.multi_reduction <maximumf>, %98, %cst_52 [2] : vector<3x4x4xf32> to vector<3x4xf32>
    %100 = vector.shape_cast %99 : vector<3x4xf32> to vector<3x4x1xf32>
    %101 = vector.broadcast %100 : vector<3x4x1xf32> to vector<3x4x4xf32>
    %102 = arith.subf %98, %101 : vector<3x4x4xf32>
    %103 = math.exp %102 : vector<3x4x4xf32>
    %cst_53 = arith.constant dense<0.000000e+00> : vector<3x4xf32>
    %104 = vector.multi_reduction <add>, %103, %cst_53 [2] : vector<3x4x4xf32> to vector<3x4xf32>
    %105 = vector.shape_cast %104 : vector<3x4xf32> to vector<3x4x1xf32>
    %106 = tpu.reciprocal %105 {approx = true} : vector<3x4x1xf32> -> vector<3x4x1xf32>
    %107 = vector.broadcast %106 : vector<3x4x1xf32> to vector<3x4x4xf32>
    %108 = arith.mulf %103, %107 : vector<3x4x4xf32>
    "tpu.trace_start"() <{level = 10 : i32, message = "nst,ntd->nsd"}> : () -> ()
    %cst_54 = arith.constant dense<0.000000e+00> : vector<3x4x8xf32>
    %109 = tpu.matmul %108, %95, %cst_54 {dimension_numbers = #tpu.dot_dimension_numbers<[2], [1], [1], [2], [0, 0, 0, 1, 1, 2], [0], [0]>} : vector<3x4x4xf32>, vector<3x4x8xf32>, vector<3x4x8xf32> -> vector<3x4x8xf32>
    "tpu.trace_stop"() : () -> ()
    %110 = vector.extract_strided_slice %71 {offsets = [8, 0], sizes = [8, 32], strides = [1, 1]} : vector<32x32xf32> to vector<8x32xf32>
    "tpu.trace_start"() <{level = 10 : i32, message = "nsd,de->nse"}> : () -> ()
    %cst_55 = arith.constant dense<0.000000e+00> : vector<3x4x32xf32>
    %111 = tpu.matmul %109, %110, %cst_55 {dimension_numbers = #tpu.dot_dimension_numbers<[2], [0], [0, 1], [1], [0, 0, 0, 1, 1, 1], [], []>} : vector<3x4x8xf32>, vector<8x32xf32>, vector<3x4x32xf32> -> vector<3x4x32xf32>
    "tpu.trace_stop"() : () -> ()
    %112 = arith.addf %92, %111 : vector<3x4x32xf32>
    %113 = vector.extract_strided_slice %68 {offsets = [0, 0, 16], sizes = [3, 4, 8], strides = [1, 1, 1]} : vector<3x4x32xf32> to vector<3x4x8xf32>
    %114 = vector.extract_strided_slice %69 {offsets = [0, 0, 16], sizes = [3, 4, 8], strides = [1, 1, 1]} : vector<3x4x32xf32> to vector<3x4x8xf32>
    %115 = vector.extract_strided_slice %70 {offsets = [0, 0, 16], sizes = [3, 4, 8], strides = [1, 1, 1]} : vector<3x4x32xf32> to vector<3x4x8xf32>
    "tpu.trace_start"() <{level = 10 : i32, message = "nsd,ntd->nst"}> : () -> ()
    %cst_56 = arith.constant dense<0.000000e+00> : vector<3x4x4xf32>
    %116 = tpu.matmul %113, %114, %cst_56 {dimension_numbers = #tpu.dot_dimension_numbers<[2], [2], [1], [1], [0, 0, 0, 1, 1, 1], [0], [0]>} : vector<3x4x8xf32>, vector<3x4x8xf32>, vector<3x4x4xf32> -> vector<3x4x4xf32>
    "tpu.trace_stop"() : () -> ()
    %cst_57 = arith.constant 0.353553385 : f32
    %117 = vector.broadcast %cst_57 : f32 to vector<3x4x4xf32>
    %118 = arith.mulf %116, %117 : vector<3x4x4xf32>
    %cst_58 = arith.constant dense<0xFF800000> : vector<3x4xf32>
    %119 = vector.multi_reduction <maximumf>, %118, %cst_58 [2] : vector<3x4x4xf32> to vector<3x4xf32>
    %120 = vector.shape_cast %119 : vector<3x4xf32> to vector<3x4x1xf32>
    %121 = vector.broadcast %120 : vector<3x4x1xf32> to vector<3x4x4xf32>
    %122 = arith.subf %118, %121 : vector<3x4x4xf32>
    %123 = math.exp %122 : vector<3x4x4xf32>
    %cst_59 = arith.constant dense<0.000000e+00> : vector<3x4xf32>
    %124 = vector.multi_reduction <add>, %123, %cst_59 [2] : vector<3x4x4xf32> to vector<3x4xf32>
    %125 = vector.shape_cast %124 : vector<3x4xf32> to vector<3x4x1xf32>
    %126 = tpu.reciprocal %125 {approx = true} : vector<3x4x1xf32> -> vector<3x4x1xf32>
    %127 = vector.broadcast %126 : vector<3x4x1xf32> to vector<3x4x4xf32>
    %128 = arith.mulf %123, %127 : vector<3x4x4xf32>
    "tpu.trace_start"() <{level = 10 : i32, message = "nst,ntd->nsd"}> : () -> ()
    %cst_60 = arith.constant dense<0.000000e+00> : vector<3x4x8xf32>
    %129 = tpu.matmul %128, %115, %cst_60 {dimension_numbers = #tpu.dot_dimension_numbers<[2], [1], [1], [2], [0, 0, 0, 1, 1, 2], [0], [0]>} : vector<3x4x4xf32>, vector<3x4x8xf32>, vector<3x4x8xf32> -> vector<3x4x8xf32>
    "tpu.trace_stop"() : () -> ()
    %130 = vector.extract_strided_slice %71 {offsets = [16, 0], sizes = [8, 32], strides = [1, 1]} : vector<32x32xf32> to vector<8x32xf32>
    "tpu.trace_start"() <{level = 10 : i32, message = "nsd,de->nse"}> : () -> ()
    %cst_61 = arith.constant dense<0.000000e+00> : vector<3x4x32xf32>
    %131 = tpu.matmul %129, %130, %cst_61 {dimension_numbers = #tpu.dot_dimension_numbers<[2], [0], [0, 1], [1], [0, 0, 0, 1, 1, 1], [], []>} : vector<3x4x8xf32>, vector<8x32xf32>, vector<3x4x32xf32> -> vector<3x4x32xf32>
    "tpu.trace_stop"() : () -> ()
    %132 = arith.addf %112, %131 : vector<3x4x32xf32>
    %133 = vector.extract_strided_slice %68 {offsets = [0, 0, 24], sizes = [3, 4, 8], strides = [1, 1, 1]} : vector<3x4x32xf32> to vector<3x4x8xf32>
    %134 = vector.extract_strided_slice %69 {offsets = [0, 0, 24], sizes = [3, 4, 8], strides = [1, 1, 1]} : vector<3x4x32xf32> to vector<3x4x8xf32>
    %135 = vector.extract_strided_slice %70 {offsets = [0, 0, 24], sizes = [3, 4, 8], strides = [1, 1, 1]} : vector<3x4x32xf32> to vector<3x4x8xf32>
    "tpu.trace_start"() <{level = 10 : i32, message = "nsd,ntd->nst"}> : () -> ()
    %cst_62 = arith.constant dense<0.000000e+00> : vector<3x4x4xf32>
    %136 = tpu.matmul %133, %134, %cst_62 {dimension_numbers = #tpu.dot_dimension_numbers<[2], [2], [1], [1], [0, 0, 0, 1, 1, 1], [0], [0]>} : vector<3x4x8xf32>, vector<3x4x8xf32>, vector<3x4x4xf32> -> vector<3x4x4xf32>
    "tpu.trace_stop"() : () -> ()
    %cst_63 = arith.constant 0.353553385 : f32
    %137 = vector.broadcast %cst_63 : f32 to vector<3x4x4xf32>
    %138 = arith.mulf %136, %137 : vector<3x4x4xf32>
    %cst_64 = arith.constant dense<0xFF800000> : vector<3x4xf32>
    %139 = vector.multi_reduction <maximumf>, %138, %cst_64 [2] : vector<3x4x4xf32> to vector<3x4xf32>
    %140 = vector.shape_cast %139 : vector<3x4xf32> to vector<3x4x1xf32>
    %141 = vector.broadcast %140 : vector<3x4x1xf32> to vector<3x4x4xf32>
    %142 = arith.subf %138, %141 : vector<3x4x4xf32>
    %143 = math.exp %142 : vector<3x4x4xf32>
    %cst_65 = arith.constant dense<0.000000e+00> : vector<3x4xf32>
    %144 = vector.multi_reduction <add>, %143, %cst_65 [2] : vector<3x4x4xf32> to vector<3x4xf32>
    %145 = vector.shape_cast %144 : vector<3x4xf32> to vector<3x4x1xf32>
    %146 = tpu.reciprocal %145 {approx = true} : vector<3x4x1xf32> -> vector<3x4x1xf32>
    %147 = vector.broadcast %146 : vector<3x4x1xf32> to vector<3x4x4xf32>
    %148 = arith.mulf %143, %147 : vector<3x4x4xf32>
    "tpu.trace_start"() <{level = 10 : i32, message = "nst,ntd->nsd"}> : () -> ()
    %cst_66 = arith.constant dense<0.000000e+00> : vector<3x4x8xf32>
    %149 = tpu.matmul %148, %135, %cst_66 {dimension_numbers = #tpu.dot_dimension_numbers<[2], [1], [1], [2], [0, 0, 0, 1, 1, 2], [0], [0]>} : vector<3x4x4xf32>, vector<3x4x8xf32>, vector<3x4x8xf32> -> vector<3x4x8xf32>
    "tpu.trace_stop"() : () -> ()
    %150 = vector.extract_strided_slice %71 {offsets = [24, 0], sizes = [8, 32], strides = [1, 1]} : vector<32x32xf32> to vector<8x32xf32>
    "tpu.trace_start"() <{level = 10 : i32, message = "nsd,de->nse"}> : () -> ()
    %cst_67 = arith.constant dense<0.000000e+00> : vector<3x4x32xf32>
    %151 = tpu.matmul %149, %150, %cst_67 {dimension_numbers = #tpu.dot_dimension_numbers<[2], [0], [0, 1], [1], [0, 0, 0, 1, 1, 1], [], []>} : vector<3x4x8xf32>, vector<8x32xf32>, vector<3x4x32xf32> -> vector<3x4x32xf32>
    "tpu.trace_stop"() : () -> ()
    %152 = arith.addf %132, %151 : vector<3x4x32xf32>
    %c0_68 = arith.constant 0 : index
    %c0_69 = arith.constant 0 : index
    %153 = vector.load %arg14[%c0_68, %c0_69] : memref<1x32xf32, #tpu.memory_space<vmem>>, vector<1x32xf32>
    %154 = vector.shape_cast %153 : vector<1x32xf32> to vector<1x1x32xf32>
    %155 = vector.broadcast %154 : vector<1x1x32xf32> to vector<3x4x32xf32>
    %156 = arith.addf %152, %155 : vector<3x4x32xf32>
    %157 = arith.addf %61, %156 : vector<3x4x32xf32>
    %cst_70 = arith.constant dense<0.000000e+00> : vector<3x4xf32>
    %158 = vector.multi_reduction <add>, %157, %cst_70 [2] : vector<3x4x32xf32> to vector<3x4xf32>
    %159 = vector.shape_cast %158 : vector<3x4xf32> to vector<3x4x1xf32>
    %cst_71 = arith.constant 3.200000e+01 : f32
    %160 = vector.broadcast %cst_71 : f32 to vector<3x4x1xf32>
    %161 = arith.divf %159, %160 : vector<3x4x1xf32>
    %162 = vector.broadcast %161 : vector<3x4x1xf32> to vector<3x4x32xf32>
    %163 = arith.subf %157, %162 : vector<3x4x32xf32>
    %164 = arith.mulf %163, %163 : vector<3x4x32xf32>
    %cst_72 = arith.constant dense<0.000000e+00> : vector<3x4xf32>
    %165 = vector.multi_reduction <add>, %164, %cst_72 [2] : vector<3x4x32xf32> to vector<3x4xf32>
    %166 = vector.shape_cast %165 : vector<3x4xf32> to vector<3x4x1xf32>
    %cst_73 = arith.constant 3.200000e+01 : f32
    %167 = vector.broadcast %cst_73 : f32 to vector<3x4x1xf32>
    %168 = arith.divf %166, %167 : vector<3x4x1xf32>
    %169 = vector.broadcast %161 : vector<3x4x1xf32> to vector<3x4x32xf32>
    %170 = arith.subf %157, %169 : vector<3x4x32xf32>
    %cst_74 = arith.constant 9.99999974E-6 : f32
    %171 = vector.broadcast %cst_74 : f32 to vector<3x4x1xf32>
    %172 = arith.addf %168, %171 : vector<3x4x1xf32>
    %173 = math.rsqrt %172 : vector<3x4x1xf32>
    %174 = vector.broadcast %173 : vector<3x4x1xf32> to vector<3x4x32xf32>
    %175 = arith.mulf %170, %174 : vector<3x4x32xf32>
    %c0_75 = arith.constant 0 : index
    %c0_76 = arith.constant 0 : index
    %176 = vector.load %arg19[%c0_75, %c0_76] : memref<1x32xf32, #tpu.memory_space<vmem>>, vector<1x32xf32>
    %177 = vector.shape_cast %176 : vector<1x32xf32> to vector<1x1x32xf32>
    %178 = vector.broadcast %177 : vector<1x1x32xf32> to vector<3x4x32xf32>
    %179 = arith.mulf %175, %178 : vector<3x4x32xf32>
    %c0_77 = arith.constant 0 : index
    %c0_78 = arith.constant 0 : index
    %180 = vector.load %arg20[%c0_77, %c0_78] : memref<1x32xf32, #tpu.memory_space<vmem>>, vector<1x32xf32>
    %181 = vector.shape_cast %180 : vector<1x32xf32> to vector<1x1x32xf32>
    %182 = vector.broadcast %181 : vector<1x1x32xf32> to vector<3x4x32xf32>
    %183 = arith.addf %179, %182 : vector<3x4x32xf32>
    %c0_79 = arith.constant 0 : index
    %c0_80 = arith.constant 0 : index
    %184 = vector.load %arg15[%c0_79, %c0_80] : memref<32x64xf32, #tpu.memory_space<vmem>>, vector<32x64xf32>
    "tpu.trace_start"() <{level = 10 : i32, message = "ncd,dh->nch"}> : () -> ()
    %cst_81 = arith.constant dense<0.000000e+00> : vector<3x4x64xf32>
    %185 = tpu.matmul %183, %184, %cst_81 {dimension_numbers = #tpu.dot_dimension_numbers<[2], [0], [0, 1], [1], [0, 0, 0, 1, 1, 1], [], []>} : vector<3x4x32xf32>, vector<32x64xf32>, vector<3x4x64xf32> -> vector<3x4x64xf32>
    "tpu.trace_stop"() : () -> ()
    %c0_82 = arith.constant 0 : index
    %c0_83 = arith.constant 0 : index
    %186 = vector.load %arg16[%c0_82, %c0_83] : memref<1x64xf32, #tpu.memory_space<vmem>>, vector<1x64xf32>
    %187 = vector.shape_cast %186 : vector<1x64xf32> to vector<1x1x64xf32>
    %188 = vector.broadcast %187 : vector<1x1x64xf32> to vector<3x4x64xf32>
    %189 = arith.addf %185, %188 : vector<3x4x64xf32>
    %cst_84 = arith.constant 0.000000e+00 : f32
    %190 = vector.broadcast %cst_84 : f32 to vector<3x4x64xf32>
    %191 = arith.maximumf %189, %190 : vector<3x4x64xf32>
    %c0_85 = arith.constant 0 : index
    %c0_86 = arith.constant 0 : index
    %192 = vector.load %arg17[%c0_85, %c0_86] : memref<64x32xf32, #tpu.memory_space<vmem>>, vector<64x32xf32>
    "tpu.trace_start"() <{level = 10 : i32, message = "nch,hd->ncd"}> : () -> ()
    %cst_87 = arith.constant dense<0.000000e+00> : vector<3x4x32xf32>
    %193 = tpu.matmul %191, %192, %cst_87 {dimension_numbers = #tpu.dot_dimension_numbers<[2], [0], [0, 1], [1], [0, 0, 0, 1, 1, 1], [], []>} : vector<3x4x64xf32>, vector<64x32xf32>, vector<3x4x32xf32> -> vector<3x4x32xf32>
    "tpu.trace_stop"() : () -> ()
    %c0_88 = arith.constant 0 : index
    %c0_89 = arith.constant 0 : index
    %194 = vector.load %arg18[%c0_88, %c0_89] : memref<1x32xf32, #tpu.memory_space<vmem>>, vector<1x32xf32>
    %195 = vector.shape_cast %194 : vector<1x32xf32> to vector<1x1x32xf32>
    %196 = vector.broadcast %195 : vector<1x1x32xf32> to vector<3x4x32xf32>
    %197 = arith.addf %193, %196 : vector<3x4x32xf32>
    %198 = arith.addf %183, %197 : vector<3x4x32xf32>
    %cst_90 = arith.constant dense<0.000000e+00> : vector<3x4xf32>
    %199 = vector.multi_reduction <add>, %198, %cst_90 [2] : vector<3x4x32xf32> to vector<3x4xf32>
    %200 = vector.shape_cast %199 : vector<3x4xf32> to vector<3x4x1xf32>
    %cst_91 = arith.constant 3.200000e+01 : f32
    %201 = vector.broadcast %cst_91 : f32 to vector<3x4x1xf32>
    %202 = arith.divf %200, %201 : vector<3x4x1xf32>
    %203 = vector.broadcast %202 : vector<3x4x1xf32> to vector<3x4x32xf32>
    %204 = arith.subf %198, %203 : vector<3x4x32xf32>
    %205 = arith.mulf %204, %204 : vector<3x4x32xf32>
    %cst_92 = arith.constant dense<0.000000e+00> : vector<3x4xf32>
    %206 = vector.multi_reduction <add>, %205, %cst_92 [2] : vector<3x4x32xf32> to vector<3x4xf32>
    %207 = vector.shape_cast %206 : vector<3x4xf32> to vector<3x4x1xf32>
    %cst_93 = arith.constant 3.200000e+01 : f32
    %208 = vector.broadcast %cst_93 : f32 to vector<3x4x1xf32>
    %209 = arith.divf %207, %208 : vector<3x4x1xf32>
    %210 = vector.broadcast %202 : vector<3x4x1xf32> to vector<3x4x32xf32>
    %211 = arith.subf %198, %210 : vector<3x4x32xf32>
    %cst_94 = arith.constant 9.99999974E-6 : f32
    %212 = vector.broadcast %cst_94 : f32 to vector<3x4x1xf32>
    %213 = arith.addf %209, %212 : vector<3x4x1xf32>
    %214 = math.rsqrt %213 : vector<3x4x1xf32>
    %215 = vector.broadcast %214 : vector<3x4x1xf32> to vector<3x4x32xf32>
    %216 = arith.mulf %211, %215 : vector<3x4x32xf32>
    %c0_95 = arith.constant 0 : index
    %c0_96 = arith.constant 0 : index
    %217 = vector.load %arg21[%c0_95, %c0_96] : memref<1x32xf32, #tpu.memory_space<vmem>>, vector<1x32xf32>
    %218 = vector.shape_cast %217 : vector<1x32xf32> to vector<1x1x32xf32>
    %219 = vector.broadcast %218 : vector<1x1x32xf32> to vector<3x4x32xf32>
    %220 = arith.mulf %216, %219 : vector<3x4x32xf32>
    %c0_97 = arith.constant 0 : index
    %c0_98 = arith.constant 0 : index
    %221 = vector.load %arg22[%c0_97, %c0_98] : memref<1x32xf32, #tpu.memory_space<vmem>>, vector<1x32xf32>
    %222 = vector.shape_cast %221 : vector<1x32xf32> to vector<1x1x32xf32>
    %223 = vector.broadcast %222 : vector<1x1x32xf32> to vector<3x4x32xf32>
    %224 = arith.addf %220, %223 : vector<3x4x32xf32>
    %c0_99 = arith.constant 0 : index
    %c0_100 = arith.constant 0 : index
    %225 = vector.load %arg23[%c0_99, %c0_100] : memref<32x96xf32, #tpu.memory_space<vmem>>, vector<32x96xf32>
    "tpu.trace_start"() <{level = 10 : i32, message = "ncd,de->nce"}> : () -> ()
    %cst_101 = arith.constant dense<0.000000e+00> : vector<3x4x96xf32>
    %226 = tpu.matmul %224, %225, %cst_101 {dimension_numbers = #tpu.dot_dimension_numbers<[2], [0], [0, 1], [1], [0, 0, 0, 1, 1, 1], [], []>} : vector<3x4x32xf32>, vector<32x96xf32>, vector<3x4x96xf32> -> vector<3x4x96xf32>
    "tpu.trace_stop"() : () -> ()
    %c0_102 = arith.constant 0 : index
    %c0_103 = arith.constant 0 : index
    %227 = vector.load %arg24[%c0_102, %c0_103] : memref<1x96xf32, #tpu.memory_space<vmem>>, vector<1x96xf32>
    %228 = vector.shape_cast %227 : vector<1x96xf32> to vector<1x1x96xf32>
    %229 = vector.broadcast %228 : vector<1x1x96xf32> to vector<3x4x96xf32>
    %230 = arith.addf %226, %229 : vector<3x4x96xf32>
    %231 = vector.extract_strided_slice %230 {offsets = [0, 0, 0], sizes = [3, 4, 32], strides = [1, 1, 1]} : vector<3x4x96xf32> to vector<3x4x32xf32>
    %232 = vector.extract_strided_slice %230 {offsets = [0, 0, 32], sizes = [3, 4, 32], strides = [1, 1, 1]} : vector<3x4x96xf32> to vector<3x4x32xf32>
    %233 = vector.extract_strided_slice %230 {offsets = [0, 0, 64], sizes = [3, 4, 32], strides = [1, 1, 1]} : vector<3x4x96xf32> to vector<3x4x32xf32>
    %c0_104 = arith.constant 0 : index
    %c0_105 = arith.constant 0 : index
    %234 = vector.load %arg25[%c0_104, %c0_105] : memref<32x32xf32, #tpu.memory_space<vmem>>, vector<32x32xf32>
    %cst_106 = arith.constant 0.000000e+00 : f32
    %235 = vector.broadcast %cst_106 : f32 to vector<3x4x32xf32>
    %236 = vector.extract_strided_slice %231 {offsets = [0, 0, 0], sizes = [3, 4, 8], strides = [1, 1, 1]} : vector<3x4x32xf32> to vector<3x4x8xf32>
    %237 = vector.extract_strided_slice %232 {offsets = [0, 0, 0], sizes = [3, 4, 8], strides = [1, 1, 1]} : vector<3x4x32xf32> to vector<3x4x8xf32>
    %238 = vector.extract_strided_slice %233 {offsets = [0, 0, 0], sizes = [3, 4, 8], strides = [1, 1, 1]} : vector<3x4x32xf32> to vector<3x4x8xf32>
    "tpu.trace_start"() <{level = 10 : i32, message = "nsd,ntd->nst"}> : () -> ()
    %cst_107 = arith.constant dense<0.000000e+00> : vector<3x4x4xf32>
    %239 = tpu.matmul %236, %237, %cst_107 {dimension_numbers = #tpu.dot_dimension_numbers<[2], [2], [1], [1], [0, 0, 0, 1, 1, 1], [0], [0]>} : vector<3x4x8xf32>, vector<3x4x8xf32>, vector<3x4x4xf32> -> vector<3x4x4xf32>
    "tpu.trace_stop"() : () -> ()
    %cst_108 = arith.constant 0.353553385 : f32
    %240 = vector.broadcast %cst_108 : f32 to vector<3x4x4xf32>
    %241 = arith.mulf %239, %240 : vector<3x4x4xf32>
    %cst_109 = arith.constant dense<0xFF800000> : vector<3x4xf32>
    %242 = vector.multi_reduction <maximumf>, %241, %cst_109 [2] : vector<3x4x4xf32> to vector<3x4xf32>
    %243 = vector.shape_cast %242 : vector<3x4xf32> to vector<3x4x1xf32>
    %244 = vector.broadcast %243 : vector<3x4x1xf32> to vector<3x4x4xf32>
    %245 = arith.subf %241, %244 : vector<3x4x4xf32>
    %246 = math.exp %245 : vector<3x4x4xf32>
    %cst_110 = arith.constant dense<0.000000e+00> : vector<3x4xf32>
    %247 = vector.multi_reduction <add>, %246, %cst_110 [2] : vector<3x4x4xf32> to vector<3x4xf32>
    %248 = vector.shape_cast %247 : vector<3x4xf32> to vector<3x4x1xf32>
    %249 = tpu.reciprocal %248 {approx = true} : vector<3x4x1xf32> -> vector<3x4x1xf32>
    %250 = vector.broadcast %249 : vector<3x4x1xf32> to vector<3x4x4xf32>
    %251 = arith.mulf %246, %250 : vector<3x4x4xf32>
    "tpu.trace_start"() <{level = 10 : i32, message = "nst,ntd->nsd"}> : () -> ()
    %cst_111 = arith.constant dense<0.000000e+00> : vector<3x4x8xf32>
    %252 = tpu.matmul %251, %238, %cst_111 {dimension_numbers = #tpu.dot_dimension_numbers<[2], [1], [1], [2], [0, 0, 0, 1, 1, 2], [0], [0]>} : vector<3x4x4xf32>, vector<3x4x8xf32>, vector<3x4x8xf32> -> vector<3x4x8xf32>
    "tpu.trace_stop"() : () -> ()
    %253 = vector.extract_strided_slice %234 {offsets = [0, 0], sizes = [8, 32], strides = [1, 1]} : vector<32x32xf32> to vector<8x32xf32>
    "tpu.trace_start"() <{level = 10 : i32, message = "nsd,de->nse"}> : () -> ()
    %cst_112 = arith.constant dense<0.000000e+00> : vector<3x4x32xf32>
    %254 = tpu.matmul %252, %253, %cst_112 {dimension_numbers = #tpu.dot_dimension_numbers<[2], [0], [0, 1], [1], [0, 0, 0, 1, 1, 1], [], []>} : vector<3x4x8xf32>, vector<8x32xf32>, vector<3x4x32xf32> -> vector<3x4x32xf32>
    "tpu.trace_stop"() : () -> ()
    %255 = arith.addf %235, %254 : vector<3x4x32xf32>
    %256 = vector.extract_strided_slice %231 {offsets = [0, 0, 8], sizes = [3, 4, 8], strides = [1, 1, 1]} : vector<3x4x32xf32> to vector<3x4x8xf32>
    %257 = vector.extract_strided_slice %232 {offsets = [0, 0, 8], sizes = [3, 4, 8], strides = [1, 1, 1]} : vector<3x4x32xf32> to vector<3x4x8xf32>
    %258 = vector.extract_strided_slice %233 {offsets = [0, 0, 8], sizes = [3, 4, 8], strides = [1, 1, 1]} : vector<3x4x32xf32> to vector<3x4x8xf32>
    "tpu.trace_start"() <{level = 10 : i32, message = "nsd,ntd->nst"}> : () -> ()
    %cst_113 = arith.constant dense<0.000000e+00> : vector<3x4x4xf32>
    %259 = tpu.matmul %256, %257, %cst_113 {dimension_numbers = #tpu.dot_dimension_numbers<[2], [2], [1], [1], [0, 0, 0, 1, 1, 1], [0], [0]>} : vector<3x4x8xf32>, vector<3x4x8xf32>, vector<3x4x4xf32> -> vector<3x4x4xf32>
    "tpu.trace_stop"() : () -> ()
    %cst_114 = arith.constant 0.353553385 : f32
    %260 = vector.broadcast %cst_114 : f32 to vector<3x4x4xf32>
    %261 = arith.mulf %259, %260 : vector<3x4x4xf32>
    %cst_115 = arith.constant dense<0xFF800000> : vector<3x4xf32>
    %262 = vector.multi_reduction <maximumf>, %261, %cst_115 [2] : vector<3x4x4xf32> to vector<3x4xf32>
    %263 = vector.shape_cast %262 : vector<3x4xf32> to vector<3x4x1xf32>
    %264 = vector.broadcast %263 : vector<3x4x1xf32> to vector<3x4x4xf32>
    %265 = arith.subf %261, %264 : vector<3x4x4xf32>
    %266 = math.exp %265 : vector<3x4x4xf32>
    %cst_116 = arith.constant dense<0.000000e+00> : vector<3x4xf32>
    %267 = vector.multi_reduction <add>, %266, %cst_116 [2] : vector<3x4x4xf32> to vector<3x4xf32>
    %268 = vector.shape_cast %267 : vector<3x4xf32> to vector<3x4x1xf32>
    %269 = tpu.reciprocal %268 {approx = true} : vector<3x4x1xf32> -> vector<3x4x1xf32>
    %270 = vector.broadcast %269 : vector<3x4x1xf32> to vector<3x4x4xf32>
    %271 = arith.mulf %266, %270 : vector<3x4x4xf32>
    "tpu.trace_start"() <{level = 10 : i32, message = "nst,ntd->nsd"}> : () -> ()
    %cst_117 = arith.constant dense<0.000000e+00> : vector<3x4x8xf32>
    %272 = tpu.matmul %271, %258, %cst_117 {dimension_numbers = #tpu.dot_dimension_numbers<[2], [1], [1], [2], [0, 0, 0, 1, 1, 2], [0], [0]>} : vector<3x4x4xf32>, vector<3x4x8xf32>, vector<3x4x8xf32> -> vector<3x4x8xf32>
    "tpu.trace_stop"() : () -> ()
    %273 = vector.extract_strided_slice %234 {offsets = [8, 0], sizes = [8, 32], strides = [1, 1]} : vector<32x32xf32> to vector<8x32xf32>
    "tpu.trace_start"() <{level = 10 : i32, message = "nsd,de->nse"}> : () -> ()
    %cst_118 = arith.constant dense<0.000000e+00> : vector<3x4x32xf32>
    %274 = tpu.matmul %272, %273, %cst_118 {dimension_numbers = #tpu.dot_dimension_numbers<[2], [0], [0, 1], [1], [0, 0, 0, 1, 1, 1], [], []>} : vector<3x4x8xf32>, vector<8x32xf32>, vector<3x4x32xf32> -> vector<3x4x32xf32>
    "tpu.trace_stop"() : () -> ()
    %275 = arith.addf %255, %274 : vector<3x4x32xf32>
    %276 = vector.extract_strided_slice %231 {offsets = [0, 0, 16], sizes = [3, 4, 8], strides = [1, 1, 1]} : vector<3x4x32xf32> to vector<3x4x8xf32>
    %277 = vector.extract_strided_slice %232 {offsets = [0, 0, 16], sizes = [3, 4, 8], strides = [1, 1, 1]} : vector<3x4x32xf32> to vector<3x4x8xf32>
    %278 = vector.extract_strided_slice %233 {offsets = [0, 0, 16], sizes = [3, 4, 8], strides = [1, 1, 1]} : vector<3x4x32xf32> to vector<3x4x8xf32>
    "tpu.trace_start"() <{level = 10 : i32, message = "nsd,ntd->nst"}> : () -> ()
    %cst_119 = arith.constant dense<0.000000e+00> : vector<3x4x4xf32>
    %279 = tpu.matmul %276, %277, %cst_119 {dimension_numbers = #tpu.dot_dimension_numbers<[2], [2], [1], [1], [0, 0, 0, 1, 1, 1], [0], [0]>} : vector<3x4x8xf32>, vector<3x4x8xf32>, vector<3x4x4xf32> -> vector<3x4x4xf32>
    "tpu.trace_stop"() : () -> ()
    %cst_120 = arith.constant 0.353553385 : f32
    %280 = vector.broadcast %cst_120 : f32 to vector<3x4x4xf32>
    %281 = arith.mulf %279, %280 : vector<3x4x4xf32>
    %cst_121 = arith.constant dense<0xFF800000> : vector<3x4xf32>
    %282 = vector.multi_reduction <maximumf>, %281, %cst_121 [2] : vector<3x4x4xf32> to vector<3x4xf32>
    %283 = vector.shape_cast %282 : vector<3x4xf32> to vector<3x4x1xf32>
    %284 = vector.broadcast %283 : vector<3x4x1xf32> to vector<3x4x4xf32>
    %285 = arith.subf %281, %284 : vector<3x4x4xf32>
    %286 = math.exp %285 : vector<3x4x4xf32>
    %cst_122 = arith.constant dense<0.000000e+00> : vector<3x4xf32>
    %287 = vector.multi_reduction <add>, %286, %cst_122 [2] : vector<3x4x4xf32> to vector<3x4xf32>
    %288 = vector.shape_cast %287 : vector<3x4xf32> to vector<3x4x1xf32>
    %289 = tpu.reciprocal %288 {approx = true} : vector<3x4x1xf32> -> vector<3x4x1xf32>
    %290 = vector.broadcast %289 : vector<3x4x1xf32> to vector<3x4x4xf32>
    %291 = arith.mulf %286, %290 : vector<3x4x4xf32>
    "tpu.trace_start"() <{level = 10 : i32, message = "nst,ntd->nsd"}> : () -> ()
    %cst_123 = arith.constant dense<0.000000e+00> : vector<3x4x8xf32>
    %292 = tpu.matmul %291, %278, %cst_123 {dimension_numbers = #tpu.dot_dimension_numbers<[2], [1], [1], [2], [0, 0, 0, 1, 1, 2], [0], [0]>} : vector<3x4x4xf32>, vector<3x4x8xf32>, vector<3x4x8xf32> -> vector<3x4x8xf32>
    "tpu.trace_stop"() : () -> ()
    %293 = vector.extract_strided_slice %234 {offsets = [16, 0], sizes = [8, 32], strides = [1, 1]} : vector<32x32xf32> to vector<8x32xf32>
    "tpu.trace_start"() <{level = 10 : i32, message = "nsd,de->nse"}> : () -> ()
    %cst_124 = arith.constant dense<0.000000e+00> : vector<3x4x32xf32>
    %294 = tpu.matmul %292, %293, %cst_124 {dimension_numbers = #tpu.dot_dimension_numbers<[2], [0], [0, 1], [1], [0, 0, 0, 1, 1, 1], [], []>} : vector<3x4x8xf32>, vector<8x32xf32>, vector<3x4x32xf32> -> vector<3x4x32xf32>
    "tpu.trace_stop"() : () -> ()
    %295 = arith.addf %275, %294 : vector<3x4x32xf32>
    %296 = vector.extract_strided_slice %231 {offsets = [0, 0, 24], sizes = [3, 4, 8], strides = [1, 1, 1]} : vector<3x4x32xf32> to vector<3x4x8xf32>
    %297 = vector.extract_strided_slice %232 {offsets = [0, 0, 24], sizes = [3, 4, 8], strides = [1, 1, 1]} : vector<3x4x32xf32> to vector<3x4x8xf32>
    %298 = vector.extract_strided_slice %233 {offsets = [0, 0, 24], sizes = [3, 4, 8], strides = [1, 1, 1]} : vector<3x4x32xf32> to vector<3x4x8xf32>
    "tpu.trace_start"() <{level = 10 : i32, message = "nsd,ntd->nst"}> : () -> ()
    %cst_125 = arith.constant dense<0.000000e+00> : vector<3x4x4xf32>
    %299 = tpu.matmul %296, %297, %cst_125 {dimension_numbers = #tpu.dot_dimension_numbers<[2], [2], [1], [1], [0, 0, 0, 1, 1, 1], [0], [0]>} : vector<3x4x8xf32>, vector<3x4x8xf32>, vector<3x4x4xf32> -> vector<3x4x4xf32>
    "tpu.trace_stop"() : () -> ()
    %cst_126 = arith.constant 0.353553385 : f32
    %300 = vector.broadcast %cst_126 : f32 to vector<3x4x4xf32>
    %301 = arith.mulf %299, %300 : vector<3x4x4xf32>
    %cst_127 = arith.constant dense<0xFF800000> : vector<3x4xf32>
    %302 = vector.multi_reduction <maximumf>, %301, %cst_127 [2] : vector<3x4x4xf32> to vector<3x4xf32>
    %303 = vector.shape_cast %302 : vector<3x4xf32> to vector<3x4x1xf32>
    %304 = vector.broadcast %303 : vector<3x4x1xf32> to vector<3x4x4xf32>
    %305 = arith.subf %301, %304 : vector<3x4x4xf32>
    %306 = math.exp %305 : vector<3x4x4xf32>
    %cst_128 = arith.constant dense<0.000000e+00> : vector<3x4xf32>
    %307 = vector.multi_reduction <add>, %306, %cst_128 [2] : vector<3x4x4xf32> to vector<3x4xf32>
    %308 = vector.shape_cast %307 : vector<3x4xf32> to vector<3x4x1xf32>
    %309 = tpu.reciprocal %308 {approx = true} : vector<3x4x1xf32> -> vector<3x4x1xf32>
    %310 = vector.broadcast %309 : vector<3x4x1xf32> to vector<3x4x4xf32>
    %311 = arith.mulf %306, %310 : vector<3x4x4xf32>
    "tpu.trace_start"() <{level = 10 : i32, message = "nst,ntd->nsd"}> : () -> ()
    %cst_129 = arith.constant dense<0.000000e+00> : vector<3x4x8xf32>
    %312 = tpu.matmul %311, %298, %cst_129 {dimension_numbers = #tpu.dot_dimension_numbers<[2], [1], [1], [2], [0, 0, 0, 1, 1, 2], [0], [0]>} : vector<3x4x4xf32>, vector<3x4x8xf32>, vector<3x4x8xf32> -> vector<3x4x8xf32>
    "tpu.trace_stop"() : () -> ()
    %313 = vector.extract_strided_slice %234 {offsets = [24, 0], sizes = [8, 32], strides = [1, 1]} : vector<32x32xf32> to vector<8x32xf32>
    "tpu.trace_start"() <{level = 10 : i32, message = "nsd,de->nse"}> : () -> ()
    %cst_130 = arith.constant dense<0.000000e+00> : vector<3x4x32xf32>
    %314 = tpu.matmul %312, %313, %cst_130 {dimension_numbers = #tpu.dot_dimension_numbers<[2], [0], [0, 1], [1], [0, 0, 0, 1, 1, 1], [], []>} : vector<3x4x8xf32>, vector<8x32xf32>, vector<3x4x32xf32> -> vector<3x4x32xf32>
    "tpu.trace_stop"() : () -> ()
    %315 = arith.addf %295, %314 : vector<3x4x32xf32>
    %c0_131 = arith.constant 0 : index
    %c0_132 = arith.constant 0 : index
    %316 = vector.load %arg26[%c0_131, %c0_132] : memref<1x32xf32, #tpu.memory_space<vmem>>, vector<1x32xf32>
    %317 = vector.shape_cast %316 : vector<1x32xf32> to vector<1x1x32xf32>
    %318 = vector.broadcast %317 : vector<1x1x32xf32> to vector<3x4x32xf32>
    %319 = arith.addf %315, %318 : vector<3x4x32xf32>
    %320 = arith.addf %224, %319 : vector<3x4x32xf32>
    %cst_133 = arith.constant dense<0.000000e+00> : vector<3x4xf32>
    %321 = vector.multi_reduction <add>, %320, %cst_133 [2] : vector<3x4x32xf32> to vector<3x4xf32>
    %322 = vector.shape_cast %321 : vector<3x4xf32> to vector<3x4x1xf32>
    %cst_134 = arith.constant 3.200000e+01 : f32
    %323 = vector.broadcast %cst_134 : f32 to vector<3x4x1xf32>
    %324 = arith.divf %322, %323 : vector<3x4x1xf32>
    %325 = vector.broadcast %324 : vector<3x4x1xf32> to vector<3x4x32xf32>
    %326 = arith.subf %320, %325 : vector<3x4x32xf32>
    %327 = arith.mulf %326, %326 : vector<3x4x32xf32>
    %cst_135 = arith.constant dense<0.000000e+00> : vector<3x4xf32>
    %328 = vector.multi_reduction <add>, %327, %cst_135 [2] : vector<3x4x32xf32> to vector<3x4xf32>
    %329 = vector.shape_cast %328 : vector<3x4xf32> to vector<3x4x1xf32>
    %cst_136 = arith.constant 3.200000e+01 : f32
    %330 = vector.broadcast %cst_136 : f32 to vector<3x4x1xf32>
    %331 = arith.divf %329, %330 : vector<3x4x1xf32>
    %332 = vector.broadcast %324 : vector<3x4x1xf32> to vector<3x4x32xf32>
    %333 = arith.subf %320, %332 : vector<3x4x32xf32>
    %cst_137 = arith.constant 9.99999974E-6 : f32
    %334 = vector.broadcast %cst_137 : f32 to vector<3x4x1xf32>
    %335 = arith.addf %331, %334 : vector<3x4x1xf32>
    %336 = math.rsqrt %335 : vector<3x4x1xf32>
    %337 = vector.broadcast %336 : vector<3x4x1xf32> to vector<3x4x32xf32>
    %338 = arith.mulf %333, %337 : vector<3x4x32xf32>
    %c0_138 = arith.constant 0 : index
    %c0_139 = arith.constant 0 : index
    %339 = vector.load %arg31[%c0_138, %c0_139] : memref<1x32xf32, #tpu.memory_space<vmem>>, vector<1x32xf32>
    %340 = vector.shape_cast %339 : vector<1x32xf32> to vector<1x1x32xf32>
    %341 = vector.broadcast %340 : vector<1x1x32xf32> to vector<3x4x32xf32>
    %342 = arith.mulf %338, %341 : vector<3x4x32xf32>
    %c0_140 = arith.constant 0 : index
    %c0_141 = arith.constant 0 : index
    %343 = vector.load %arg32[%c0_140, %c0_141] : memref<1x32xf32, #tpu.memory_space<vmem>>, vector<1x32xf32>
    %344 = vector.shape_cast %343 : vector<1x32xf32> to vector<1x1x32xf32>
    %345 = vector.broadcast %344 : vector<1x1x32xf32> to vector<3x4x32xf32>
    %346 = arith.addf %342, %345 : vector<3x4x32xf32>
    %c0_142 = arith.constant 0 : index
    %c0_143 = arith.constant 0 : index
    %347 = vector.load %arg27[%c0_142, %c0_143] : memref<32x64xf32, #tpu.memory_space<vmem>>, vector<32x64xf32>
    "tpu.trace_start"() <{level = 10 : i32, message = "ncd,dh->nch"}> : () -> ()
    %cst_144 = arith.constant dense<0.000000e+00> : vector<3x4x64xf32>
    %348 = tpu.matmul %346, %347, %cst_144 {dimension_numbers = #tpu.dot_dimension_numbers<[2], [0], [0, 1], [1], [0, 0, 0, 1, 1, 1], [], []>} : vector<3x4x32xf32>, vector<32x64xf32>, vector<3x4x64xf32> -> vector<3x4x64xf32>
    "tpu.trace_stop"() : () -> ()
    %c0_145 = arith.constant 0 : index
    %c0_146 = arith.constant 0 : index
    %349 = vector.load %arg28[%c0_145, %c0_146] : memref<1x64xf32, #tpu.memory_space<vmem>>, vector<1x64xf32>
    %350 = vector.shape_cast %349 : vector<1x64xf32> to vector<1x1x64xf32>
    %351 = vector.broadcast %350 : vector<1x1x64xf32> to vector<3x4x64xf32>
    %352 = arith.addf %348, %351 : vector<3x4x64xf32>
    %cst_147 = arith.constant 0.000000e+00 : f32
    %353 = vector.broadcast %cst_147 : f32 to vector<3x4x64xf32>
    %354 = arith.maximumf %352, %353 : vector<3x4x64xf32>
    %c0_148 = arith.constant 0 : index
    %c0_149 = arith.constant 0 : index
    %355 = vector.load %arg29[%c0_148, %c0_149] : memref<64x32xf32, #tpu.memory_space<vmem>>, vector<64x32xf32>
    "tpu.trace_start"() <{level = 10 : i32, message = "nch,hd->ncd"}> : () -> ()
    %cst_150 = arith.constant dense<0.000000e+00> : vector<3x4x32xf32>
    %356 = tpu.matmul %354, %355, %cst_150 {dimension_numbers = #tpu.dot_dimension_numbers<[2], [0], [0, 1], [1], [0, 0, 0, 1, 1, 1], [], []>} : vector<3x4x64xf32>, vector<64x32xf32>, vector<3x4x32xf32> -> vector<3x4x32xf32>
    "tpu.trace_stop"() : () -> ()
    %c0_151 = arith.constant 0 : index
    %c0_152 = arith.constant 0 : index
    %357 = vector.load %arg30[%c0_151, %c0_152] : memref<1x32xf32, #tpu.memory_space<vmem>>, vector<1x32xf32>
    %358 = vector.shape_cast %357 : vector<1x32xf32> to vector<1x1x32xf32>
    %359 = vector.broadcast %358 : vector<1x1x32xf32> to vector<3x4x32xf32>
    %360 = arith.addf %356, %359 : vector<3x4x32xf32>
    %361 = arith.addf %346, %360 : vector<3x4x32xf32>
    %cst_153 = arith.constant dense<0.000000e+00> : vector<3x4xf32>
    %362 = vector.multi_reduction <add>, %361, %cst_153 [2] : vector<3x4x32xf32> to vector<3x4xf32>
    %363 = vector.shape_cast %362 : vector<3x4xf32> to vector<3x4x1xf32>
    %cst_154 = arith.constant 3.200000e+01 : f32
    %364 = vector.broadcast %cst_154 : f32 to vector<3x4x1xf32>
    %365 = arith.divf %363, %364 : vector<3x4x1xf32>
    %366 = vector.broadcast %365 : vector<3x4x1xf32> to vector<3x4x32xf32>
    %367 = arith.subf %361, %366 : vector<3x4x32xf32>
    %368 = arith.mulf %367, %367 : vector<3x4x32xf32>
    %cst_155 = arith.constant dense<0.000000e+00> : vector<3x4xf32>
    %369 = vector.multi_reduction <add>, %368, %cst_155 [2] : vector<3x4x32xf32> to vector<3x4xf32>
    %370 = vector.shape_cast %369 : vector<3x4xf32> to vector<3x4x1xf32>
    %cst_156 = arith.constant 3.200000e+01 : f32
    %371 = vector.broadcast %cst_156 : f32 to vector<3x4x1xf32>
    %372 = arith.divf %370, %371 : vector<3x4x1xf32>
    %373 = vector.broadcast %365 : vector<3x4x1xf32> to vector<3x4x32xf32>
    %374 = arith.subf %361, %373 : vector<3x4x32xf32>
    %cst_157 = arith.constant 9.99999974E-6 : f32
    %375 = vector.broadcast %cst_157 : f32 to vector<3x4x1xf32>
    %376 = arith.addf %372, %375 : vector<3x4x1xf32>
    %377 = math.rsqrt %376 : vector<3x4x1xf32>
    %378 = vector.broadcast %377 : vector<3x4x1xf32> to vector<3x4x32xf32>
    %379 = arith.mulf %374, %378 : vector<3x4x32xf32>
    %c0_158 = arith.constant 0 : index
    %c0_159 = arith.constant 0 : index
    %380 = vector.load %arg33[%c0_158, %c0_159] : memref<1x32xf32, #tpu.memory_space<vmem>>, vector<1x32xf32>
    %381 = vector.shape_cast %380 : vector<1x32xf32> to vector<1x1x32xf32>
    %382 = vector.broadcast %381 : vector<1x1x32xf32> to vector<3x4x32xf32>
    %383 = arith.mulf %379, %382 : vector<3x4x32xf32>
    %c0_160 = arith.constant 0 : index
    %c0_161 = arith.constant 0 : index
    %384 = vector.load %arg34[%c0_160, %c0_161] : memref<1x32xf32, #tpu.memory_space<vmem>>, vector<1x32xf32>
    %385 = vector.shape_cast %384 : vector<1x32xf32> to vector<1x1x32xf32>
    %386 = vector.broadcast %385 : vector<1x1x32xf32> to vector<3x4x32xf32>
    %387 = arith.addf %383, %386 : vector<3x4x32xf32>
    %cst_162 = arith.constant dense<0.000000e+00> : vector<3x32xf32>
    %388 = vector.multi_reduction <add>, %387, %cst_162 [1] : vector<3x4x32xf32> to vector<3x32xf32>
    %cst_163 = arith.constant 4.000000e+00 : f32
    %389 = vector.broadcast %cst_163 : f32 to vector<3x32xf32>
    %390 = arith.divf %388, %389 : vector<3x32xf32>
    %c0_164 = arith.constant 0 : index
    %c0_165 = arith.constant 0 : index
    %391 = vector.load %arg35[%c0_164, %c0_165] : memref<32x64xf32, #tpu.memory_space<vmem>>, vector<32x64xf32>
    %cst_166 = arith.constant dense<0.000000e+00> : vector<3x64xf32>
    %392 = tpu.matmul %390, %391, %cst_166 {dimension_numbers = #tpu.dot_dimension_numbers<[1], [0], [0], [1], [0, 0, 1, 1], [], []>} : vector<3x32xf32>, vector<32x64xf32>, vector<3x64xf32> -> vector<3x64xf32>
    %c0_167 = arith.constant 0 : index
    %c0_168 = arith.constant 0 : index
    %393 = vector.load %arg36[%c0_167, %c0_168] : memref<1x64xf32, #tpu.memory_space<vmem>>, vector<1x64xf32>
    %394 = vector.broadcast %393 : vector<1x64xf32> to vector<3x64xf32>
    %395 = arith.addf %392, %394 : vector<3x64xf32>
    %cst_169 = arith.constant 0.000000e+00 : f32
    %396 = vector.broadcast %cst_169 : f32 to vector<3x64xf32>
    %397 = arith.maximumf %395, %396 : vector<3x64xf32>
    %c0_170 = arith.constant 0 : index
    %c0_171 = arith.constant 0 : index
    %398 = vector.load %arg37[%c0_170, %c0_171] : memref<64x32xf32, #tpu.memory_space<vmem>>, vector<64x32xf32>
    %cst_172 = arith.constant dense<0.000000e+00> : vector<3x32xf32>
    %399 = tpu.matmul %397, %398, %cst_172 {dimension_numbers = #tpu.dot_dimension_numbers<[1], [0], [0], [1], [0, 0, 1, 1], [], []>} : vector<3x64xf32>, vector<64x32xf32>, vector<3x32xf32> -> vector<3x32xf32>
    %c0_173 = arith.constant 0 : index
    %c0_174 = arith.constant 0 : index
    %400 = vector.load %arg38[%c0_173, %c0_174] : memref<1x32xf32, #tpu.memory_space<vmem>>, vector<1x32xf32>
    %401 = vector.broadcast %400 : vector<1x32xf32> to vector<3x32xf32>
    %402 = arith.addf %399, %401 : vector<3x32xf32>
    %cst_175 = arith.constant 0.000000e+00 : f32
    %403 = vector.broadcast %cst_175 : f32 to vector<3x32xf32>
    %404 = arith.maximumf %402, %403 : vector<3x32xf32>
    %cst_176 = arith.constant 0.000000e+00 : f32
    %405 = vector.broadcast %cst_176 : f32 to vector<1x48xf32>
    %406 = vector.extract_strided_slice %404 {offsets = [0, 0], sizes = [1, 32], strides = [1, 1]} : vector<3x32xf32> to vector<1x32xf32>
    %c0_177 = arith.constant 0 : index
    %c0_178 = arith.constant 0 : index
    %407 = vector.load %arg39[%c0_177, %c0_178] : memref<96x48xf32, #tpu.memory_space<vmem>>, vector<32x48xf32>
    %cst_179 = arith.constant dense<0.000000e+00> : vector<1x48xf32>
    %408 = tpu.matmul %406, %407, %cst_179 {dimension_numbers = #tpu.dot_dimension_numbers<[1], [0], [0], [1], [0, 0, 1, 1], [], []>} : vector<1x32xf32>, vector<32x48xf32>, vector<1x48xf32> -> vector<1x48xf32>
    %409 = arith.addf %405, %408 : vector<1x48xf32>
    %410 = vector.extract_strided_slice %404 {offsets = [1, 0], sizes = [1, 32], strides = [1, 1]} : vector<3x32xf32> to vector<1x32xf32>
    %c32 = arith.constant 32 : index
    %c0_180 = arith.constant 0 : index
    %411 = vector.load %arg39[%c32, %c0_180] : memref<96x48xf32, #tpu.memory_space<vmem>>, vector<32x48xf32>
    %cst_181 = arith.constant dense<0.000000e+00> : vector<1x48xf32>
    %412 = tpu.matmul %410, %411, %cst_181 {dimension_numbers = #tpu.dot_dimension_numbers<[1], [0], [0], [1], [0, 0, 1, 1], [], []>} : vector<1x32xf32>, vector<32x48xf32>, vector<1x48xf32> -> vector<1x48xf32>
    %413 = arith.addf %409, %412 : vector<1x48xf32>
    %414 = vector.extract_strided_slice %404 {offsets = [2, 0], sizes = [1, 32], strides = [1, 1]} : vector<3x32xf32> to vector<1x32xf32>
    %c64 = arith.constant 64 : index
    %c0_182 = arith.constant 0 : index
    %415 = vector.load %arg39[%c64, %c0_182] : memref<96x48xf32, #tpu.memory_space<vmem>>, vector<32x48xf32>
    %cst_183 = arith.constant dense<0.000000e+00> : vector<1x48xf32>
    %416 = tpu.matmul %414, %415, %cst_183 {dimension_numbers = #tpu.dot_dimension_numbers<[1], [0], [0], [1], [0, 0, 1, 1], [], []>} : vector<1x32xf32>, vector<32x48xf32>, vector<1x48xf32> -> vector<1x48xf32>
    %417 = arith.addf %413, %416 : vector<1x48xf32>
    %c0_184 = arith.constant 0 : index
    %c0_185 = arith.constant 0 : index
    %418 = vector.load %arg40[%c0_184, %c0_185] : memref<1x48xf32, #tpu.memory_space<vmem>>, vector<1x48xf32>
    %419 = arith.addf %417, %418 : vector<1x48xf32>
    %cst_186 = arith.constant 0.000000e+00 : f32
    %420 = vector.broadcast %cst_186 : f32 to vector<1x48xf32>
    %421 = arith.maximumf %419, %420 : vector<1x48xf32>
    %c0_187 = arith.constant 0 : index
    %c0_188 = arith.constant 0 : index
    %422 = vector.load %arg41[%c0_187, %c0_188] : memref<48x6xf32, #tpu.memory_space<vmem>>, vector<48x6xf32>
    %cst_189 = arith.constant dense<0.000000e+00> : vector<1x6xf32>
    %423 = tpu.matmul %421, %422, %cst_189 {dimension_numbers = #tpu.dot_dimension_numbers<[1], [0], [0], [1], [0, 0, 1, 1], [], []>} : vector<1x48xf32>, vector<48x6xf32>, vector<1x6xf32> -> vector<1x6xf32>
    %c0_190 = arith.constant 0 : index
    %c0_191 = arith.constant 0 : index
    %424 = vector.load %arg42[%c0_190, %c0_191] : memref<1x6xf32, #tpu.memory_space<vmem>>, vector<1x6xf32>
    %425 = arith.addf %423, %424 : vector<1x6xf32>
    %c0_192 = arith.constant 0 : index
    %c0_193 = arith.constant 0 : index
    %c0_194 = arith.constant 0 : index
    %426 = vector.load %arg43[%c0_192, %c0_193, %c0_194] : memref<1x1x6xf32, #tpu.memory_space<vmem>>, vector<1x1x6xf32>
    %427 = vector.shape_cast %426 : vector<1x1x6xf32> to vector<1x6xf32>
    %428 = vector.shape_cast %425 : vector<1x6xf32> to vector<1x1x6xf32>
    tpu.vector_store %arg43[%c0_192, %c0_193, %c0_194], %428 {strides = array<i32>} : memref<1x1x6xf32, #tpu.memory_space<vmem>>, vector<1x1x6xf32>,
    return
  }
  func.func @transform_0(%arg0: i32) -> (i32, i32, i32) {
    %c0_i32 = arith.constant 0 : i32
    %c0_i32_0 = arith.constant 0 : i32
    %c0_i32_1 = arith.constant 0 : i32
    return %arg0, %c0_i32, %c0_i32_0 : i32, i32, i32
  }
  func.func @transform_1(%arg0: i32) -> (i32, i32, i32, i32) {
    %c0_i32 = arith.constant 0 : i32
    %c0_i32_0 = arith.constant 0 : i32
    %c0_i32_1 = arith.constant 0 : i32
    %c0_i32_2 = arith.constant 0 : i32
    return %arg0, %c0_i32, %c0_i32_0, %c0_i32_1 : i32, i32, i32, i32
  }
  func.func @transform_2(%arg0: i32) -> (i32, i32) {
    %c0_i32 = arith.constant 0 : i32
    %c0_i32_0 = arith.constant 0 : i32
    %c0_i32_1 = arith.constant 0 : i32
    return %c0_i32, %c0_i32_0 : i32, i32
  }
  func.func @transform_3(%arg0: i32) -> (i32, i32) {
    %c0_i32 = arith.constant 0 : i32
    %c0_i32_0 = arith.constant 0 : i32
    %c0_i32_1 = arith.constant 0 : i32
    return %c0_i32, %c0_i32_0 : i32, i32
  }
  func.func @transform_4(%arg0: i32) -> (i32, i32) {
    %c0_i32 = arith.constant 0 : i32
    %c0_i32_0 = arith.constant 0 : i32
    %c0_i32_1 = arith.constant 0 : i32
    return %c0_i32, %c0_i32_0 : i32, i32
  }
  func.func @transform_5(%arg0: i32) -> (i32, i32) {
    %c0_i32 = arith.constant 0 : i32
    %c0_i32_0 = arith.constant 0 : i32
    %c0_i32_1 = arith.constant 0 : i32
    return %c0_i32, %c0_i32_0 : i32, i32
  }
  func.func @transform_6(%arg0: i32) -> (i32, i32) {
    %c0_i32 = arith.constant 0 : i32
    %c0_i32_0 = arith.constant 0 : i32
    %c0_i32_1 = arith.constant 0 : i32
    return %c0_i32, %c0_i32_0 : i32, i32
  }
  func.func @transform_7(%arg0: i32) -> (i32, i32) {
    %c0_i32 = arith.constant 0 : i32
    %c0_i32_0 = arith.constant 0 : i32
    %c0_i32_1 = arith.constant 0 : i32
    return %c0_i32, %c0_i32_0 : i32, i32
  }
  func.func @transform_8(%arg0: i32) -> (i32, i32) {
    %c0_i32 = arith.constant 0 : i32
    %c0_i32_0 = arith.constant 0 : i32
    %c0_i32_1 = arith.constant 0 : i32
    return %c0_i32, %c0_i32_0 : i32, i32
  }
  func.func @transform_9(%arg0: i32) -> (i32, i32) {
    %c0_i32 = arith.constant 0 : i32
    %c0_i32_0 = arith.constant 0 : i32
    %c0_i32_1 = arith.constant 0 : i32
    return %c0_i32, %c0_i32_0 : i32, i32
  }
  func.func @transform_10(%arg0: i32) -> (i32, i32) {
    %c0_i32 = arith.constant 0 : i32
    %c0_i32_0 = arith.constant 0 : i32
    %c0_i32_1 = arith.constant 0 : i32
    return %c0_i32, %c0_i32_0 : i32, i32
  }
  func.func @transform_11(%arg0: i32) -> (i32, i32) {
    %c0_i32 = arith.constant 0 : i32
    %c0_i32_0 = arith.constant 0 : i32
    %c0_i32_1 = arith.constant 0 : i32
    return %c0_i32, %c0_i32_0 : i32, i32
  }
  func.func @transform_12(%arg0: i32) -> (i32, i32) {
    %c0_i32 = arith.constant 0 : i32
    %c0_i32_0 = arith.constant 0 : i32
    %c0_i32_1 = arith.constant 0 : i32
    return %c0_i32, %c0_i32_0 : i32, i32
  }
  func.func @transform_13(%arg0: i32) -> (i32, i32) {
    %c0_i32 = arith.constant 0 : i32
    %c0_i32_0 = arith.constant 0 : i32
    %c0_i32_1 = arith.constant 0 : i32
    return %c0_i32, %c0_i32_0 : i32, i32
  }
  func.func @transform_14(%arg0: i32) -> (i32, i32) {
    %c0_i32 = arith.constant 0 : i32
    %c0_i32_0 = arith.constant 0 : i32
    %c0_i32_1 = arith.constant 0 : i32
    return %c0_i32, %c0_i32_0 : i32, i32
  }
  func.func @transform_15(%arg0: i32) -> (i32, i32) {
    %c0_i32 = arith.constant 0 : i32
    %c0_i32_0 = arith.constant 0 : i32
    %c0_i32_1 = arith.constant 0 : i32
    return %c0_i32, %c0_i32_0 : i32, i32
  }
  func.func @transform_16(%arg0: i32) -> (i32, i32) {
    %c0_i32 = arith.constant 0 : i32
    %c0_i32_0 = arith.constant 0 : i32
    %c0_i32_1 = arith.constant 0 : i32
    return %c0_i32, %c0_i32_0 : i32, i32
  }
  func.func @transform_17(%arg0: i32) -> (i32, i32) {
    %c0_i32 = arith.constant 0 : i32
    %c0_i32_0 = arith.constant 0 : i32
    %c0_i32_1 = arith.constant 0 : i32
    return %c0_i32, %c0_i32_0 : i32, i32
  }
  func.func @transform_18(%arg0: i32) -> (i32, i32) {
    %c0_i32 = arith.constant 0 : i32
    %c0_i32_0 = arith.constant 0 : i32
    %c0_i32_1 = arith.constant 0 : i32
    return %c0_i32, %c0_i32_0 : i32, i32
  }
  func.func @transform_19(%arg0: i32) -> (i32, i32) {
    %c0_i32 = arith.constant 0 : i32
    %c0_i32_0 = arith.constant 0 : i32
    %c0_i32_1 = arith.constant 0 : i32
    return %c0_i32, %c0_i32_0 : i32, i32
  }
  func.func @transform_20(%arg0: i32) -> (i32, i32) {
    %c0_i32 = arith.constant 0 : i32
    %c0_i32_0 = arith.constant 0 : i32
    %c0_i32_1 = arith.constant 0 : i32
    return %c0_i32, %c0_i32_0 : i32, i32
  }
  func.func @transform_21(%arg0: i32) -> (i32, i32) {
    %c0_i32 = arith.constant 0 : i32
    %c0_i32_0 = arith.constant 0 : i32
    %c0_i32_1 = arith.constant 0 : i32
    return %c0_i32, %c0_i32_0 : i32, i32
  }
  func.func @transform_22(%arg0: i32) -> (i32, i32) {
    %c0_i32 = arith.constant 0 : i32
    %c0_i32_0 = arith.constant 0 : i32
    %c0_i32_1 = arith.constant 0 : i32
    return %c0_i32, %c0_i32_0 : i32, i32
  }
  func.func @transform_23(%arg0: i32) -> (i32, i32) {
    %c0_i32 = arith.constant 0 : i32
    %c0_i32_0 = arith.constant 0 : i32
    %c0_i32_1 = arith.constant 0 : i32
    return %c0_i32, %c0_i32_0 : i32, i32
  }
  func.func @transform_24(%arg0: i32) -> (i32, i32) {
    %c0_i32 = arith.constant 0 : i32
    %c0_i32_0 = arith.constant 0 : i32
    %c0_i32_1 = arith.constant 0 : i32
    return %c0_i32, %c0_i32_0 : i32, i32
  }
  func.func @transform_25(%arg0: i32) -> (i32, i32) {
    %c0_i32 = arith.constant 0 : i32
    %c0_i32_0 = arith.constant 0 : i32
    %c0_i32_1 = arith.constant 0 : i32
    return %c0_i32, %c0_i32_0 : i32, i32
  }
  func.func @transform_26(%arg0: i32) -> (i32, i32) {
    %c0_i32 = arith.constant 0 : i32
    %c0_i32_0 = arith.constant 0 : i32
    %c0_i32_1 = arith.constant 0 : i32
    return %c0_i32, %c0_i32_0 : i32, i32
  }
  func.func @transform_27(%arg0: i32) -> (i32, i32) {
    %c0_i32 = arith.constant 0 : i32
    %c0_i32_0 = arith.constant 0 : i32
    %c0_i32_1 = arith.constant 0 : i32
    return %c0_i32, %c0_i32_0 : i32, i32
  }
  func.func @transform_28(%arg0: i32) -> (i32, i32) {
    %c0_i32 = arith.constant 0 : i32
    %c0_i32_0 = arith.constant 0 : i32
    %c0_i32_1 = arith.constant 0 : i32
    return %c0_i32, %c0_i32_0 : i32, i32
  }
  func.func @transform_29(%arg0: i32) -> (i32, i32) {
    %c0_i32 = arith.constant 0 : i32
    %c0_i32_0 = arith.constant 0 : i32
    %c0_i32_1 = arith.constant 0 : i32
    return %c0_i32, %c0_i32_0 : i32, i32
  }
  func.func @transform_30(%arg0: i32) -> (i32, i32) {
    %c0_i32 = arith.constant 0 : i32
    %c0_i32_0 = arith.constant 0 : i32
    %c0_i32_1 = arith.constant 0 : i32
    return %c0_i32, %c0_i32_0 : i32, i32
  }
  func.func @transform_31(%arg0: i32) -> (i32, i32) {
    %c0_i32 = arith.constant 0 : i32
    %c0_i32_0 = arith.constant 0 : i32
    %c0_i32_1 = arith.constant 0 : i32
    return %c0_i32, %c0_i32_0 : i32, i32
  }
  func.func @transform_32(%arg0: i32) -> (i32, i32) {
    %c0_i32 = arith.constant 0 : i32
    %c0_i32_0 = arith.constant 0 : i32
    %c0_i32_1 = arith.constant 0 : i32
    return %c0_i32, %c0_i32_0 : i32, i32
  }
  func.func @transform_33(%arg0: i32) -> (i32, i32) {
    %c0_i32 = arith.constant 0 : i32
    %c0_i32_0 = arith.constant 0 : i32
    %c0_i32_1 = arith.constant 0 : i32
    return %c0_i32, %c0_i32_0 : i32, i32
  }
  func.func @transform_34(%arg0: i32) -> (i32, i32) {
    %c0_i32 = arith.constant 0 : i32
    %c0_i32_0 = arith.constant 0 : i32
    %c0_i32_1 = arith.constant 0 : i32
    return %c0_i32, %c0_i32_0 : i32, i32
  }
  func.func @transform_35(%arg0: i32) -> (i32, i32) {
    %c0_i32 = arith.constant 0 : i32
    %c0_i32_0 = arith.constant 0 : i32
    %c0_i32_1 = arith.constant 0 : i32
    return %c0_i32, %c0_i32_0 : i32, i32
  }
  func.func @transform_36(%arg0: i32) -> (i32, i32) {
    %c0_i32 = arith.constant 0 : i32
    %c0_i32_0 = arith.constant 0 : i32
    %c0_i32_1 = arith.constant 0 : i32
    return %c0_i32, %c0_i32_0 : i32, i32
  }
  func.func @transform_37(%arg0: i32) -> (i32, i32) {
    %c0_i32 = arith.constant 0 : i32
    %c0_i32_0 = arith.constant 0 : i32
    %c0_i32_1 = arith.constant 0 : i32
    return %c0_i32, %c0_i32_0 : i32, i32
  }
  func.func @transform_38(%arg0: i32) -> (i32, i32) {
    %c0_i32 = arith.constant 0 : i32
    %c0_i32_0 = arith.constant 0 : i32
    %c0_i32_1 = arith.constant 0 : i32
    return %c0_i32, %c0_i32_0 : i32, i32
  }
  func.func @transform_39(%arg0: i32) -> (i32, i32) {
    %c0_i32 = arith.constant 0 : i32
    %c0_i32_0 = arith.constant 0 : i32
    %c0_i32_1 = arith.constant 0 : i32
    return %c0_i32, %c0_i32_0 : i32, i32
  }
  func.func @transform_40(%arg0: i32) -> (i32, i32) {
    %c0_i32 = arith.constant 0 : i32
    %c0_i32_0 = arith.constant 0 : i32
    %c0_i32_1 = arith.constant 0 : i32
    return %c0_i32, %c0_i32_0 : i32, i32
  }
  func.func @transform_41(%arg0: i32) -> (i32, i32) {
    %c0_i32 = arith.constant 0 : i32
    %c0_i32_0 = arith.constant 0 : i32
    %c0_i32_1 = arith.constant 0 : i32
    return %c0_i32, %c0_i32_0 : i32, i32
  }
  func.func @transform_42(%arg0: i32) -> (i32, i32, i32) {
    %c0_i32 = arith.constant 0 : i32
    %c0_i32_0 = arith.constant 0 : i32
    %c0_i32_1 = arith.constant 0 : i32
    return %arg0, %c0_i32, %c0_i32_0 : i32, i32, i32
  }
}

</mosaic_0001>

<bundles_post_ra>
// kernel: tpu_custom_call.1
= control target key start
LH: loop header
LB: loop body
LE: loop exit
PB: predicated region body
PF: predicated region fallthrough
CT: control target
= control target key end

     0   :  { %s9858_s6 = smov 1   ;;  %s9859_s10 = smov 2   ;;  %s11184_s0 = inlined_call_operand.smem [shape: u32[43], index: -1, kind: input, shape index: {}] }
   0x1   :  { %s9931_s5 = sld [smem:[%s11184_s0]]   ;;  %s9860_s14 = smov 3  }
   0x2   :  { %s9936_s9 = sld [smem:[%s11184_s0 + %s9858_s6]]   ;;  %s9861_s18 = smov 4  }
   0x3   :  { %s9941_s13 = sld [smem:[%s11184_s0 + %s9859_s10]]   ;;  %s9862_s22 = smov 5  }
   0x4   :  { %s9946_s17 = sld [smem:[%s11184_s0 + %s9860_s14]]   ;;  %s9863_s26 = smov 6  }
   0x5   :  { %s9951_s21 = sld [smem:[%s11184_s0 + %s9861_s18]]   ;;  %s9864_s30 = smov 7  }
   0x6   :  { %s9956_s25 = sld [smem:[%s11184_s0 + %s9862_s22]]   ;;  %s9865_s4 = smov 8  }
   0x7   :  { %11211 = sst [smem:[#allocation21_spill]] %s9931_s5  ;;  %s9866_s10 = smov 9  }
   0x8   :  { %s9961_s29 = sld [smem:[%s11184_s0 + %s9863_s26]]   ;;  %s9867_s15 = smov 10  }
   0x9   :  { %s9966_s3 = sld [smem:[%s11184_s0 + %s9864_s30]]   ;;  %s9868_s20 = smov 11  }
   0xa   :  { %11212 = sst [smem:[#allocation22_spill]] %s9946_s17  ;;  %s9869_s26 = smov 12  }
   0xb   :  { %s9971_s8 = sld [smem:[%s11184_s0 + %s9865_s4]]   ;;  %s9870_s1 = smov 13  }
   0xc   :  { %11213 = sst [smem:[#allocation23_spill]] %s9956_s25  ;;  %s9871_s7 = smov 14  }
   0xd   :  { %s9976_s14 = sld [smem:[%s11184_s0 + %s9866_s10]]   ;;  %s9873_s22 = smov 16  }
   0xe   :  { %s9981_s19 = sld [smem:[%s11184_s0 + %s9867_s15]]   ;;  %s9872_s15 = smov 15  }
   0xf   :  { %11214 = sst [smem:[#allocation24_spill]] %s9966_s3  ;;  %s9874_s28 = smov 17  }
  0x10   :  { %s9986_s24 = sld [smem:[%s11184_s0 + %s9868_s20]]  }
  0x11   :  { %11215 = sst [smem:[#allocation25_spill]] %s9971_s8 }
  0x12   :  { %s9991_s30 = sld [smem:[%s11184_s0 + %s9869_s26]]  }
  0x13   :  { %11216 = sst [smem:[#allocation26_spill]] %s9976_s14 }
  0x14   :  { %s9996_s6 = sld [smem:[%s11184_s0 + %s9870_s1]]  }
  0x15   :  { %s10001_s12 = sld [smem:[%s11184_s0 + %s9871_s7]]   ;;  %s9875_s7 = smov 18  }
  0x16   :  { %11217 = sst [smem:[#allocation27_spill]] %s9986_s24 }
  0x17   :  { %s10006_s20 = sld [smem:[%s11184_s0 + %s9872_s15]]   ;;  %s9876_s15 = smov 19  }
  0x18   :  { %s10011_s27 = sld [smem:[%s11184_s0 + %s9873_s22]]   ;;  %s9877_s22 = smov 20  }
  0x19   :  { %s10016_s4 = sld [smem:[%s11184_s0 + %s9874_s28]]   ;;  %s9878_s28 = smov 21  }
  0x1a   :  { %11218 = sst [smem:[#allocation28_spill]] %s9996_s6 }
  0x1b   :  { %11219 = sst [smem:[#allocation29_spill]] %s10001_s12 }
  0x1c   :  { %s10021_s12 = sld [smem:[%s11184_s0 + %s9875_s7]]   ;;  %s9879_s7 = smov 22  }
  0x1d   :  { %11220 = sst [smem:[#allocation30_spill]] %s10006_s20 }
  0x1e   :  { %11221 = sst [smem:[#allocation31_spill]] %s10011_s27 }
  0x1f   :  { %11222 = sst [smem:[#allocation32_spill]] %s10016_s4 }
  0x20   :  { %s10026_s20 = sld [smem:[%s11184_s0 + %s9876_s15]]   ;;  %s9880_s15 = smov 23  }
  0x21   :  { %s10031_s27 = sld [smem:[%s11184_s0 + %s9877_s22]]   ;;  %s9881_s22 = smov 24  }
  0x22   :  { %11223 = sst [smem:[#allocation33_spill]] %s10021_s12 }
  0x23   :  { %s10036_s4 = sld [smem:[%s11184_s0 + %s9878_s28]]   ;;  %s9882_s28 = smov 25  }
  0x24   :  { %s10041_s12 = sld [smem:[%s11184_s0 + %s9879_s7]]   ;;  %s9883_s7 = smov 26  }
  0x26   :  { %11224 = sst [smem:[#allocation34_spill]] %s10026_s20 }
  0x27   :  { %11225 = sst [smem:[#allocation35_spill]] %s10031_s27 }
  0x28   :  { %s10046_s20 = sld [smem:[%s11184_s0 + %s9880_s15]]   ;;  %s9884_s15 = smov 27  }
  0x29   :  { %11226 = sst [smem:[#allocation36_spill]] %s10036_s4 }
  0x2a   :  { %11227 = sst [smem:[#allocation37_spill]] %s10041_s12 }
  0x2b   :  { %s10051_s27 = sld [smem:[%s11184_s0 + %s9881_s22]]   ;;  %s9885_s22 = smov 28  }
  0x2c   :  { %s10056_s4 = sld [smem:[%s11184_s0 + %s9882_s28]]   ;;  %s9886_s28 = smov 29  }
  0x2d   :  { %s10061_s12 = sld [smem:[%s11184_s0 + %s9883_s7]]   ;;  %s9887_s7 = smov 30  }
  0x2e   :  { %11228 = sst [smem:[#allocation38_spill]] %s10046_s20 }
  0x2f   :  { %s10066_s20 = sld [smem:[%s11184_s0 + %s9884_s15]]   ;;  %s9888_s15 = smov 31  }
  0x31   :  { %11229 = sst [smem:[#allocation39_spill]] %s10051_s27 }
  0x32   :  { %11230 = sst [smem:[#allocation40_spill]] %s10056_s4 }
  0x33   :  { %11231 = sst [smem:[#allocation41_spill]] %s10061_s12 }
  0x34   :  { %s10071_s27 = sld [smem:[%s11184_s0 + %s9885_s22]]   ;;  %s9889_s22 = smov 32  }
  0x35   :  { %11232 = sst [smem:[#allocation42_spill]] %s10066_s20 }
  0x36   :  { %s10076_s4 = sld [smem:[%s11184_s0 + %s9886_s28]]   ;;  %s9890_s28 = smov 33  }
  0x37   :  { %s10081_s12 = sld [smem:[%s11184_s0 + %s9887_s7]]   ;;  %s9891_s7 = smov 34  }
  0x38   :  { %s10086_s20 = sld [smem:[%s11184_s0 + %s9888_s15]]   ;;  %s9892_s15 = smov 35  }
  0x3a   :  { %11233 = sst [smem:[#allocation43_spill]] %s10071_s27 }
  0x3b   :  { %s10091_s27 = sld [smem:[%s11184_s0 + %s9889_s22]]   ;;  %s9893_s22 = smov 36  }
  0x3c   :  { %11234 = sst [smem:[#allocation44_spill]] %s10076_s4 }
  0x3d   :  { %11235 = sst [smem:[#allocation45_spill]] %s10081_s12 }
  0x3e   :  { %11236 = sst [smem:[#allocation46_spill]] %s10086_s20 }
  0x3f   :  { %s10096_s4 = sld [smem:[%s11184_s0 + %s9890_s28]]   ;;  %s9894_s28 = smov 37  }
  0x40   :  { %s10101_s12 = sld [smem:[%s11184_s0 + %s9891_s7]]   ;;  %s9895_s7 = smov 38  }
  0x41   :  { %11237 = sst [smem:[#allocation47_spill]] %s10091_s27 }
  0x42   :  { %s10106_s20 = sld [smem:[%s11184_s0 + %s9892_s15]]   ;;  %s9896_s15 = smov 39  }
  0x43   :  { %s10111_s27 = sld [smem:[%s11184_s0 + %s9893_s22]]   ;;  %s9897_s22 = smov 40  }
  0x45   :  { %11238 = sst [smem:[#allocation48_spill]] %s10096_s4 }
  0x46   :  { %11239 = sst [smem:[#allocation49_spill]] %s10101_s12 }
  0x47   :  { %s10116_s4 = sld [smem:[%s11184_s0 + %s9894_s28]]   ;;  %s9898_s28 = smov 41  }
  0x48   :  { %11240 = sst [smem:[#allocation50_spill]] %s10106_s20 }
  0x49   :  { %11241 = sst [smem:[#allocation51_spill]] %s10111_s27 }
  0x4a   :  { %s10121_s12 = sld [smem:[%s11184_s0 + %s9895_s7]]   ;;  %s9899_s7 = smov 42  }
  0x4b   :  { %s10126_s20 = sld [smem:[%s11184_s0 + %s9896_s15]]  }
  0x4c   :  { %s10131_s27 = sld [smem:[%s11184_s0 + %s9897_s22]]  }
  0x4d   :  { %11242 = sst [smem:[#allocation52_spill]] %s10116_s4 }
  0x4e   :  { %s10136_s4 = sld [smem:[%s11184_s0 + %s9898_s28]]  }
  0x50   :  { %11243 = sst [smem:[#allocation53_spill]] %s10121_s12 }
  0x51   :  { %11244 = sst [smem:[#allocation54_spill]] %s10126_s20 }
  0x52   :  { %s10141_s12 = sld [smem:[%s11184_s0 + %s9899_s7]]  }
  0x54   :  { %11245 = sst [smem:[#allocation55_spill]] %s10136_s4 }
  0x58   :  { %11246 = sst [smem:[#allocation56_spill]] %s10141_s12 }
  0x59   :  { %90 = vsyncpa [#allocation3], 0 }
  0x5a   :  { %92 = vsyncpa [#allocation3 + $0x1], 0 }
  0x5b   :  { %93 = vsyncpa [#allocation6], 0 }
  0x5c   :  { %95 = vsyncpa [#allocation6 + $0x1], 0 }
  0x5d   :  { %96 = vsyncpa [#allocation9], 0 }
  0x5e   :  { %97 = vsyncpa [#allocation12], 0 }
  0x5f   :  { %98 = vsyncpa [#allocation4], 0 }
  0x60   :  { %100 = vsyncpa [#allocation4 + $0x1], 0  ;;  %s10143_s15 = smov 0   ;;  %s10145_s16 = smov 0  }
  0x61   :  { %s10147_s18 = smov 0   ;;  %s10149_s22 = smov 0  }
  0x62 LB: > { %s11247_s8 = sld [smem:[#allocation25_spill]]  ;;  %s9900_s0 = smov [#allocation7]   ;;  %s9848_s16 = sphi %s10145_s16, %s11314_s16   ;;  %s9844_s15 = sphi %s10143_s15, %s11313_s15   ;;  %s9856_s22 = sphi %s10149_s22, %s11315_s22   ;;  %s9852_s18 = sphi %s10147_s18, %s11312_s18  }
  0x63   : > { %s11248_s5 = sld [smem:[#allocation21_spill]]  ;;  %s1045_s23 = sshll.u32 %s9900_s0, 4  ;;  %s1046_s23 = int_to_ptr.vmem [resolvable:$true] %s1045_s23 }
  0x64   : > { %11249 = sst [smem:[#allocation57_spill]] %s9852_s18  ;;  %s10164_s26 = sadd.s32 4294967295, %s9856_s22  }
  0x65   : > { %p8384_p0 = scmp.ge.s32.totalorder %s9856_s22, 1  ;;  %p11195_p1 = scmp.eq.s32.totalorder %s10164_s26, 0 }
  0x66   : > { %p1029_p2 = scmp.lt.s32.totalorder %s9856_s22, 3  ;;  %s9901_s1 = smov [#allocation8]  }
  0x67   : > { %s1059_s2 = sshll.u32 %s9901_s1, 4  ;;  %s9902_s7 = smov [#allocation11]   ;;  %s10176_s2 = int_to_ptr.vmem [resolvable:$true] %s1059_s2 }
  0x68   : > { %p10169_p3 = pnand %p8384_p0, %p1029_p2  ;;  %s1087_s10 = sshll.u32 %s9902_s7, 4  ;;  %s10184_s10 = int_to_ptr.vmem [resolvable:$true] %s1087_s10 }
  0x69   : > { %s9903_s0 = smov [#allocation10]   ;;  %s9601_s1 = scalar_lea.vmem %s1046_s23, 16 }
  0x6a   : > { %s11250_s28 = scalar_select %p10169_p3, 1, 0 }
  0x6b   : > { %p9328_p5 = pneg %p10169_p3  ;;  %s10186_s12 = sshll.u32 %s9903_s0, 4  ;;  %s1074_s12 = int_to_ptr.vmem [resolvable:$true] %s10186_s12 }
  0x6c   : > { %p9602_p8 = scmp.ne.s32.totalorder %s1046_s23, %s9601_s1  ;;  %s9608_s7 = scalar_lea.vmem %s1046_s23, 32 }
  0x6d   : > { %p10180_p6 = pnand %p9328_p5, %p11195_p1  ;;  %p9609_p11 = scmp.lt.s32.totalorder %s1046_s23, %s1046_s23 }
  0x6e   : > { %p9610_p12 = scmp.lt.s32.totalorder %s9608_s7, %s9601_s1 }
  0x6f   : > { %p10190_p7 = pneg %p10180_p6 }
  0x70   : > { %p9611_p13 = por %p9610_p12, %p9609_p11 }
  0x71   : > { %p9604_p9 = pnand %p9602_p8, %p10190_p7 }
  0x73   : > { %p9605_p10 = pneg %p9604_p9 }
  0x75   : > { %p9612_p0 = pnand %p9611_p13, %p9605_p10 }
  0x77   : > { %9615 = shalt.err (!%p9612_p0)
}
  0x78   : > { %s11253_s17 = sld [smem:[#allocation22_spill]]  ;;  %s9627_s0 = scalar_lea.vmem %s10176_s2, 16 }
  0x79   : > { %p9628_p2 = scmp.ne.s32.totalorder %s10176_s2, %s9627_s0  ;;  %s9634_s20 = scalar_lea.vmem %s10176_s2, 32 }
  0x7a   : > { %p9635_p9 = scmp.lt.s32.totalorder %s10176_s2, %s10176_s2  ;;  %p9636_p11 = scmp.lt.s32.totalorder %s9634_s20, %s9627_s0 }
  0x7b   : > { %p9630_p5 = pnand %p9628_p2, %p10190_p7 }
  0x7c   : > { %p9637_p10 = por %p9636_p11, %p9635_p9 }
  0x7d   : > { %p9631_p8 = pneg %p9630_p5 }
  0x7e   : > { %9331 = dma.hbm_to_vmem [thread:$0]  (!%p10180_p6), %s11253_s17, 16, %s1046_s23, [#allocation6]  }
  0x7f   : > { %p9638_p12 = pnand %p9637_p10, %p9631_p8 }
  0x81   : > { %9641 = shalt.err (!%p9638_p12)
}
  0x82   : > { %s11254_s25 = sld [smem:[#allocation23_spill]]  ;;  %s9653_s23 = scalar_lea.vmem %s10184_s10, 16 }
  0x83   : > { %p9654_p13 = scmp.ne.s32.totalorder %s10184_s10, %s9653_s23  ;;  %s9660_s1 = scalar_lea.vmem %s10184_s10, 32 }
  0x84   : > { %p9661_p5 = scmp.lt.s32.totalorder %s10184_s10, %s10184_s10  ;;  %p9662_p8 = scmp.lt.s32.totalorder %s9660_s1, %s9653_s23 }
  0x85   : > { %p9656_p0 = pnand %p9654_p13, %p10190_p7 }
  0x86   : > { %p9663_p9 = por %p9662_p8, %p9661_p5 }
  0x87   : > { %p9657_p2 = pneg %p9656_p0 }
  0x88   : > { %9334 = dma.hbm_to_vmem [thread:$0]  (!%p10180_p6), %s11254_s25, 16, %s10176_s2, [#allocation9]  }
  0x89   : > { %p9664_p11 = pnand %p9663_p9, %p9657_p2 }
  0x8b   : > { %9667 = shalt.err (!%p9664_p11)
}
  0x8c   : > { %s11255_s14 = sld [smem:[#allocation26_spill]]  ;;  %s9904_s20 = smov [#allocation13]  }
  0x8d   : > { %s1101_s2 = sshll.u32 %s9904_s20, 4  ;;  %s9679_s7 = scalar_lea.vmem %s1074_s12, 16  ;;  %s1102_s2 = int_to_ptr.vmem [resolvable:$true] %s1101_s2 }
  0x8e   : > { %p9680_p10 = scmp.ne.s32.totalorder %s1074_s12, %s9679_s7  ;;  %s9686_s0 = scalar_lea.vmem %s1074_s12, 32 }
  0x8f   : > { %p9687_p0 = scmp.lt.s32.totalorder %s1074_s12, %s1074_s12  ;;  %p9688_p5 = scmp.lt.s32.totalorder %s9686_s0, %s9679_s7 }
  0x90   : > { %p9682_p12 = pnand %p9680_p10, %p10190_p7 }
  0x91   : > { %p9689_p2 = por %p9688_p5, %p9687_p0 }
  0x92   : > { %9340 = dma.hbm_to_vmem [thread:$0]  (!%p10180_p6), %s11255_s14, 16, %s10184_s10, [#allocation12]  }
  0x93   : > { %p9683_p13 = pneg %p9682_p12 }
  0x95   : > { %p9690_p8 = pnand %p9689_p2, %p9683_p13 }
  0x97   : > { %9693 = shalt.err (!%p9690_p8)
}
  0x98   : > { %s11256_s3 = sld [smem:[#allocation24_spill]]  ;;  %s9705_s10 = scalar_lea.vmem %s1102_s2, 16 }
  0x99   : > { %p9706_p9 = scmp.ne.s32.totalorder %s1102_s2, %s9705_s10  ;;  %s9712_s23 = scalar_lea.vmem %s1102_s2, 32 }
  0x9a   : > { %p9713_p10 = scmp.lt.s32.totalorder %s1102_s2, %s1102_s2  ;;  %p9714_p12 = scmp.lt.s32.totalorder %s9712_s23, %s9705_s10 }
  0x9b   : > { %p9708_p11 = pnand %p9706_p9, %p10190_p7 }
  0x9c   : > { %p9715_p1 = por %p9714_p12, %p9713_p10 }
  0x9d   : > { %p9709_p4 = pneg %p9708_p11 }
  0x9e   : > { %9337 = dma.hbm_to_vmem [thread:$0]  (!%p10180_p6), %s11256_s3, 16, %s1074_s12, [#allocation9]  }
  0x9f   : > { %p9716_p3 = pnand %p9715_p1, %p9709_p4 }
  0xa1   : > { %9719 = shalt.err (!%p9716_p3)
}
  0xa2   : > { %s11257_s24 = sld [smem:[#allocation27_spill]]  ;;  %s8383_s12 = sadd.s32 4294967294, %s9856_s22  }
  0xa3   : > { %s10234_s4 = sadd.s32 1, %s9856_s22   ;;  %s113_s11 = sadd.s32 1, %s9852_s18 }
  0xa4   : > { %s110_s1 = ssub.s32 %s9856_s22, %s10234_s4  ;;  %p120_p1 = scmp.ne.s32.totalorder %s9852_s18, %s9848_s16 }
  0xa5   : > { %p111_p3 = scmp.eq.s32.totalorder %s110_s1, 0  ;;  %p121_p4 = scmp.eq.s32.totalorder %s9856_s22, 0 }
  0xa6   : > { %p126_p7 = scmp.ne.s32.totalorder %s9848_s16, %s9844_s15  ;;  %p1016_p13 = scmp.eq.s32.totalorder %s10164_s26, 1 }
  0xa7   : > { %s10246_s20 = scalar_select %p111_p3, %s9852_s18, %s113_s11  }
  0xa8   : > { %9343 = dma.hbm_to_vmem [thread:$0]  (!%p10180_p6), %s11257_s24, 16, %s1102_s2, [#allocation12]  }
  0xa9   : > { %11258 = sst [smem:[#allocation58_spill]] %s10246_s20  ;;  %p122_p0 = por %p121_p4, %p120_p1 }
  0xaa   : > { %p11259_p5 = scmp.eq.s32.totalorder %s10164_s26, 0  ;;  %p10254_p2 = por %p1016_p13, %p120_p1 }
  0xab   : > { %p1022_p8 = scmp.eq.s32.totalorder %s8383_s12, 1  ;;  %p9360_p9 = scmp.lt.s32.totalorder %s9856_s22, 2 }
  0xac   : > { %p10250_p6 = por %p11259_p5, %p126_p7  ;;  %s10260_s0 = sand.u32 1, %s9852_s18  }
  0xad   : > { %s11261_s7 = scalar_select %p10254_p2, 1, 0 }
  0xae   : > { %p10262_p11 = por %p1022_p8, %p126_p7  ;;  %s8391_s23 = sshll.u32 %s10260_s0, 3 }
  0xaf   : > { %s8392_s11 = sshll.u32 %s9856_s22, 7  ;;  %s1206_s12 = scalar_lea.vmem [#allocation2], %s8391_s23 }
  0xb0   : > { %s11262_s10 = scalar_select %p10262_p11, 1, 0 }
  0xb1   : > { %s10269_s1 = scalar_lea.hbm %s11248_s5, %s8392_s11  ;;  %s1213_s3 = sshll.u32 %s1206_s12, 4  ;;  %s10275_s3 = int_to_ptr.vmem [resolvable:$true] %s1213_s3 }
  0xb2   : > { %p10271_p10 = pnand %p9360_p9, %p122_p0  ;;  %s1203_s25 = scalar_lea.sflag [#allocation3], %s10260_s0 }
  0xb3   : > { %s9720_s20 = scalar_lea.hbm %s10269_s1, 128  ;;  %s9725_s23 = scalar_lea.hbm %s11248_s5, 256 }
  0xb4   : > { %p9721_p12 = scmp.ne.s32.totalorder %s10269_s1, %s9720_s20  ;;  %p9722_p1 = pneg %p10271_p10 }
  0xb5   : > { %p9726_p7 = scmp.lt.s32.totalorder %s10269_s1, %s11248_s5  ;;  %p9727_p13 = scmp.lt.s32.totalorder %s9725_s23, %s9720_s20 }
  0xb6   : > { %p9723_p3 = pnand %p9722_p1, %p9721_p12 }
  0xb7   : > { %p9728_p0 = por %p9727_p13, %p9726_p7 }
  0xb8   : > { %p9724_p4 = pneg %p9723_p3 }
  0xba   : > { %p9729_p5 = pnand %p9728_p0, %p9724_p4 }
  0xbc   : > { %9732 = shalt.err (!%p9729_p5)
}
  0xbd   : > { %s9733_s11 = scalar_lea.vmem %s10275_s3, 128  ;;  %s9905_s12 = smov [#allocation2]  }
  0xbe   : > { %p9734_p8 = scmp.ne.s32.totalorder %s10275_s3, %s9733_s11  ;;  %s9738_s24 = sshll.u32 %s9905_s12, 4  ;;  %s9739_s24 = int_to_ptr.vmem [resolvable:$false] %s9738_s24 }
  0xbf   : > { %s9740_s17 = scalar_lea.vmem %s9739_s24, 256  ;;  %p9741_p12 = scmp.lt.s32.totalorder %s10275_s3, %s9739_s24 }
  0xc0   : > { %p9736_p9 = pnand %p9734_p8, %p9722_p1  ;;  %p9742_p3 = scmp.lt.s32.totalorder %s9740_s17, %s9733_s11 }
  0xc2   : > { %p9737_p11 = pneg %p9736_p9  ;;  %p9743_p2 = por %p9742_p3, %p9741_p12 }
  0xc4   : > { %p9744_p7 = pnand %p9743_p2, %p9737_p11 }
  0xc6   : > { %9747 = shalt.err (!%p9744_p7)
}
  0xc7   : > { %9347 = dma.hbm_to_vmem [thread:$0]  (!%p10271_p10), %s10269_s1, 128, %s10275_s3, %s1203_s25  }
  0xc8   : > { %s11264_s20 = smul.u32 12, %s10260_s0  ;;  %s11265_s11 = sand.u32 1, %s9856_s22  }
  0xc9   : > { %s9300_s24 = smul.u32 192, %s9856_s22  ;;  %s10310_s5 = scalar_lea.sflag [#allocation6], %s11265_s11 }
  0xca   : > { %s1224_s23 = scalar_lea.vmem [#allocation5], %s11264_s20  ;;  %s9753_s25 = scalar_lea.hbm %s9936_s9, 384 }
  0xcb   : > { %s1231_s12 = sshll.u32 %s1224_s23, 4  ;;  %s10306_s17 = scalar_lea.hbm %s9936_s9, %s9300_s24  ;;  %s10303_s12 = int_to_ptr.vmem [resolvable:$true] %s1231_s12 }
  0xcc   : > { %s9748_s18 = scalar_lea.hbm %s10306_s17, 192  ;;  %p9754_p13 = scmp.lt.s32.totalorder %s10306_s17, %s9936_s9 }
  0xcd   : > { %p9749_p2 = scmp.ne.s32.totalorder %s10306_s17, %s9748_s18  ;;  %p9755_p0 = scmp.lt.s32.totalorder %s9753_s25, %s9748_s18 }
  0xcf   : > { %p9751_p11 = pnand %p9749_p2, %p9722_p1  ;;  %p9756_p5 = por %p9755_p0, %p9754_p13 }
  0xd1   : > { %p9752_p4 = pneg %p9751_p11 }
  0xd3   : > { %p9757_p8 = pnand %p9756_p5, %p9752_p4 }
  0xd5   : > { %9760 = shalt.err (!%p9757_p8)
}
  0xd6   : > { %s9761_s3 = scalar_lea.vmem %s10303_s12, 192  ;;  %s9906_s0 = smov [#allocation5]  }
  0xd7   : > { %p9762_p9 = scmp.ne.s32.totalorder %s10303_s12, %s9761_s3  ;;  %s9766_s1 = sshll.u32 %s9906_s0, 4  ;;  %s9767_s1 = int_to_ptr.vmem [resolvable:$false] %s9766_s1 }
  0xd8   : > { %s9768_s20 = scalar_lea.vmem %s9767_s1, 384  ;;  %p9769_p7 = scmp.lt.s32.totalorder %s10303_s12, %s9767_s1 }
  0xd9   : > { %p9764_p12 = pnand %p9762_p9, %p9722_p1  ;;  %p9770_p2 = scmp.lt.s32.totalorder %s9768_s20, %s9761_s3 }
  0xdb   : > { %p9765_p3 = pneg %p9764_p12  ;;  %p9771_p11 = por %p9770_p2, %p9769_p7 }
  0xdd   : > { %p9772_p13 = pnand %p9771_p11, %p9765_p3 }
  0xdf   : > { %9775 = shalt.err (!%p9772_p13)
}
  0xe0   : > { %s9907_s18 = smov 64   ;;  %s9908_s23 = smov 4  }
  0xe1   : > { %9350 = dma.hbm_to_vmem [thread:$0]  (!%p10271_p10), %s10306_s17, 192, %s10303_s12, %s10310_s5, %s9907_s18, %s9907_s18, %s9908_s23  }
  0xe2   : > { %p11266_p1 = scmp.ne.s32.totalorder %s11250_s28, 0 }
  0xe3   : > { %s10334_s24 = sand.u32 (!%p11266_p1), 1, %s9848_s16  }
  0xe4   : > { %1243 = sbr.rel (%p11266_p1) target bundleno = 12135 (0x2f67), region = 188  ;;  %s8395_s11 = sshll.u32 (!%p11266_p1), %s10334_s24, 3 }
  0xe5   : > { %s1246_s25 = scalar_lea.sflag (!%p11266_p1), [#allocation3], %s10334_s24  ;;  %s10338_s3 = scalar_lea.vmem (!%p11266_p1), [#allocation2], %s8395_s11 }
  0xe9   : > { %9819 = dma.done.wait (%p10250_p6), %s1246_s25, 128  }
  0xea   : > { %9821 = vsyncadd (%p10250_p6), %s1246_s25, 4294967168  ;;  %s1254_s5 = sand.u32 1, %s10164_s26   ;;  %s9301_s14 = smul.u32 12, %s10334_s24 }
  0xeb   : > { %s1255_s28 = scalar_lea.sflag [#allocation6], %s1254_s5 }
  0xec   : > { %s10346_s12 = scalar_lea.vmem [#allocation5], %s9301_s14 }
  0xed   : > { %9823 = dma.done.wait (%p10250_p6), %s1255_s28, 192  }
  0xee   : > { %9825 = vsyncadd (%p10250_p6), %s1255_s28, 4294967104  ;;  %p11267_p10 = scmp.eq.s32.totalorder %s10164_s26, 0 }
  0xf0   : > { %9827 = dma.done.wait (%p11267_p10), [#allocation6], 16   ;;  %p11268_p4 = pmov %p11267_p10 }
  0xf2   : > { %9829 = vsyncadd (%p11268_p4), [#allocation6], 4294967280  ;;  %p11269_p0 = pmov %p11268_p4 }
  0xf4   : > { %9831 = dma.done.wait (%p11269_p0), [#allocation9], 32   ;;  %p11270_p5 = pmov %p11269_p0 }
  0xf5   : > { %p11271_p8 = pmov %p11269_p0 }
  0xf6   : > { %9833 = vsyncadd (%p11270_p5), [#allocation9], 4294967264 }
  0xf7   : > { %9835 = dma.done.wait (%p11271_p8), [#allocation12], 32   ;;  %p11272_p9 = pmov %p11269_p0 }
  0xf8   : > { %v9909_v0 = vmov 0.0   ;;  %vm9910_vm0 = vmmov 0   ;;  %v1387_v1 = vld [vmem:[%s9941_s13 + $0x18] sm:$0xff]  ;;  %v1386_v2 = vld [vmem:[%s9941_s13 + $0x10] sm:$0xff]  ;;  %v1385_v4 = vld [vmem:[%s9941_s13 + $0x8] sm:$0xff]  ;;  %vm1395_vm1 = vcmask 261120  }
  0xf9   : > { %9837 = vsyncadd (%p11272_p9), [#allocation12], 4294967264  ;;  %8795 = vmatprep.subr.mxu0 %v9909_v0  ;;  %8803 = vmatprep.mubr.msk.f32.mxu0 %vm9910_vm0, %v9909_v0  ;;  %v1473_v3 = vld [vmem:[%s9951_s21 + $0x18] sm:$0xff]  ;;  %v1384_v5 = vld [vmem:[%s9941_s13] sm:$0xff]  ;;  %vm1554_vm2 = vcmask 785920   ;;  %s9911_s2 = smov 64  }
  0xfa   : > { %8806 = vmatprep.subr.mxu1 %v9909_v0  ;;  %8814 = vmatprep.mubr.msk.f32.mxu1 %vm9910_vm0, %v9909_v0  ;;  %v1383_v6 = vld [vmem:[%s10338_s3] sm:$0xff]  ;;  %v1472_v7 = vld [vmem:[%s9951_s21 + $0x10] sm:$0xff]  ;;  %vm1642_vm3 = vcmask 57344   ;;  %s9912_s17 = smov 96   ;;  %vm1657_vm4 = vcmask 64512   ;;  %v1906_v56 = vld [vmem:[%s9961_s29 + $0x18] sm:$0xff] }
  0xfb   : > { %8796 = vmatpush3.msra.mxu0 %v1387_v1  ;;  %8807 = vmatpush3.msra.mxu1 %v1473_v3  ;;  %v1471_v8 = vld [vmem:[%s9951_s21 + $0x8] sm:$0xff]  ;;  %v1470_v9 = vld [vmem:[%s9951_s21] sm:$0xff]  ;;  %v1905_v57 = vld [vmem:[%s9961_s29 + $0x10] sm:$0xff]  ;;  %vm2423_vm5 = vcmask 27648   ;;  %s9913_s0 = smov 88   ;;  %s9914_s1 = smov 120  }
  0xfc   : > { %8797 = vmatprep.subr.mxu0 %v9909_v0  ;;  %8808 = vmatprep.subr.mxu1 %v9909_v0  ;;  %v8401_v10 = vld [vmem:[#allocation7] ss:$0 sm:$0xff]  ;;  %v8403_v15 = vld [vmem:[#allocation8] ss:$0 sm:$0xff]  ;;  %v2005_v58 = vld [vmem:[%s11247_s8 + $0x18] sm:$0xff]  ;;  %vm2463_vm6 = vcmask 1043456  }
  0xfd   : > { %8798 = vmatpush3.msra.mxu0 %v1386_v2  ;;  %8809 = vmatpush3.msra.mxu1 %v1472_v7  ;;  %v9461_v59 = vld [vmem:[%s10346_s12] sm:$0xff]   ;;  %v1904_v60 = vld [vmem:[%s9961_s29 + $0x8] sm:$0xff]  ;;  %v1902_v1 = vld [vmem:[%s10346_s12 + $0x8] sm:$0xf]  ;;  %vm2459_vm7 = vcmask 31744   ;;  %s9915_s20 = smov 56  }
  0xfe   : > { %8799 = vmatprep.subr.mxu0 %v9909_v0  ;;  %8810 = vmatprep.subr.mxu1 %v9909_v0  ;;  %v2004_v61 = vld [vmem:[%s11247_s8 + $0x10] sm:$0xff]  ;;  %v1903_v62 = vld [vmem:[%s9961_s29] sm:$0xff]  ;;  %v2003_v63 = vld [vmem:[%s11247_s8 + $0x8] sm:$0xff]  ;;  %s9916_s18 = smov 80   ;;  %s9917_s23 = smov 112   ;;  %vm4553_vm8 = vcmask 257024  }
  0xff   : > { %8800 = vmatpush3.msra.mxu0 %v1385_v4  ;;  %8811 = vmatpush3.msra.mxu1 %v1471_v8  ;;  %v2002_v2 = vld [vmem:[%s11247_s8] sm:$0xff]  ;;  %v2092_v8 = vld [vmem:[%s9981_s19 + $0x18] sm:$0xff]  ;;  %s9918_s11 = smov 48   ;;  %s11204_s25 = smov 72   ;;  %vm4737_vm9 = vcmask 523264   ;;  %vm7708_vm10 = vcmask 1041409  }
 0x100   : > { %8801 = vmatprep.subr.mxu0 %v9909_v0  ;;  %8812 = vmatprep.subr.mxu1 %v9909_v0  ;;  %s11202_s3 = smov 104   ;;  %s11200_s5 = smov 40   ;;  %vm7710_vm11 = vcmask 1042434   ;;  %vm8116_vm12 = vcmask 392192   ;;  %vm8190_vm13 = vcmask 40960  }
 0x101   : > { %8802 = vmatpush3.msra.mxu0 %v1384_v5  ;;  %8813 = vmatpush3.msra.mxu1 %v1470_v9  ;;  %v2091_v9 = vld [vmem:[%s9981_s19 + $0x10] sm:$0xff]  ;;  %s11273_s6 = sld [smem:[#allocation28_spill]]  ;;  %p11308_p12 = scmp.ne.s32.totalorder %s11261_s7, 0 }
 0x102   : > { %8804 = vmatmul.mubr.msk.f32.vlgmr.msra.gmra.mxu0 %vm1395_vm1, %v1383_v6  ;;  %8817 = vmatprep.subr.mxu0 %v9909_v0  ;;  %s11274_s14 = sld [smem:[#allocation29_spill]] }
 0x103   : > { %8819 = vmatprep.mubr.msk.f32.mxu0 %vm9910_vm0, %v9909_v0  ;;  %8822 = vmatprep.subr.mxu1 %v9909_v0  ;;  %s11275_s28 = sld [smem:[#allocation31_spill]] }
 0x104   : > { %s11276_s12 = sld [smem:[#allocation33_spill]] }
 0x1c2   : > { %v1465_v11 = vpop.f32.mrf.mxu0 }
 0x1c3   : > { %v1466_v12 = vadd.f32 %v8401_v10, %v1465_v11  ;;  %v2090_v10 = vld [vmem:[%s9981_s19 + $0x8] sm:$0xff]  ;;  %v2089_v11 = vld [vmem:[%s9981_s19] sm:$0xff] }
 0x1c4   : > { %v8805_v13 = vpop.f32.mrf.mxu0 }
 0x1c5   : > { %v1469_v14 = vmax.f32 %v1466_v12, 0.0  ;;  %v2082_v12 = vlaneseq  ;;  %v8411_v13 = vld [vmem:[#allocation10] ss:$0 sm:$0xff] }
 0x1c7   : > { %8815 = vmatmul.mubr.msk.f32.vlgmr.msra.gmra.mxu1 %vm1395_vm1, %v1469_v14 }
 0x1c8   : > { %8824 = vmatprep.mubr.msk.f32.mxu1 %vm9910_vm0, %v9909_v0 }
 0x287   : > { %v1550_v16 = vpop.f32.mrf.mxu1 }
 0x288   : > { %v1551_v17 = vadd.f32 %v8403_v15, %v1550_v16  ;;  %v1918_v15 = vcombine.low %v8411_v13, %v8411_v13  ;;  %v2083_v16 = vshrl.u32 %v2082_v12, 7 }
 0x289   : > { %v8816_v18 = vpop.f32.mrf.mxu1 }
 0x28a   : > { %8818 = vmatpush3.xpose.msk.msra.mxu0 %vm1395_vm1, %v1551_v17  ;;  %v1555_v19 = vsel %vm1554_vm2, %v1551_v17, 0.0  ;;  %v2006_v18 = vld [vmem:[#allocation11] sm:$0x1] }
 0x28b   : > { %v1556_v20 = vrot.slane %v1555_v19, 4  ;;  %8827 = vmatprep.subr.mxu0 %v9909_v0 }
 0x28d   : > { %v1557_v21 = vadd.f32 %v1556_v20, %v1555_v19  ;;  %v2084_v20 = vsub.s32 0, %v2083_v16 }
 0x28f   : > { %v1558_v22 = vrot.slane %v1557_v21, 2 }
 0x291   : > { %v1559_v23 = vadd.f32 %v1558_v22, %v1557_v21 }
 0x293   : > { %v1560_v24 = vrot.slane %v1559_v23, 1 }
 0x295   : > { %v1561_v25 = vadd.f32 %v1560_v24, %v1559_v23 }
 0x297   : > { %v1563_v26 = vmul.f32 0.125, %v1561_v25 }
 0x299   : > { %1565 = vrot.lane.b32.xlu0 %v1563_v26, %s9911_s2 }
 0x30b   : > { %v1566_v27 = vpop.permute.xlu0 %1565 }
 0x30c   : > { %8820 = vmatmul.mubr.msk.f32.vlgmr.msra.gmra.mxu0 %vm1395_vm1, %v1566_v27 }
 0x30d   : > { %8828 = vmatpush3.xpose.msk.msra.mxu0 %vm1395_vm1, %v1551_v17  ;;  %8829 = vmatprep.mubr.msk.f32.mxu0 %vm9910_vm0, %v9909_v0 }
 0x30e   : > { %8837 = vmatprep.subr.mxu0 %v1906_v56 }
 0x3cc   : > { %v1638_v28 = vpop.f32.mrf.mxu0 }
 0x3cd   : > { %v1643_v29 = vsel %vm1642_vm3, %v1638_v28, -inf }
 0x3ce   : > { %1644 = vmax.xlane.f32.xlu0 %v1643_v29  ;;  %v8821_v30 = vpop.f32.mrf.mxu0 }
 0x457   : > { %v1645_v31 = vpop.xlane.xlu0 %1644 }
 0x458   : > { %v1646_v32 = vsub.f32 %v1638_v28, %v1645_v31  ;;  %v8415_v31 = vld [vmem:[#allocation13] ss:$0 sm:$0xff] }
 0x45a   : > { %v1647_v33 = vmul.f32 1.442695, %v1646_v32  ;;  %v2104_v32 = vcombine.low %v8415_v31, %v8415_v31 }
 0x45c   : > { %9462 = vpow2.f32 %v1647_v33 }
 0x469   : > { %v9463_v34 = vpop.eup %9462 }
 0x46a   : > { %v1649_v35 = vsel %vm1642_vm3, %v9463_v34, 0.0 }
 0x46b   : > { %1650 = vadd.xlane.f32.xlu1 %v1649_v35 }
 0x47c   : > { %1654 = vrot.lane.b32.xlu1 %v1551_v17, %s9912_s17 }
 0x4f4   : > { %v1651_v36 = vpop.xlane.xlu1 %1650 }
 0x4f5   : > { %9464 = vrcp.f32 %v1651_v36 }
 0x4f8   : > { %v1655_v37 = vpop.permute.xlu1 %1654 }
 0x4f9   : > { %8823 = vmatpush3.msra.mxu1 %v1655_v37 }
 0x4fa   : > { %8832 = vmatprep.subr.mxu1 %v9909_v0 }
 0x502   : > { %v9465_v38 = vpop.eup %9464 }
 0x503   : > { %v1653_v39 = vmul.f32 %v9465_v38, %v9463_v34 }
 0x505   : > { %8825 = vmatmul.mubr.msk.f32.vlgmr.msra.gmra.mxu1 %vm1657_vm4, %v1653_v39 }
 0x506   : > { %8833 = vmatpush3.msra.mxu1 %v1655_v37  ;;  %8834 = vmatprep.mubr.msk.f32.mxu1 %vm9910_vm0, %v9909_v0 }
 0x507   : > { %8848 = vmatprep.subr.mxu1 %v9909_v0 }
 0x5c5   : > { %v1727_v40 = vpop.f32.mrf.mxu1 }
 0x5c6   : > { %1732 = vrot.lane.b32.xlu1 %v1727_v40, %s9911_s2 }
 0x5c7   : > { %v8826_v41 = vpop.f32.mrf.mxu1 }
 0x638   : > { %v1733_v42 = vpop.permute.xlu1 %1732 }
 0x639   : > { %v1735_v43 = vadd.f32 %v1733_v42, %v1563_v26 }
 0x63b   : > { %1737 = vrot.lane.b32.xlu1 %v1735_v43, %s9911_s2 }
 0x6ad   : > { %v1738_v44 = vpop.permute.xlu1 %1737 }
 0x6ae   : > { %8830 = vmatmul.mubr.msk.f32.vlgmr.msra.gmra.mxu0 %vm1395_vm1, %v1738_v44 }
 0x6af   : > { %8838 = vmatpush3.msra.mxu0 %v1906_v56  ;;  %8845 = vmatprep.mubr.msk.f32.mxu0 %vm1395_vm1, %v9461_v59 }
 0x6b0   : > { %8839 = vmatprep.subr.mxu0 %v1905_v57 }
 0x6b1   : > { %8840 = vmatpush3.msra.mxu0 %v1905_v57 }
 0x6b2   : > { %8841 = vmatprep.subr.mxu0 %v1904_v60 }
 0x6b3   : > { %8842 = vmatpush3.msra.mxu0 %v1904_v60 }
 0x6b4   : > { %8843 = vmatprep.subr.mxu0 %v1903_v62 }
 0x6b5   : > { %8844 = vmatpush3.msra.mxu0 %v1903_v62 }
 0x6b6   : > { %8846 = vmatmul.mubr.msk.f32.vlgmr.msra.gmra.mxu0 %vm1395_vm1, %v1902_v1  ;;  %8859 = vmatprep.subr.mxu0 %v2092_v8 }
 0x6b7   : > { %8860 = vmatpush3.msra.mxu0 %v2092_v8 }
 0x6b8   : > { %8861 = vmatprep.subr.mxu0 %v2091_v9 }
 0x6b9   : > { %8862 = vmatpush3.msra.mxu0 %v2091_v9 }
 0x6ba   : > { %8863 = vmatprep.subr.mxu0 %v2090_v10 }
 0x6bb   : > { %8864 = vmatpush3.msra.mxu0 %v2090_v10 }
 0x6bc   : > { %8865 = vmatprep.subr.mxu0 %v2089_v11 }
 0x6bd   : > { %8866 = vmatpush3.msra.mxu0 %v2089_v11 }
 0x6be   : > { %8880 = vmatprep.subr.mxu0 %v9909_v0 }
 0x76e   : > { %v1807_v45 = vpop.f32.mrf.mxu0 }
 0x76f   : > { %v1811_v46 = vsel %vm1642_vm3, %v1807_v45, -inf }
 0x770   : > { %1812 = vmax.xlane.f32.xlu1 %v1811_v46  ;;  %v8831_v47 = vpop.f32.mrf.mxu0 }
 0x776   : > { %v8847_v14 = vpop.f32.mrf.mxu0 }
 0x777   : > { %v1996_v28 = vadd.f32 %v8847_v14, %v8411_v13 }
 0x778   : > { %v1990_v17 = vpop.f32.mrf.mxu0 }
 0x779   : > { %v1991_v19 = vadd.f32 %v1990_v17, %v1918_v15 }
 0x77b   : > { %v2000_v24 = vcombine.high %v1991_v19, %v1991_v19 }
 0x7f9   : > { %v1813_v48 = vpop.xlane.xlu1 %1812 }
 0x7fa   : > { %v1814_v49 = vsub.f32 %v1807_v45, %v1813_v48 }
 0x7fc   : > { %v1815_v50 = vmul.f32 1.442695, %v1814_v49 }
 0x7fe   : > { %9466 = vpow2.f32 %v1815_v50 }
 0x80b   : > { %v9467_v51 = vpop.eup %9466 }
 0x80c   : > { %v1817_v52 = vsel %vm1642_vm3, %v9467_v51, 0.0 }
 0x80d   : > { %1818 = vadd.xlane.f32.xlu0 %v1817_v52 }
 0x896   : > { %v1819_v53 = vpop.xlane.xlu0 %1818 }
 0x897   : > { %9468 = vrcp.f32 %v1819_v53 }
 0x8a4   : > { %v9469_v54 = vpop.eup %9468 }
 0x8a5   : > { %v1821_v55 = vmul.f32 %v9469_v54, %v9467_v51 }
 0x8a7   : > { %8835 = vmatmul.mubr.msk.f32.vlgmr.msra.gmra.mxu1 %vm1657_vm4, %v1821_v55 }
 0x8a8   : > { %8856 = vmatprep.mubr.msk.f32.mxu1 %vm9910_vm0, %v9909_v0  ;;  %8849 = vmatpush3.msra.mxu1 %v2005_v58 }
 0x8a9   : > { %8850 = vmatprep.subr.mxu1 %v9909_v0 }
 0x8aa   : > { %8851 = vmatpush3.msra.mxu1 %v2004_v61 }
 0x8ab   : > { %8852 = vmatprep.subr.mxu1 %v9909_v0 }
 0x8ac   : > { %8853 = vmatpush3.msra.mxu1 %v2003_v63 }
 0x8ad   : > { %8854 = vmatprep.subr.mxu1 %v9909_v0 }
 0x8ae   : > { %8855 = vmatpush3.msra.mxu1 %v2002_v2 }
 0x8af   : > { %8870 = vmatprep.subr.mxu1 %v9909_v0 }
 0x967   : > { %v1891_v3 = vpop.f32.mrf.mxu1 }
 0x968   : > { %1896 = vrot.lane.b32.xlu0 %v1891_v3, %s9911_s2 }
 0x969   : > { %v8836_v4 = vpop.f32.mrf.mxu1 }
 0x9da   : > { %v1897_v5 = vpop.permute.xlu0 %1896 }
 0x9db   : > { %v1899_v6 = vadd.f32 %v1897_v5, %v1735_v43 }
 0x9dd   : > { %2008 = vrot.lane.b32.xlu0 %v1899_v6, %s9911_s2 }
 0xa4f   : > { %v2009_v7 = vpop.permute.xlu0 %2008 }
 0xa50   : > { %8857 = vmatmul.mubr.msk.f32.vlgmr.msra.gmra.mxu1 %vm1395_vm1, %v2009_v7 }
 0xa51   : > { %8872 = vmatprep.mubr.msk.f32.mxu1 %vm9910_vm0, %v9909_v0 }
 0xb10   : > { %v2078_v21 = vpop.f32.mrf.mxu1 }
 0xb11   : > { %v2079_v22 = vadd.f32 %v2078_v21, %v2006_v18 }
 0xb12   : > { %v8858_v23 = vpop.f32.mrf.mxu1 }
 0xb13   : > { %v2085_v25 = vrot.slane %v2079_v22, %v2084_v20 }
 0xb15   : > { %v10442_v26 = vadd.f32 %v2085_v25, %v1991_v19  ;;  %v10444_v27 = vadd.f32 %v2085_v25, %v2000_v24  ;;  %v10448_v30 = vadd.f32 %v2085_v25, %v1996_v28 }
 0xb17   : > { %v2103_v29 = vcombine.low %v10442_v26, %v10444_v27 }
 0xb19   : > { %8867 = vmatprep.mubr.msk.f32.mxu0 %vm1395_vm1, %v2103_v29 }
 0xb1a   : > { %8868 = vmatmul.mubr.msk.f32.vlgmr.msra.gmra.mxu0 %vm1395_vm1, %v10448_v30 }
 0xb1b   : > { %8882 = vmatprep.mubr.msk.f32.mxu0 %vm9910_vm0, %v9909_v0 }
 0xbda   : > { %v8869_v33 = vpop.f32.mrf.mxu0 }
 0xbdb   : > { %v10463_v37 = vadd.f32 %v8869_v33, %v8415_v31 }
 0xbdc   : > { %v2176_v34 = vpop.f32.mrf.mxu0 }
 0xbdd   : > { %v10455_v35 = vadd.f32 %v2176_v34, %v2104_v32 }
 0xbdf   : > { %2192 = vrot.lane.b32.xlu0 %v10455_v35, %s9912_s17  ;;  %v10461_v36 = vcombine.high %v10455_v35, %v10455_v35 }
 0xbe1   : > { %2268 = vrot.lane.b32.xlu1 %v10461_v36, %s9912_s17 }
 0xbe3   : > { %2344 = vrot.lane.b32.xlu0 %v10463_v37, %s9912_s17 }
 0xc51   : > { %v2193_v38 = vpop.permute.xlu0 %2192 }
 0xc52   : > { %8871 = vmatpush3.xpose.msk.msra.mxu1 %vm1657_vm4, %v2193_v38 }
 0xc53   : > { %8875 = vmatprep.subr.mxu1 %v9909_v0  ;;  %v2269_v39 = vpop.permute.xlu1 %2268 }
 0xc55   : > { %8873 = vmatmul.mubr.msk.f32.vlgmr.msra.gmra.mxu1 %vm1657_vm4, %v10455_v35  ;;  %v2345_v40 = vpop.permute.xlu0 %2344 }
 0xc56   : > { %8876 = vmatpush3.xpose.msk.msra.mxu1 %vm1657_vm4, %v2269_v39  ;;  %8881 = vmatpush3.xpose.msk.msra.mxu0 %vm1657_vm4, %v2345_v40 }
 0xc57   : > { %8877 = vmatprep.mubr.msk.f32.mxu1 %vm9910_vm0, %v9909_v0  ;;  %8890 = vmatprep.subr.mxu0 %v9909_v0 }
 0xc58   : > { %8885 = vmatprep.subr.mxu1 %v9909_v0 }
 0xc59   : > { %8878 = vmatmul.mubr.msk.f32.vlgmr.msra.gmra.mxu1 %vm1657_vm4, %v10461_v36  ;;  %8883 = vmatmul.mubr.msk.f32.vlgmr.msra.gmra.mxu0 %vm1657_vm4, %v10463_v37 }
 0xc5a   : > { %8887 = vmatprep.mubr.msk.f32.mxu1 %vm9910_vm0, %v9909_v0  ;;  %8892 = vmatprep.mubr.msk.f32.mxu0 %vm9910_vm0, %v9909_v0 }
 0xd15   : > { %v2264_v41 = vpop.f32.mrf.mxu1 }
 0xd16   : > { %v2420_v42 = vmul.f32 0.35355338, %v2264_v41 }
 0xd17   : > { %v8874_v43 = vpop.f32.mrf.mxu1 }
 0xd18   : > { %v2424_v44 = vsel %vm2423_vm5, %v2420_v42, -inf }
 0xd19   : > { %2425 = vmax.xlane.f32.xlu0 %v2424_v44  ;;  %v2340_v45 = vpop.f32.mrf.mxu1  ;;  %v2416_v46 = vpop.f32.mrf.mxu0 }
 0xd1a   : > { %v2421_v47 = vmul.f32 0.35355338, %v2340_v45  ;;  %v2422_v48 = vmul.f32 0.35355338, %v2416_v46 }
 0xd1b   : > { %v8879_v49 = vpop.f32.mrf.mxu1  ;;  %v8884_v50 = vpop.f32.mrf.mxu0 }
 0xd1c   : > { %v2430_v51 = vsel %vm2423_vm5, %v2422_v48, -inf  ;;  %v2427_v52 = vsel %vm2423_vm5, %v2421_v47, -inf }
 0xd1d   : > { %2431 = vmax.xlane.f32.xlu0 %v2430_v51  ;;  %2428 = vmax.xlane.f32.xlu1 %v2427_v52 }
 0xd2e   : > { %2457 = vrot.lane.b32.xlu1 %v10455_v35, %s9911_s2 }
 0xd32   : > { %2613 = vrot.lane.b32.xlu1 %v10463_v37, %s9911_s2 }
 0xd33   : > { %2536 = vrot.lane.b32.xlu0 %v10461_v36, %s9911_s2 }
 0xd36   : > { %2692 = vrot.lane.b32.xlu1 %v10455_v35, %s9913_s0 }
 0xd3a   : > { %2690 = vrot.lane.b32.xlu1 %v10455_v35, %s9914_s1 }
 0xd3e   : > { %2848 = vrot.lane.b32.xlu1 %v10463_v37, %s9913_s0 }
 0xda2   : > { %v2426_v53 = vpop.xlane.xlu0 %2425 }
 0xda3   : > { %v2433_v54 = vsub.f32 %v2420_v42, %v2426_v53 }
 0xda5   : > { %v2436_v58 = vmul.f32 1.442695, %v2433_v54 }
 0xda6   : > { %v2432_v55 = vpop.xlane.xlu0 %2431  ;;  %v2429_v56 = vpop.xlane.xlu1 %2428 }
 0xda7   : > { %v2435_v57 = vsub.f32 %v2422_v48, %v2432_v55  ;;  %v2434_v60 = vsub.f32 %v2421_v47, %v2429_v56 }
 0xda9   : > { %v2440_v59 = vmul.f32 1.442695, %v2435_v57  ;;  %v2438_v63 = vmul.f32 1.442695, %v2434_v60 }
 0xdaa   : > { %v2537_v61 = vpop.permute.xlu0 %2536  ;;  %v2458_v62 = vpop.permute.xlu1 %2457 }
 0xdab   : > { %9470 = vpow2.f32 %v2440_v59  ;;  %8886 = vmatpush3.msk.msra.mxu1 %vm2463_vm6, %v2458_v62  ;;  %8891 = vmatpush3.msk.msra.mxu0 %vm2463_vm6, %v2537_v61 }
 0xdac   : > { %8895 = vmatprep.subr.mxu1 %v9909_v0  ;;  %8900 = vmatprep.subr.mxu0 %v9909_v0  ;;  %9472 = vpow2.f32 %v2436_v58 }
 0xdad   : > { %9474 = vpow2.f32 %v2438_v63 }
 0xdae   : > { %v2614_v10 = vpop.permute.xlu1 %2613 }
 0xdb2   : > { %v2693_v11 = vpop.permute.xlu1 %2692 }
 0xdb6   : > { %v2691_v17 = vpop.permute.xlu1 %2690 }
 0xdb8   : > { %v9471_v1 = vpop.eup %9470 }
 0xdb9   : > { %v2448_v2 = vsel %vm2423_vm5, %v9471_v1, 0.0  ;;  %v9473_v3 = vpop.eup %9472 }
 0xdba   : > { %2449 = vadd.xlane.f32.xlu0 %v2448_v2  ;;  %v2442_v4 = vsel %vm2423_vm5, %v9473_v3, 0.0  ;;  %v9475_v5 = vpop.eup %9474  ;;  %v2849_v21 = vpop.permute.xlu1 %2848 }
 0xdbb   : > { %v2445_v6 = vsel %vm2423_vm5, %v9475_v5, 0.0 }
 0xdbe   : > { %2443 = vadd.xlane.f32.xlu0 %v2442_v4 }
 0xdc2   : > { %2446 = vadd.xlane.f32.xlu0 %v2445_v6 }
 0xdd8   : > { %2770 = vrot.lane.b32.xlu0 %v10461_v36, %s9913_s0 }
 0xddc   : > { %2768 = vrot.lane.b32.xlu0 %v10461_v36, %s9914_s1 }
 0xde0   : > { %2846 = vrot.lane.b32.xlu0 %v10463_v37, %s9914_s1 }
 0xe43   : > { %v2450_v7 = vpop.xlane.xlu0 %2449 }
 0xe47   : > { %v2444_v8 = vpop.xlane.xlu0 %2443 }
 0xe48   : > { %9476 = vrcp.f32 %v2444_v8 }
 0xe49   : > { %9478 = vrcp.f32 %v2450_v7 }
 0xe4b   : > { %v2447_v9 = vpop.xlane.xlu0 %2446 }
 0xe4c   : > { %9480 = vrcp.f32 %v2447_v9  ;;  %v2188_v9 = vld [vmem:[%s9991_s30] sm:$0xff] }
 0xe4f   : > { %v2771_v15 = vpop.permute.xlu0 %2770 }
 0xe53   : > { %v2769_v20 = vpop.permute.xlu0 %2768 }
 0xe55   : > { %v9477_v12 = vpop.eup %9476 }
 0xe56   : > { %v2454_v13 = vmul.f32 %v9477_v12, %v9473_v3  ;;  %v9479_v14 = vpop.eup %9478 }
 0xe57   : > { %v2456_v19 = vmul.f32 %v9479_v14, %v9471_v1  ;;  %v2847_v22 = vpop.permute.xlu0 %2846 }
 0xe58   : > { %8888 = vmatmul.mubr.msk.f32.vlgmr.msra.gmra.mxu1 %vm2459_vm7, %v2454_v13 }
 0xe59   : > { %v9481_v16 = vpop.eup %9480  ;;  %8896 = vmatpush3.msk.msra.mxu1 %vm2463_vm6, %v2614_v10  ;;  %8897 = vmatprep.mubr.msk.f32.mxu1 %vm9910_vm0, %v9909_v0 }
 0xe5a   : > { %8905 = vmatprep.subr.mxu1 %v9909_v0  ;;  %v2455_v18 = vmul.f32 %v9481_v16, %v9475_v5 }
 0xe5c   : > { %8893 = vmatmul.mubr.msk.f32.vlgmr.msra.gmra.mxu0 %vm2459_vm7, %v2455_v18  ;;  %8898 = vmatmul.mubr.msk.f32.vlgmr.msra.gmra.mxu1 %vm2459_vm7, %v2456_v19 }
 0xe5d   : > { %8901 = vmatpush3.xpose.msk.msra.mxu0 %vm1657_vm4, %v2693_v11  ;;  %8906 = vmatpush3.xpose.msk.msra.mxu1 %vm1657_vm4, %v2771_v15  ;;  %v2189_v15 = vld [vmem:[%s9991_s30 + $0x8] sm:$0xff] }
 0xe5e   : > { %8902 = vmatprep.mubr.msk.f32.mxu0 %vm9910_vm0, %v9909_v0  ;;  %8907 = vmatprep.mubr.msk.f32.mxu1 %vm9910_vm0, %v9909_v0 }
 0xe5f   : > { %8910 = vmatprep.subr.mxu0 %v9909_v0  ;;  %8915 = vmatprep.subr.mxu1 %v9909_v0 }
 0xe60   : > { %8903 = vmatmul.mubr.msk.f32.vlgmr.msra.gmra.mxu0 %vm1657_vm4, %v2691_v17  ;;  %8908 = vmatmul.mubr.msk.f32.vlgmr.msra.gmra.mxu1 %vm1657_vm4, %v2769_v20 }
 0xe61   : > { %8911 = vmatpush3.xpose.msk.msra.mxu0 %vm1657_vm4, %v2849_v21  ;;  %8912 = vmatprep.mubr.msk.f32.mxu0 %vm9910_vm0, %v9909_v0 }
 0xe62   : > { %8920 = vmatprep.subr.mxu0 %v9909_v0  ;;  %8917 = vmatprep.mubr.msk.f32.mxu1 %vm9910_vm0, %v9909_v0 }
 0xe64   : > { %8913 = vmatmul.mubr.msk.f32.vlgmr.msra.gmra.mxu0 %vm1657_vm4, %v2847_v22 }
 0xe65   : > { %8922 = vmatprep.mubr.msk.f32.mxu0 %vm9910_vm0, %v9909_v0 }
 0xf18   : > { %v10541_v23 = vpop.f32.mrf.mxu1 }
 0xf1a   : > { %v8889_v24 = vpop.f32.mrf.mxu1 }
 0xf1c   : > { %v10543_v25 = vpop.f32.mrf.mxu0  ;;  %v10545_v28 = vpop.f32.mrf.mxu1 }
 0xf1d   : > { %v3277_v29 = vcombine.low %v10541_v23, %v10543_v25 }
 0xf1e   : > { %v8894_v31 = vpop.f32.mrf.mxu0  ;;  %v8899_v32 = vpop.f32.mrf.mxu1 }
 0xf20   : > { %v2764_v33 = vpop.f32.mrf.mxu0  ;;  %v2842_v34 = vpop.f32.mrf.mxu1 }
 0xf21   : > { %v2924_v38 = vmul.f32 0.35355338, %v2764_v33  ;;  %v2925_v39 = vmul.f32 0.35355338, %v2842_v34 }
 0xf22   : > { %v8904_v40 = vpop.f32.mrf.mxu0  ;;  %v8909_v41 = vpop.f32.mrf.mxu1 }
 0xf23   : > { %v2927_v42 = vsel %vm2423_vm5, %v2924_v38, -inf  ;;  %v2930_v43 = vsel %vm2423_vm5, %v2925_v39, -inf }
 0xf24   : > { %2928 = vmax.xlane.f32.xlu1 %v2927_v42  ;;  %v2920_v44 = vpop.f32.mrf.mxu0  ;;  %2931 = vmax.xlane.f32.xlu0 %v2930_v43 }
 0xf25   : > { %v2926_v45 = vmul.f32 0.35355338, %v2920_v44 }
 0xf26   : > { %v8914_v46 = vpop.f32.mrf.mxu0 }
 0xf27   : > { %v2933_v47 = vsel %vm2423_vm5, %v2926_v45, -inf }
 0xf28   : > { %2934 = vmax.xlane.f32.xlu0 %v2933_v47 }
 0xfad   : > { %v2929_v48 = vpop.xlane.xlu1 %2928  ;;  %v2932_v49 = vpop.xlane.xlu0 %2931 }
 0xfae   : > { %v2936_v50 = vsub.f32 %v2924_v38, %v2929_v48  ;;  %v2937_v51 = vsub.f32 %v2925_v39, %v2932_v49 }
 0xfb0   : > { %v2939_v52 = vmul.f32 1.442695, %v2936_v50  ;;  %v2941_v53 = vmul.f32 1.442695, %v2937_v51 }
 0xfb1   : > { %v2935_v58 = vpop.xlane.xlu0 %2934 }
 0xfb2   : > { %9482 = vpow2.f32 %v2939_v52  ;;  %v2938_v59 = vsub.f32 %v2926_v45, %v2935_v58 }
 0xfb3   : > { %9484 = vpow2.f32 %v2941_v53 }
 0xfb4   : > { %v2943_v60 = vmul.f32 1.442695, %v2938_v59 }
 0xfb6   : > { %9486 = vpow2.f32 %v2943_v60 }
 0xfbf   : > { %v9483_v54 = vpop.eup %9482 }
 0xfc0   : > { %v9485_v55 = vpop.eup %9484  ;;  %v2945_v56 = vsel %vm2423_vm5, %v9483_v54, 0.0 }
 0xfc1   : > { %2946 = vadd.xlane.f32.xlu1 %v2945_v56  ;;  %v2948_v57 = vsel %vm2423_vm5, %v9485_v55, 0.0 }
 0xfc2   : > { %2949 = vadd.xlane.f32.xlu0 %v2948_v57 }
 0xfc3   : > { %v9487_v61 = vpop.eup %9486 }
 0xfc4   : > { %v2951_v62 = vsel %vm2423_vm5, %v9487_v61, 0.0 }
 0xfd2   : > { %3037 = vrot.lane.b32.xlu1 %v10461_v36, %s9915_s20 }
 0xfd8   : > { %2960 = vrot.lane.b32.xlu0 %v10455_v35, %s9915_s20 }
 0xfdc   : > { %3362 = vrot.lane.b32.xlu0 %v10455_v35, %s9916_s18 }
 0xfe0   : > { %3360 = vrot.lane.b32.xlu0 %v10455_v35, %s9917_s23 }
 0xfe4   : > { %3518 = vrot.lane.b32.xlu0 %v10463_v37, %s9916_s18 }
 0xff6   : > { %2952 = vadd.xlane.f32.xlu1 %v2951_v62 }
0x1007   : > { %3114 = vrot.lane.b32.xlu1 %v10463_v37, %s9915_s20 }
0x100b   : > { %3440 = vrot.lane.b32.xlu1 %v10461_v36, %s9916_s18 }
0x100f   : > { %3438 = vrot.lane.b32.xlu1 %v10461_v36, %s9917_s23 }
0x1013   : > { %3516 = vrot.lane.b32.xlu1 %v10463_v37, %s9917_s23 }
0x104a   : > { %v2947_v63 = vpop.xlane.xlu1 %2946 }
0x104b   : > { %9488 = vrcp.f32 %v2947_v63  ;;  %v2950_v1 = vpop.xlane.xlu0 %2949 }
0x104c   : > { %9490 = vrcp.f32 %v2950_v1 }
0x104e   : > { %v3038_v2 = vpop.permute.xlu1 %3037 }
0x104f   : > { %v2961_v3 = vpop.permute.xlu0 %2960  ;;  %8921 = vmatpush3.msk.msra.mxu0 %vm2463_vm6, %v3038_v2 }
0x1050   : > { %8916 = vmatpush3.msk.msra.mxu1 %vm2463_vm6, %v2961_v3  ;;  %8930 = vmatprep.subr.mxu0 %v2189_v15 }
0x1051   : > { %8925 = vmatprep.subr.mxu1 %v9909_v0 }
0x1053   : > { %v3363_v21 = vpop.permute.xlu0 %3362 }
0x1057   : > { %v3361_v22 = vpop.permute.xlu0 %3360 }
0x1058   : > { %v9489_v4 = vpop.eup %9488 }
0x1059   : > { %v9491_v5 = vpop.eup %9490  ;;  %v2957_v6 = vmul.f32 %v9489_v4, %v9483_v54 }
0x105a   : > { %v2958_v7 = vmul.f32 %v9491_v5, %v9485_v55 }
0x105b   : > { %8918 = vmatmul.mubr.msk.f32.vlgmr.msra.gmra.mxu1 %vm2459_vm7, %v2957_v6 }
0x105c   : > { %8923 = vmatmul.mubr.msk.f32.vlgmr.msra.gmra.mxu0 %vm2459_vm7, %v2958_v7  ;;  %8927 = vmatprep.mubr.msk.f32.mxu1 %vm9910_vm0, %v9909_v0 }
0x105d   : > { %8931 = vmatpush3.msra.mxu0 %v2189_v15 }
0x105e   : > { %8940 = vmatprep.subr.mxu0 %v9909_v0 }
0x107f   : > { %v2953_v8 = vpop.xlane.xlu1 %2952 }
0x1080   : > { %9492 = vrcp.f32 %v2953_v8 }
0x1083   : > { %v3115_v10 = vpop.permute.xlu1 %3114 }
0x1084   : > { %8926 = vmatpush3.msk.msra.mxu1 %vm2463_vm6, %v3115_v10 }
0x1085   : > { %8935 = vmatprep.subr.mxu1 %v2188_v9 }
0x1087   : > { %v3441_v13 = vpop.permute.xlu1 %3440 }
0x108b   : > { %v3439_v14 = vpop.permute.xlu1 %3438 }
0x108d   : > { %v9493_v11 = vpop.eup %9492 }
0x108e   : > { %v2959_v12 = vmul.f32 %v9493_v11, %v9487_v61 }
0x108f   : > { %v3517_v31 = vpop.permute.xlu1 %3516 }
0x1090   : > { %8928 = vmatmul.mubr.msk.f32.vlgmr.msra.gmra.mxu1 %vm2459_vm7, %v2959_v12 }
0x1091   : > { %8937 = vmatprep.mubr.msk.f32.mxu1 %vm1657_vm4, %v3277_v29  ;;  %8936 = vmatpush3.msra.mxu1 %v2188_v9 }
0x1092   : > { %8945 = vmatprep.subr.mxu1 %v9909_v0 }
0x1094   : > { %8938 = vmatmul.mubr.msk.f32.vlgmr.msra.gmra.mxu1 %vm1657_vm4, %v10545_v28  ;;  %v3519_v28 = vpop.permute.xlu0 %3518 }
0x1095   : > { %8946 = vmatpush3.xpose.msk.msra.mxu1 %vm1657_vm4, %v3441_v13  ;;  %8947 = vmatprep.mubr.msk.f32.mxu1 %vm9910_vm0, %v9909_v0 }
0x1096   : > { %8955 = vmatprep.subr.mxu1 %v9909_v0 }
0x1098   : > { %8948 = vmatmul.mubr.msk.f32.vlgmr.msra.gmra.mxu1 %vm1657_vm4, %v3439_v14 }
0x1099   : > { %8957 = vmatprep.mubr.msk.f32.mxu1 %vm9910_vm0, %v9909_v0 }
0x111b   : > { %v3033_v16 = vpop.f32.mrf.mxu1 }
0x111c   : > { %v3110_v17 = vpop.f32.mrf.mxu0 }
0x111d   : > { %v3194_v18 = vcombine.low %v3033_v16, %v3110_v17  ;;  %v8919_v19 = vpop.f32.mrf.mxu1 }
0x111e   : > { %v8924_v20 = vpop.f32.mrf.mxu0  ;;  %v2190_v19 = vld [vmem:[%s9991_s30 + $0x10] sm:$0xff] }
0x111f   : > { %8932 = vmatprep.mubr.msk.f32.mxu0 %vm1657_vm4, %v3194_v18 }
0x1150   : > { %v3187_v23 = vpop.f32.mrf.mxu1 }
0x1151   : > { %8933 = vmatmul.mubr.msk.f32.vlgmr.msra.gmra.mxu0 %vm1657_vm4, %v3187_v23 }
0x1152   : > { %8941 = vmatpush3.xpose.msk.msra.mxu0 %vm1657_vm4, %v3363_v21  ;;  %v8929_v24 = vpop.f32.mrf.mxu1  ;;  %8942 = vmatprep.mubr.msk.f32.mxu0 %vm9910_vm0, %v9909_v0 }
0x1153   : > { %8950 = vmatprep.subr.mxu0 %v9909_v0 }
0x1154   : > { %v10605_v25 = vpop.f32.mrf.mxu1 }
0x1155   : > { %8943 = vmatmul.mubr.msk.f32.vlgmr.msra.gmra.mxu0 %vm1657_vm4, %v3361_v22 }
0x1156   : > { %8951 = vmatpush3.xpose.msk.msra.mxu0 %vm1657_vm4, %v3519_v28  ;;  %v10609_v29 = vpop.f32.mrf.mxu1  ;;  %8952 = vmatprep.mubr.msk.f32.mxu0 %vm9910_vm0, %v9909_v0 }
0x1157   : > { %8960 = vmatprep.subr.mxu0 %v9909_v0 }
0x1158   : > { %v3512_v32 = vpop.f32.mrf.mxu1 }
0x1159   : > { %v3595_v33 = vmul.f32 0.35355338, %v3512_v32  ;;  %8953 = vmatmul.mubr.msk.f32.vlgmr.msra.gmra.mxu0 %vm1657_vm4, %v3517_v31 }
0x115a   : > { %v8949_v34 = vpop.f32.mrf.mxu1  ;;  %8962 = vmatprep.mubr.msk.f32.mxu0 %vm9910_vm0, %v9909_v0 }
0x115b   : > { %v3600_v38 = vsel %vm2423_vm5, %v3595_v33, -inf }
0x115c   : > { %3601 = vmax.xlane.f32.xlu1 %v3600_v38 }
0x11e5   : > { %v3602_v39 = vpop.xlane.xlu1 %3601 }
0x11e6   : > { %v3607_v40 = vsub.f32 %v3595_v33, %v3602_v39 }
0x11e8   : > { %v3611_v41 = vmul.f32 1.442695, %v3607_v40 }
0x11ea   : > { %9494 = vpow2.f32 %v3611_v41 }
0x11f7   : > { %v9495_v42 = vpop.eup %9494 }
0x11f8   : > { %v3618_v43 = vsel %vm2423_vm5, %v9495_v42, 0.0 }
0x11f9   : > { %3619 = vadd.xlane.f32.xlu1 %v3618_v43 }
0x120a   : > { %3630 = vrot.lane.b32.xlu1 %v10455_v35, %s9918_s11 }
0x120e   : > { %3784 = vrot.lane.b32.xlu1 %v10463_v37, %s9918_s11 }
0x1211   : > { %v10623_v44 = vpop.f32.mrf.mxu0 }
0x1212   : > { %3952 = vrot.lane.b32.xlu1 %v10455_v35, %s11204_s25 }
0x1213   : > { %v10627_v45 = vpop.f32.mrf.mxu0 }
0x1215   : > { %v3434_v46 = vpop.f32.mrf.mxu0 }
0x1216   : > { %v3594_v47 = vmul.f32 0.35355338, %v3434_v46  ;;  %3950 = vrot.lane.b32.xlu1 %v10455_v35, %s11202_s3 }
0x1217   : > { %v8944_v48 = vpop.f32.mrf.mxu0 }
0x1218   : > { %v3597_v49 = vsel %vm2423_vm5, %v3594_v47, -inf  ;;  %v3354_v48 = vadd.f32 %v10605_v25, %v10623_v44 }
0x1219   : > { %3598 = vmax.xlane.f32.xlu0 %v3597_v49  ;;  %v3590_v50 = vpop.f32.mrf.mxu0  ;;  %v3349_v49 = vadd.f32 %v10609_v29, %v10627_v45 }
0x121a   : > { %v3596_v51 = vmul.f32 0.35355338, %v3590_v50  ;;  %4108 = vrot.lane.b32.xlu1 %v10463_v37, %s11204_s25 }
0x121b   : > { %v8954_v52 = vpop.f32.mrf.mxu0 }
0x121c   : > { %v3603_v53 = vsel %vm2423_vm5, %v3596_v51, -inf }
0x121d   : > { %3604 = vmax.xlane.f32.xlu0 %v3603_v53  ;;  %v3358_v53 = vcombine.high %v3349_v49, %v3349_v49 }
0x1282   : > { %v3620_v54 = vpop.xlane.xlu1 %3619 }
0x1286   : > { %v3631_v55 = vpop.permute.xlu1 %3630 }
0x1287   : > { %8956 = vmatpush3.msk.msra.mxu1 %vm2463_vm6, %v3631_v55 }
0x1288   : > { %8965 = vmatprep.subr.mxu1 %v9909_v0 }
0x128a   : > { %v3785_v6 = vpop.permute.xlu1 %3784 }
0x128e   : > { %v3953_v9 = vpop.permute.xlu1 %3952 }
0x1292   : > { %v3951_v14 = vpop.permute.xlu1 %3950 }
0x1296   : > { %v4109_v17 = vpop.permute.xlu1 %4108 }
0x12a2   : > { %v3599_v56 = vpop.xlane.xlu0 %3598 }
0x12a3   : > { %v3606_v57 = vsub.f32 %v3594_v47, %v3599_v56 }
0x12a5   : > { %v3609_v58 = vmul.f32 1.442695, %v3606_v57 }
0x12a6   : > { %v3605_v59 = vpop.xlane.xlu0 %3604 }
0x12a7   : > { %9496 = vpow2.f32 %v3609_v58  ;;  %v3608_v60 = vsub.f32 %v3596_v51, %v3605_v59 }
0x12a9   : > { %v3613_v61 = vmul.f32 1.442695, %v3608_v60 }
0x12ab   : > { %9498 = vpow2.f32 %v3613_v61 }
0x12ac   : > { %9500 = vrcp.f32 %v3620_v54 }
0x12b4   : > { %v9497_v62 = vpop.eup %9496 }
0x12b5   : > { %v3615_v63 = vsel %vm2423_vm5, %v9497_v62, 0.0 }
0x12b6   : > { %3616 = vadd.xlane.f32.xlu0 %v3615_v63 }
0x12b8   : > { %v9499_v1 = vpop.eup %9498 }
0x12b9   : > { %v3621_v2 = vsel %vm2423_vm5, %v9499_v1, 0.0  ;;  %v9501_v5 = vpop.eup %9500 }
0x12ba   : > { %3622 = vadd.xlane.f32.xlu0 %v3621_v2  ;;  %v3628_v8 = vmul.f32 %v9501_v5, %v9495_v42 }
0x12d0   : > { %3707 = vrot.lane.b32.xlu0 %v10461_v36, %s9918_s11 }
0x12d4   : > { %4030 = vrot.lane.b32.xlu0 %v10461_v36, %s11204_s25  ;;  %s11283_s25 = sld [smem:[#allocation38_spill]] }
0x12d8   : > { %4028 = vrot.lane.b32.xlu0 %v10461_v36, %s11202_s3 }
0x12dc   : > { %4106 = vrot.lane.b32.xlu0 %v10463_v37, %s11202_s3  ;;  %s11282_s3 = sld [smem:[#allocation36_spill]] }
0x133f   : > { %v3617_v3 = vpop.xlane.xlu0 %3616 }
0x1340   : > { %9502 = vrcp.f32 %v3617_v3 }
0x1343   : > { %v3623_v4 = vpop.xlane.xlu0 %3622 }
0x1344   : > { %9504 = vrcp.f32 %v3623_v4 }
0x1347   : > { %v3708_v7 = vpop.permute.xlu0 %3707 }
0x1348   : > { %8961 = vmatpush3.msk.msra.mxu0 %vm2463_vm6, %v3708_v7 }
0x1349   : > { %8963 = vmatmul.mubr.msk.f32.vlgmr.msra.gmra.mxu0 %vm2459_vm7, %v3628_v8  ;;  %8970 = vmatprep.subr.mxu0 %v2190_v19 }
0x134a   : > { %8971 = vmatpush3.msra.mxu0 %v2190_v19 }
0x134b   : > { %v4031_v12 = vpop.permute.xlu0 %4030  ;;  %8980 = vmatprep.subr.mxu0 %v9909_v0 }
0x134d   : > { %v9503_v10 = vpop.eup %9502 }
0x134e   : > { %v3627_v11 = vmul.f32 %v9503_v10, %v9497_v62 }
0x134f   : > { %v4029_v16 = vpop.permute.xlu0 %4028 }
0x1350   : > { %8958 = vmatmul.mubr.msk.f32.vlgmr.msra.gmra.mxu1 %vm2459_vm7, %v3627_v11 }
0x1351   : > { %v9505_v13 = vpop.eup %9504  ;;  %8966 = vmatpush3.msk.msra.mxu1 %vm2463_vm6, %v3785_v6  ;;  %8967 = vmatprep.mubr.msk.f32.mxu1 %vm9910_vm0, %v9909_v0 }
0x1352   : > { %8975 = vmatprep.subr.mxu1 %v9909_v0  ;;  %v3629_v15 = vmul.f32 %v9505_v13, %v9499_v1 }
0x1353   : > { %v4107_v18 = vpop.permute.xlu0 %4106 }
0x1354   : > { %8968 = vmatmul.mubr.msk.f32.vlgmr.msra.gmra.mxu1 %vm2459_vm7, %v3629_v15  ;;  %v2191_v15 = vld [vmem:[%s9991_s30 + $0x18] sm:$0xff] }
0x1355   : > { %8976 = vmatpush3.xpose.msk.msra.mxu1 %vm1657_vm4, %v3953_v9  ;;  %8977 = vmatprep.mubr.msk.f32.mxu1 %vm9910_vm0, %v9909_v0 }
0x1356   : > { %8985 = vmatprep.subr.mxu1 %v9909_v0 }
0x1358   : > { %8978 = vmatmul.mubr.msk.f32.vlgmr.msra.gmra.mxu1 %vm1657_vm4, %v3951_v14 }
0x1359   : > { %8986 = vmatpush3.xpose.msk.msra.mxu1 %vm1657_vm4, %v4109_v17  ;;  %8987 = vmatprep.mubr.msk.f32.mxu1 %vm9910_vm0, %v9909_v0 }
0x135a   : > { %8995 = vmatprep.subr.mxu1 %v9909_v0 }
0x135c   : > { %8988 = vmatmul.mubr.msk.f32.vlgmr.msra.gmra.mxu1 %vm1657_vm4, %v4107_v18 }
0x135d   : > { %8997 = vmatprep.mubr.msk.f32.mxu1 %vm9910_vm0, %v9909_v0 }
0x1409   : > { %v3780_v20 = vpop.f32.mrf.mxu0 }
0x140b   : > { %v8964_v21 = vpop.f32.mrf.mxu0 }
0x1410   : > { %v3703_v22 = vpop.f32.mrf.mxu1 }
0x1411   : > { %v3864_v23 = vcombine.low %v3703_v22, %v3780_v20 }
0x1412   : > { %v8959_v24 = vpop.f32.mrf.mxu1 }
0x1413   : > { %8972 = vmatprep.mubr.msk.f32.mxu0 %vm1657_vm4, %v3864_v23 }
0x1414   : > { %v3857_v28 = vpop.f32.mrf.mxu1 }
0x1415   : > { %8973 = vmatmul.mubr.msk.f32.vlgmr.msra.gmra.mxu0 %vm1657_vm4, %v3857_v28  ;;  %v8474_v28 = vld [vmem:[%s11273_s6] ss:$0 sm:$0xff]  ;;  %s9922_s6 = smov [#allocation14]  }
0x1416   : > { %8981 = vmatpush3.xpose.msk.msra.mxu0 %vm1657_vm4, %v4031_v12  ;;  %v8969_v31 = vpop.f32.mrf.mxu1  ;;  %8982 = vmatprep.mubr.msk.f32.mxu0 %vm9910_vm0, %v9909_v0  ;;  %s9780_s8 = sshll.u32 %s9922_s6, 4  ;;  %s9781_s8 = int_to_ptr.vmem [resolvable:$false] %s9780_s8 }
0x1417   : > { %8990 = vmatprep.subr.mxu0 %v9909_v0 }
0x1418   : > { %v4024_v32 = vpop.f32.mrf.mxu1 }
0x1419   : > { %v4184_v33 = vmul.f32 0.35355338, %v4024_v32  ;;  %8983 = vmatmul.mubr.msk.f32.vlgmr.msra.gmra.mxu0 %vm1657_vm4, %v4029_v16 }
0x141a   : > { %v8979_v34 = vpop.f32.mrf.mxu1  ;;  %8992 = vmatprep.mubr.msk.f32.mxu0 %vm9910_vm0, %v9909_v0 }
0x141b   : > { %v4187_v38 = vsel %vm2423_vm5, %v4184_v33, -inf }
0x141c   : > { %4188 = vmax.xlane.f32.xlu1 %v4187_v38  ;;  %v4180_v39 = vpop.f32.mrf.mxu1 }
0x141d   : > { %v4186_v60 = vmul.f32 0.35355338, %v4180_v39 }
0x141e   : > { %v8989_v40 = vpop.f32.mrf.mxu1 }
0x141f   : > { %v4193_v25 = vsel %vm2423_vm5, %v4186_v60, -inf }
0x14a5   : > { %v4189_v41 = vpop.xlane.xlu1 %4188 }
0x14a6   : > { %v4196_v42 = vsub.f32 %v4184_v33, %v4189_v41 }
0x14a8   : > { %v4199_v43 = vmul.f32 1.442695, %v4196_v42 }
0x14aa   : > { %9506 = vpow2.f32 %v4199_v43 }
0x14b7   : > { %v9507_v46 = vpop.eup %9506 }
0x14b8   : > { %v4205_v47 = vsel %vm2423_vm5, %v9507_v46, 0.0 }
0x14b9   : > { %4206 = vadd.xlane.f32.xlu1 %v4205_v47 }
0x14d5   : > { %v8974_v50 = vpop.f32.mrf.mxu0 }
0x14d6   : > { %v10684_v51 = vadd.f32 %v8974_v50, %v3354_v48 }
0x14d7   : > { %v3935_v52 = vpop.f32.mrf.mxu0 }
0x14d8   : > { %v3945_v54 = vcombine.high %v3935_v52, %v3935_v52  ;;  %v10686_v55 = vadd.f32 %v3935_v52, %v3349_v49 }
0x14d9   : > { %v4102_v56 = vpop.f32.mrf.mxu0 }
0x14da   : > { %v10688_v57 = vadd.f32 %v3945_v54, %v3358_v53  ;;  %v4185_v58 = vmul.f32 0.35355338, %v4102_v56 }
0x14db   : > { %v8984_v59 = vpop.f32.mrf.mxu0 }
0x14dc   : > { %v4190_v61 = vsel %vm2423_vm5, %v4185_v58, -inf }
0x14dd   : > { %4191 = vmax.xlane.f32.xlu0 %v4190_v61  ;;  %v4617_v61 = vld [vmem:[%s11274_s14 + $0x18] sm:$0xff] }
0x14e1   : > { %4194 = vmax.xlane.f32.xlu0 %v4193_v25  ;;  %v4616_v25 = vld [vmem:[%s11274_s14 + $0x10] sm:$0xff] }
0x1542   : > { %v4207_v6 = vpop.xlane.xlu1 %4206 }
0x1566   : > { %v4192_v29 = vpop.xlane.xlu0 %4191 }
0x1567   : > { %v4197_v44 = vsub.f32 %v4185_v58, %v4192_v29  ;;  %v4615_v29 = vld [vmem:[%s11274_s14 + $0x8] sm:$0xff] }
0x1569   : > { %v4201_v45 = vmul.f32 1.442695, %v4197_v44  ;;  %v4614_v44 = vld [vmem:[%s11274_s14] sm:$0xff] }
0x156a   : > { %v4195_v62 = vpop.xlane.xlu0 %4194 }
0x156b   : > { %9508 = vpow2.f32 %v4201_v45  ;;  %v4198_v63 = vsub.f32 %v4186_v60, %v4195_v62  ;;  %v4723_v45 = vld [vmem:[%s11275_s28 + $0x38] sm:$0xff]  ;;  %v4722_v62 = vld [vmem:[%s11275_s28 + $0x30] sm:$0xff] }
0x156d   : > { %v4203_v1 = vmul.f32 1.442695, %v4198_v63 }
0x156f   : > { %9510 = vpow2.f32 %v4203_v1 }
0x1570   : > { %9512 = vrcp.f32 %v4207_v6 }
0x1578   : > { %v9509_v2 = vpop.eup %9508 }
0x1579   : > { %v4208_v3 = vsel %vm2423_vm5, %v9509_v2, 0.0 }
0x157a   : > { %4209 = vadd.xlane.f32.xlu0 %v4208_v3 }
0x157c   : > { %v9511_v4 = vpop.eup %9510 }
0x157d   : > { %v4211_v5 = vsel %vm2423_vm5, %v9511_v4, 0.0  ;;  %v9513_v8 = vpop.eup %9512 }
0x157e   : > { %4212 = vadd.xlane.f32.xlu1 %v4211_v5  ;;  %v4217_v11 = vmul.f32 %v9513_v8, %v9507_v46 }
0x158f   : > { %4297 = vrot.lane.b32.xlu1 %v10461_v36, %s11200_s5 }
0x1590   : > { %4220 = vrot.lane.b32.xlu0 %v10455_v35, %s11200_s5 }
0x1593   : > { %4374 = vrot.lane.b32.xlu1 %v10463_v37, %s11200_s5  ;;  %s11277_s5 = sld [smem:[#allocation34_spill]] }
0x1603   : > { %v4210_v7 = vpop.xlane.xlu0 %4209 }
0x1604   : > { %9514 = vrcp.f32 %v4210_v7 }
0x1607   : > { %v4213_v9 = vpop.xlane.xlu1 %4212  ;;  %v4221_v10 = vpop.permute.xlu0 %4220 }
0x1608   : > { %9516 = vrcp.f32 %v4213_v9  ;;  %8991 = vmatpush3.msk.msra.mxu0 %vm2463_vm6, %v4221_v10  ;;  %v8475_v10 = vld [vmem:[%s11276_s12] ss:$0 sm:$0xff]  ;;  %s11279_s12 = sld [smem:[#allocation32_spill]] }
0x1609   : > { %8993 = vmatmul.mubr.msk.f32.vlgmr.msra.gmra.mxu0 %vm2459_vm7, %v4217_v11  ;;  %9000 = vmatprep.subr.mxu0 %v9909_v0 }
0x160a   : > { %9002 = vmatprep.mubr.msk.f32.mxu0 %vm9910_vm0, %v9909_v0 }
0x160b   : > { %v4298_v35 = vpop.permute.xlu1 %4297 }
0x160c   : > { %8996 = vmatpush3.msk.msra.mxu1 %vm2463_vm6, %v4298_v35 }
0x160d   : > { %9005 = vmatprep.subr.mxu1 %v2191_v15 }
0x160f   : > { %v4375_v36 = vpop.permute.xlu1 %4374 }
0x1610   : > { %9001 = vmatpush3.msk.msra.mxu0 %vm2463_vm6, %v4375_v36 }
0x1611   : > { %v9515_v37 = vpop.eup %9514  ;;  %9010 = vmatprep.subr.mxu0 %v4617_v61 }
0x1612   : > { %v4218_v12 = vmul.f32 %v9515_v37, %v9509_v2 }
0x1614   : > { %8998 = vmatmul.mubr.msk.f32.vlgmr.msra.gmra.mxu1 %vm2459_vm7, %v4218_v12 }
0x1615   : > { %v9517_v13 = vpop.eup %9516  ;;  %9006 = vmatpush3.msra.mxu1 %v2191_v15 }
0x1616   : > { %v4219_v14 = vmul.f32 %v9517_v13, %v9511_v4  ;;  %9021 = vmatprep.subr.mxu1 %v4723_v45  ;;  %v8476_v13 = vld [vmem:[%s11277_s5] ss:$0 sm:$0xff]  ;;  %s11278_s5 = sld [smem:[#allocation30_spill]] }
0x1618   : > { %9003 = vmatmul.mubr.msk.f32.vlgmr.msra.gmra.mxu0 %vm2459_vm7, %v4219_v14 }
0x1619   : > { %9011 = vmatpush3.msra.mxu0 %v4617_v61 }
0x161a   : > { %9012 = vmatprep.subr.mxu0 %v4616_v25 }
0x161b   : > { %9013 = vmatpush3.msra.mxu0 %v4616_v25 }
0x161c   : > { %9014 = vmatprep.subr.mxu0 %v4615_v29 }
0x161d   : > { %9015 = vmatpush3.msra.mxu0 %v4615_v29 }
0x161e   : > { %9016 = vmatprep.subr.mxu0 %v4614_v44 }
0x161f   : > { %9017 = vmatpush3.msra.mxu0 %v4614_v44 }
0x16c9   : > { %v4293_v16 = vpop.f32.mrf.mxu0 }
0x16cb   : > { %v8994_v17 = vpop.f32.mrf.mxu0 }
0x16d4   : > { %v4370_v18 = vpop.f32.mrf.mxu1 }
0x16d5   : > { %v4454_v19 = vcombine.low %v4293_v16, %v4370_v18 }
0x16d6   : > { %v8999_v20 = vpop.f32.mrf.mxu1 }
0x16d7   : > { %9007 = vmatprep.mubr.msk.f32.mxu1 %vm1657_vm4, %v4454_v19 }
0x16d8   : > { %v4447_v21 = vpop.f32.mrf.mxu0 }
0x16d9   : > { %9008 = vmatmul.mubr.msk.f32.vlgmr.msra.gmra.mxu1 %vm1657_vm4, %v4447_v21  ;;  %v4721_v21 = vld [vmem:[%s11275_s28 + $0x28] sm:$0xff] }
0x16da   : > { %v9004_v22 = vpop.f32.mrf.mxu0  ;;  %9022 = vmatpush3.msra.mxu1 %v4723_v45 }
0x16db   : > { %9023 = vmatprep.subr.mxu1 %v4722_v62  ;;  %v4720_v22 = vld [vmem:[%s11275_s28 + $0x20] sm:$0xff] }
0x16dc   : > { %9024 = vmatpush3.msra.mxu1 %v4722_v62 }
0x16dd   : > { %9025 = vmatprep.subr.mxu1 %v4721_v21 }
0x16de   : > { %9026 = vmatpush3.msra.mxu1 %v4721_v21 }
0x16df   : > { %9027 = vmatprep.subr.mxu1 %v4720_v22 }
0x16e0   : > { %9028 = vmatpush3.msra.mxu1 %v4720_v22 }
0x1799   : > { %v9009_v23 = vpop.f32.mrf.mxu1 }
0x179a   : > { %v4539_v24 = vadd.f32 %v9009_v23, %v10684_v51  ;;  %v4719_v23 = vld [vmem:[%s11275_s28 + $0x18] sm:$0xff] }
0x179b   : > { %v4525_v31 = vpop.f32.mrf.mxu1  ;;  %9029 = vmatprep.subr.mxu1 %v4719_v23 }
0x179c   : > { %v4535_v32 = vcombine.high %v4525_v31, %v4525_v31  ;;  %v4537_v33 = vadd.f32 %v4525_v31, %v10686_v55  ;;  %v4549_v34 = vadd.f32 %v8474_v28, %v4539_v24  ;;  %9030 = vmatpush3.msra.mxu1 %v4719_v23  ;;  %v4718_v24 = vld [vmem:[%s11275_s28 + $0x10] sm:$0xff]  ;;  %v4716_v31 = vld [vmem:[%s11275_s28] sm:$0xff] }
0x179d   : > { %9031 = vmatprep.subr.mxu1 %v4718_v24  ;;  %v8484_v23 = vld [vmem:[%s11282_s3] ss:$0 sm:$0xff]  ;;  %s11293_s3 = sld [smem:[#allocation46_spill]] }
0x179e   : > { %v4538_v38 = vadd.f32 %v4535_v32, %v10688_v57  ;;  %v4547_v39 = vadd.f32 %v8474_v28, %v4537_v33  ;;  %v4552_v46 = vadd.f32 %v4549_v34, %v10448_v30  ;;  %9032 = vmatpush3.msra.mxu1 %v4718_v24  ;;  %v8477_v32 = vld [vmem:[%s11278_s5] ss:$0 sm:$0xff]  ;;  %s11280_s5 = sld [smem:[#allocation37_spill]] }
0x179f   : > { %v4629_v33 = vcombine.low %v8477_v32, %v8477_v32 }
0x17a0   : > { %v4550_v40 = vadd.f32 %v4547_v39, %v10442_v26  ;;  %v4548_v41 = vadd.f32 %v8474_v28, %v4538_v38  ;;  %v4560_v48 = vsel %vm4553_vm8, %v4552_v46, 0.0  ;;  %v4717_v28 = vld [vmem:[%s11275_s28 + $0x8] sm:$0xff] }
0x17a1   : > { %9033 = vmatprep.subr.mxu1 %v4717_v28 }
0x17a2   : > { %v4554_v42 = vsel %vm4553_vm8, %v4550_v40, 0.0  ;;  %v4551_v43 = vadd.f32 %v4548_v41, %v10444_v27  ;;  %9034 = vmatpush3.msra.mxu1 %v4717_v28 }
0x17a3   : > { %4555 = vadd.xlane.f32.xlu0 %v4554_v42  ;;  %9035 = vmatprep.subr.mxu1 %v4716_v31 }
0x17a4   : > { %v4557_v47 = vsel %vm4553_vm8, %v4551_v43, 0.0  ;;  %9036 = vmatpush3.msra.mxu1 %v4716_v31 }
0x17a5   : > { %4558 = vadd.xlane.f32.xlu1 %v4557_v47  ;;  %9056 = vmatprep.subr.mxu1 %v9909_v0 }
0x17a7   : > { %4561 = vadd.xlane.f32.xlu0 %v4560_v48  ;;  %v8480_v48 = vld [vmem:[%s11279_s12] ss:$0 sm:$0xff]  ;;  %s11281_s12 = sld [smem:[#allocation35_spill]] }
0x182c   : > { %v4556_v49 = vpop.xlane.xlu0 %4555 }
0x182d   : > { %v4564_v50 = vmul.f32 0.03125, %v4556_v49  ;;  %v4735_v49 = vcombine.low %v8480_v48, %v8480_v48 }
0x182e   : > { %v4559_v51 = vpop.xlane.xlu1 %4558 }
0x182f   : > { %v4567_v26 = vsub.f32 %v4550_v40, %v4564_v50  ;;  %v4565_v52 = vmul.f32 0.03125, %v4559_v51 }
0x1830   : > { %v4562_v53 = vpop.xlane.xlu0 %4561 }
0x1831   : > { %v4568_v54 = vsub.f32 %v4551_v43, %v4565_v52  ;;  %v4566_v27 = vmul.f32 0.03125, %v4562_v53  ;;  %v4570_v55 = vmul.f32 %v4567_v26, %v4567_v26 }
0x1833   : > { %v4569_v30 = vsub.f32 %v4552_v46, %v4566_v27  ;;  %v4573_v56 = vsel %vm4553_vm8, %v4570_v55, 0.0  ;;  %v4571_v57 = vmul.f32 %v4568_v54, %v4568_v54 }
0x1834   : > { %4574 = vadd.xlane.f32.xlu0 %v4573_v56 }
0x1835   : > { %v4576_v58 = vsel %vm4553_vm8, %v4571_v57, 0.0  ;;  %v4572_v59 = vmul.f32 %v4569_v30, %v4569_v30 }
0x1836   : > { %4577 = vadd.xlane.f32.xlu1 %v4576_v58 }
0x1837   : > { %v4579_v60 = vsel %vm4553_vm8, %v4572_v59, 0.0 }
0x1838   : > { %4580 = vadd.xlane.f32.xlu0 %v4579_v60 }
0x18bd   : > { %v4575_v63 = vpop.xlane.xlu0 %4574 }
0x18be   : > { %v4582_v1 = vmul.f32 0.03125, %v4575_v63 }
0x18bf   : > { %v4578_v2 = vpop.xlane.xlu1 %4577 }
0x18c0   : > { %v4585_v3 = vadd.f32 1e-05, %v4582_v1  ;;  %v4583_v4 = vmul.f32 0.03125, %v4578_v2 }
0x18c1   : > { %v4581_v5 = vpop.xlane.xlu0 %4580 }
0x18c2   : > { %9518 = vrsqrt.f32 %v4585_v3  ;;  %v4586_v6 = vadd.f32 1e-05, %v4583_v4  ;;  %v4584_v7 = vmul.f32 0.03125, %v4581_v5 }
0x18c4   : > { %9520 = vrsqrt.f32 %v4586_v6  ;;  %v4587_v8 = vadd.f32 1e-05, %v4584_v7  ;;  %v4885_v6 = vld [vmem:[%s11280_s5 + $0x18] sm:$0xff]  ;;  %v4884_v7 = vld [vmem:[%s11280_s5 + $0x10] sm:$0xff] }
0x18c5   : > { %9040 = vmatprep.subr.mxu0 %v4885_v6 }
0x18c6   : > { %9522 = vrsqrt.f32 %v4587_v8  ;;  %v4883_v8 = vld [vmem:[%s11280_s5 + $0x8] sm:$0xff] }
0x18cf   : > { %v9519_v9 = vpop.eup %9518 }
0x18d0   : > { %v4591_v11 = vmul.f32 %v9519_v9, %v4567_v26  ;;  %v4882_v9 = vld [vmem:[%s11280_s5] sm:$0xff] }
0x18d1   : > { %v9521_v35 = vpop.eup %9520 }
0x18d2   : > { %v4592_v36 = vmul.f32 %v9521_v35, %v4568_v54  ;;  %v4601_v37 = vmul.f32 %v8475_v10, %v4591_v11 }
0x18d3   : > { %v9523_v12 = vpop.eup %9522 }
0x18d4   : > { %v4593_v14 = vmul.f32 %v9523_v12, %v4569_v30  ;;  %v4602_v15 = vmul.f32 %v8475_v10, %v4592_v36  ;;  %v4611_v16 = vadd.f32 %v8476_v13, %v4601_v37 }
0x18d6   : > { %v4612_v17 = vadd.f32 %v8476_v13, %v4602_v15  ;;  %v4603_v18 = vmul.f32 %v8475_v10, %v4593_v14 }
0x18d8   : > { %v4628_v19 = vcombine.low %v4611_v16, %v4612_v17  ;;  %v4613_v20 = vadd.f32 %v8476_v13, %v4603_v18 }
0x18da   : > { %9018 = vmatprep.mubr.msk.f32.mxu0 %vm1395_vm1, %v4628_v19 }
0x18db   : > { %9019 = vmatmul.mubr.msk.f32.vlgmr.msra.gmra.mxu0 %vm1395_vm1, %v4613_v20 }
0x18dc   : > { %9041 = vmatpush3.msra.mxu0 %v4885_v6 }
0x18dd   : > { %9042 = vmatprep.subr.mxu0 %v4884_v7 }
0x18de   : > { %9043 = vmatpush3.msra.mxu0 %v4884_v7 }
0x18df   : > { %9044 = vmatprep.subr.mxu0 %v4883_v8 }
0x18e0   : > { %9045 = vmatpush3.msra.mxu0 %v4883_v8 }
0x18e1   : > { %9046 = vmatprep.subr.mxu0 %v4882_v9 }
0x18e2   : > { %9047 = vmatpush3.msra.mxu0 %v4882_v9 }
0x18e3   : > { %9051 = vmatprep.subr.mxu0 %v9909_v0 }
0x199b   : > { %v9020_v34 = vpop.f32.mrf.mxu0 }
0x199c   : > { %v4707_v41 = vadd.f32 %v9020_v34, %v8477_v32 }
0x199d   : > { %v4701_v38 = vpop.f32.mrf.mxu0 }
0x199e   : > { %v4702_v39 = vadd.f32 %v4701_v38, %v4629_v33  ;;  %v4715_v47 = vmax.f32 %v4707_v41, 0.0 }
0x19a0   : > { %v4711_v40 = vcombine.high %v4702_v39, %v4702_v39  ;;  %v4713_v42 = vmax.f32 %v4702_v39, 0.0  ;;  %v8485_v39 = vld [vmem:[%s11283_s25] ss:$0 sm:$0xff]  ;;  %s11292_s25 = sld [smem:[#allocation45_spill]] }
0x19a2   : > { %v4714_v43 = vmax.f32 %v4711_v40, 0.0  ;;  %v4897_v40 = vcombine.low %v8485_v39, %v8485_v39 }
0x19a4   : > { %v4734_v46 = vcombine.low %v4713_v42, %v4714_v43 }
0x19a6   : > { %9037 = vmatprep.mubr.msk.f32.mxu1 %vm4737_vm9, %v4734_v46 }
0x19a7   : > { %9038 = vmatmul.mubr.msk.f32.vlgmr.msra.gmra.mxu1 %vm4737_vm9, %v4715_v47 }
0x19a8   : > { %9058 = vmatprep.mubr.msk.f32.mxu1 %vm9910_vm0, %v9909_v0 }
0x1a67   : > { %v9039_v50 = vpop.f32.mrf.mxu1 }
0x1a68   : > { %v4814_v26 = vadd.f32 %v9039_v50, %v8480_v48 }
0x1a69   : > { %v4808_v51 = vpop.f32.mrf.mxu1 }
0x1a6a   : > { %v4809_v52 = vadd.f32 %v4808_v51, %v4735_v49  ;;  %v4822_v30 = vadd.f32 %v4814_v26, %v4613_v20 }
0x1a6c   : > { %v4818_v53 = vcombine.high %v4809_v52, %v4809_v52  ;;  %v4820_v54 = vadd.f32 %v4809_v52, %v4611_v16  ;;  %v4829_v57 = vsel %vm4553_vm8, %v4822_v30, 0.0 }
0x1a6e   : > { %v4823_v27 = vsel %vm4553_vm8, %v4820_v54, 0.0  ;;  %v4821_v55 = vadd.f32 %v4818_v53, %v4612_v17  ;;  %v8483_v17 = vld [vmem:[%s11281_s12] ss:$0 sm:$0xff]  ;;  %s11294_s12 = sld [smem:[#allocation42_spill]] }
0x1a6f   : > { %4824 = vadd.xlane.f32.xlu1 %v4823_v27 }
0x1a70   : > { %v4826_v56 = vsel %vm4553_vm8, %v4821_v55, 0.0 }
0x1a71   : > { %4827 = vadd.xlane.f32.xlu0 %v4826_v56 }
0x1a73   : > { %4830 = vadd.xlane.f32.xlu1 %v4829_v57 }
0x1af8   : > { %v4825_v58 = vpop.xlane.xlu1 %4824 }
0x1af9   : > { %v4832_v59 = vmul.f32 0.03125, %v4825_v58 }
0x1afa   : > { %v4828_v60 = vpop.xlane.xlu0 %4827 }
0x1afb   : > { %v4835_v61 = vsub.f32 %v4820_v54, %v4832_v59  ;;  %v4833_v25 = vmul.f32 0.03125, %v4828_v60 }
0x1afc   : > { %v4831_v29 = vpop.xlane.xlu1 %4830 }
0x1afd   : > { %v4836_v44 = vsub.f32 %v4821_v55, %v4833_v25  ;;  %v4834_v45 = vmul.f32 0.03125, %v4831_v29  ;;  %v4838_v62 = vmul.f32 %v4835_v61, %v4835_v61 }
0x1aff   : > { %v4837_v63 = vsub.f32 %v4822_v30, %v4834_v45  ;;  %v4841_v1 = vsel %vm4553_vm8, %v4838_v62, 0.0  ;;  %v4839_v2 = vmul.f32 %v4836_v44, %v4836_v44 }
0x1b00   : > { %4842 = vadd.xlane.f32.xlu0 %v4841_v1 }
0x1b01   : > { %v4844_v3 = vsel %vm4553_vm8, %v4839_v2, 0.0  ;;  %v4840_v4 = vmul.f32 %v4837_v63, %v4837_v63 }
0x1b02   : > { %4845 = vadd.xlane.f32.xlu1 %v4844_v3 }
0x1b03   : > { %v4847_v5 = vsel %vm4553_vm8, %v4840_v4, 0.0 }
0x1b04   : > { %4848 = vadd.xlane.f32.xlu0 %v4847_v5 }
0x1b89   : > { %v4843_v10 = vpop.xlane.xlu0 %4842 }
0x1b8a   : > { %v4850_v11 = vmul.f32 0.03125, %v4843_v10 }
0x1b8b   : > { %v4846_v35 = vpop.xlane.xlu1 %4845 }
0x1b8c   : > { %v4853_v36 = vadd.f32 1e-05, %v4850_v11  ;;  %v4851_v37 = vmul.f32 0.03125, %v4846_v35 }
0x1b8d   : > { %v4849_v12 = vpop.xlane.xlu0 %4848 }
0x1b8e   : > { %9524 = vrsqrt.f32 %v4853_v36  ;;  %v4854_v13 = vadd.f32 1e-05, %v4851_v37  ;;  %v4852_v14 = vmul.f32 0.03125, %v4849_v12 }
0x1b90   : > { %9526 = vrsqrt.f32 %v4854_v13  ;;  %v4855_v15 = vadd.f32 1e-05, %v4852_v14 }
0x1b92   : > { %9528 = vrsqrt.f32 %v4855_v15 }
0x1b9b   : > { %v9525_v16 = vpop.eup %9524 }
0x1b9c   : > { %v4859_v18 = vmul.f32 %v9525_v16, %v4835_v61 }
0x1b9d   : > { %v9527_v19 = vpop.eup %9526 }
0x1b9e   : > { %v4860_v20 = vmul.f32 %v9527_v19, %v4836_v44  ;;  %v4869_v21 = vmul.f32 %v8483_v17, %v4859_v18 }
0x1b9f   : > { %v9529_v22 = vpop.eup %9528 }
0x1ba0   : > { %v4861_v24 = vmul.f32 %v9529_v22, %v4837_v63  ;;  %v4870_v28 = vmul.f32 %v8483_v17, %v4860_v20  ;;  %v10761_v31 = vadd.f32 %v8484_v23, %v4869_v21 }
0x1ba2   : > { %v10763_v32 = vadd.f32 %v8484_v23, %v4870_v28  ;;  %v4871_v33 = vmul.f32 %v8483_v17, %v4861_v24 }
0x1ba4   : > { %v4896_v34 = vcombine.low %v10761_v31, %v10763_v32  ;;  %v10767_v38 = vadd.f32 %v8484_v23, %v4871_v33 }
0x1ba6   : > { %9048 = vmatprep.mubr.msk.f32.mxu0 %vm1395_vm1, %v4896_v34 }
0x1ba7   : > { %9049 = vmatmul.mubr.msk.f32.vlgmr.msra.gmra.mxu0 %vm1395_vm1, %v10767_v38 }
0x1ba8   : > { %9053 = vmatprep.mubr.msk.f32.mxu0 %vm9910_vm0, %v9909_v0 }
0x1c67   : > { %v9050_v41 = vpop.f32.mrf.mxu0 }
0x1c68   : > { %v10783_v47 = vadd.f32 %v9050_v41, %v8485_v39 }
0x1c69   : > { %v4969_v42 = vpop.f32.mrf.mxu0 }
0x1c6a   : > { %v10775_v43 = vadd.f32 %v4969_v42, %v4897_v40 }
0x1c6c   : > { %4985 = vrot.lane.b32.xlu1 %v10775_v43, %s9912_s17  ;;  %v10781_v46 = vcombine.high %v10775_v43, %v10775_v43 }
0x1c6e   : > { %5061 = vrot.lane.b32.xlu0 %v10781_v46, %s9912_s17 }
0x1c70   : > { %5137 = vrot.lane.b32.xlu1 %v10783_v47, %s9912_s17  ;;  %s11285_s17 = smov 72  }
0x1cde   : > { %v4986_v48 = vpop.permute.xlu1 %4985 }
0x1cdf   : > { %9052 = vmatpush3.xpose.msk.msra.mxu0 %vm1657_vm4, %v4986_v48 }
0x1ce0   : > { %v5062_v49 = vpop.permute.xlu0 %5061  ;;  %9061 = vmatprep.subr.mxu0 %v9909_v0 }
0x1ce1   : > { %9057 = vmatpush3.xpose.msk.msra.mxu1 %vm1657_vm4, %v5062_v49 }
0x1ce2   : > { %9054 = vmatmul.mubr.msk.f32.vlgmr.msra.gmra.mxu0 %vm1657_vm4, %v10775_v43  ;;  %v5138_v50 = vpop.permute.xlu1 %5137  ;;  %9066 = vmatprep.subr.mxu1 %v9909_v0 }
0x1ce3   : > { %9062 = vmatpush3.xpose.msk.msra.mxu0 %vm1657_vm4, %v5138_v50  ;;  %9063 = vmatprep.mubr.msk.f32.mxu0 %vm9910_vm0, %v9909_v0 }
0x1ce4   : > { %9059 = vmatmul.mubr.msk.f32.vlgmr.msra.gmra.mxu1 %vm1657_vm4, %v10781_v46  ;;  %9071 = vmatprep.subr.mxu0 %v9909_v0 }
0x1ce5   : > { %9068 = vmatprep.mubr.msk.f32.mxu1 %vm9910_vm0, %v9909_v0 }
0x1ce6   : > { %9064 = vmatmul.mubr.msk.f32.vlgmr.msra.gmra.mxu0 %vm1657_vm4, %v10783_v47 }
0x1ce7   : > { %9073 = vmatprep.mubr.msk.f32.mxu0 %vm9910_vm0, %v9909_v0 }
0x1da2   : > { %v5057_v51 = vpop.f32.mrf.mxu0 }
0x1da3   : > { %v5213_v26 = vmul.f32 0.35355338, %v5057_v51 }
0x1da4   : > { %v9055_v52 = vpop.f32.mrf.mxu0  ;;  %v5133_v53 = vpop.f32.mrf.mxu1 }
0x1da5   : > { %v5214_v54 = vmul.f32 0.35355338, %v5133_v53  ;;  %v5216_v27 = vsel %vm2423_vm5, %v5213_v26, -inf }
0x1da6   : > { %5217 = vmax.xlane.f32.xlu1 %v5216_v27  ;;  %v9060_v55 = vpop.f32.mrf.mxu1  ;;  %v5209_v30 = vpop.f32.mrf.mxu0 }
0x1da7   : > { %v5215_v56 = vmul.f32 0.35355338, %v5209_v30  ;;  %v5219_v57 = vsel %vm2423_vm5, %v5214_v54, -inf }
0x1da8   : > { %v9065_v58 = vpop.f32.mrf.mxu0  ;;  %5220 = vmax.xlane.f32.xlu0 %v5219_v57 }
0x1da9   : > { %v5222_v59 = vsel %vm2423_vm5, %v5215_v56, -inf }
0x1dac   : > { %5223 = vmax.xlane.f32.xlu0 %v5222_v59 }
0x1db7   : > { %5326 = vrot.lane.b32.xlu1 %v10781_v46, %s9911_s2 }
0x1dbb   : > { %5403 = vrot.lane.b32.xlu1 %v10783_v47, %s9911_s2 }
0x1dbf   : > { %5560 = vrot.lane.b32.xlu1 %v10781_v46, %s9913_s0 }
0x1dc2   : > { %5249 = vrot.lane.b32.xlu0 %v10775_v43, %s9911_s2  ;;  %s11284_s2 = sld [smem:[#allocation39_spill]] }
0x1dc6   : > { %5482 = vrot.lane.b32.xlu0 %v10775_v43, %s9913_s0 }
0x1e2f   : > { %v5218_v60 = vpop.xlane.xlu1 %5217 }
0x1e30   : > { %v5225_v61 = vsub.f32 %v5213_v26, %v5218_v60 }
0x1e31   : > { %v5221_v25 = vpop.xlane.xlu0 %5220 }
0x1e32   : > { %v5228_v29 = vmul.f32 1.442695, %v5225_v61  ;;  %v5226_v44 = vsub.f32 %v5214_v54, %v5221_v25 }
0x1e33   : > { %v5327_v45 = vpop.permute.xlu1 %5326 }
0x1e34   : > { %9530 = vpow2.f32 %v5228_v29  ;;  %v5230_v62 = vmul.f32 1.442695, %v5226_v44  ;;  %9072 = vmatpush3.msk.msra.mxu0 %vm2463_vm6, %v5327_v45 }
0x1e35   : > { %v5224_v63 = vpop.xlane.xlu0 %5223  ;;  %9081 = vmatprep.subr.mxu0 %v9909_v0 }
0x1e36   : > { %9532 = vpow2.f32 %v5230_v62  ;;  %v5227_v6 = vsub.f32 %v5215_v56, %v5224_v63 }
0x1e37   : > { %v5404_v10 = vpop.permute.xlu1 %5403 }
0x1e38   : > { %v5232_v7 = vmul.f32 1.442695, %v5227_v6 }
0x1e39   : > { %v5250_v1 = vpop.permute.xlu0 %5249 }
0x1e3a   : > { %9067 = vmatpush3.msk.msra.mxu1 %vm2463_vm6, %v5250_v1  ;;  %9534 = vpow2.f32 %v5232_v7 }
0x1e3b   : > { %9076 = vmatprep.subr.mxu1 %v9909_v0  ;;  %v5561_v11 = vpop.permute.xlu1 %5560 }
0x1e3d   : > { %v5483_v35 = vpop.permute.xlu0 %5482 }
0x1e41   : > { %v9531_v2 = vpop.eup %9530 }
0x1e42   : > { %v5234_v3 = vsel %vm2423_vm5, %v9531_v2, 0.0 }
0x1e43   : > { %v9533_v4 = vpop.eup %9532  ;;  %5235 = vadd.xlane.f32.xlu1 %v5234_v3 }
0x1e44   : > { %v5237_v5 = vsel %vm2423_vm5, %v9533_v4, 0.0 }
0x1e45   : > { %5238 = vadd.xlane.f32.xlu0 %v5237_v5 }
0x1e47   : > { %v9535_v8 = vpop.eup %9534 }
0x1e48   : > { %v5240_v9 = vsel %vm2423_vm5, %v9535_v8, 0.0 }
0x1e54   : > { %5558 = vrot.lane.b32.xlu1 %v10781_v46, %s9914_s1 }
0x1e5b   : > { %5480 = vrot.lane.b32.xlu0 %v10775_v43, %s9914_s1 }
0x1e5f   : > { %5638 = vrot.lane.b32.xlu0 %v10783_v47, %s9913_s0  ;;  %s11286_s0 = smov 104  }
0x1e78   : > { %5241 = vadd.xlane.f32.xlu1 %v5240_v9 }
0x1e89   : > { %5636 = vrot.lane.b32.xlu1 %v10783_v47, %s9914_s1  ;;  %s11287_s1 = smov 40  }
0x1ecc   : > { %v5236_v36 = vpop.xlane.xlu1 %5235 }
0x1ecd   : > { %9536 = vrcp.f32 %v5236_v36 }
0x1ece   : > { %v5239_v37 = vpop.xlane.xlu0 %5238 }
0x1ecf   : > { %9538 = vrcp.f32 %v5239_v37 }
0x1ed0   : > { %v5559_v18 = vpop.permute.xlu1 %5558 }
0x1ed2   : > { %v5481_v15 = vpop.permute.xlu0 %5480 }
0x1ed6   : > { %v5639_v17 = vpop.permute.xlu0 %5638 }
0x1eda   : > { %v9537_v12 = vpop.eup %9536 }
0x1edb   : > { %v5246_v13 = vmul.f32 %v9537_v12, %v9531_v2 }
0x1edc   : > { %v9539_v14 = vpop.eup %9538 }
0x1edd   : > { %9069 = vmatmul.mubr.msk.f32.vlgmr.msra.gmra.mxu1 %vm2459_vm7, %v5246_v13  ;;  %v5247_v16 = vmul.f32 %v9539_v14, %v9533_v4 }
0x1ede   : > { %9077 = vmatpush3.msk.msra.mxu1 %vm2463_vm6, %v5404_v10  ;;  %9078 = vmatprep.mubr.msk.f32.mxu1 %vm9910_vm0, %v9909_v0 }
0x1edf   : > { %9074 = vmatmul.mubr.msk.f32.vlgmr.msra.gmra.mxu0 %vm2459_vm7, %v5247_v16  ;;  %9086 = vmatprep.subr.mxu1 %v9909_v0 }
0x1ee0   : > { %9082 = vmatpush3.xpose.msk.msra.mxu0 %vm1657_vm4, %v5483_v35  ;;  %9083 = vmatprep.mubr.msk.f32.mxu0 %vm9910_vm0, %v9909_v0 }
0x1ee1   : > { %9091 = vmatprep.subr.mxu0 %v9909_v0 }
0x1ee3   : > { %9084 = vmatmul.mubr.msk.f32.vlgmr.msra.gmra.mxu0 %vm1657_vm4, %v5481_v15  ;;  %v4982_v15 = vld [vmem:[%s11284_s2 + $0x8] sm:$0xff] }
0x1ee4   : > { %9092 = vmatpush3.xpose.msk.msra.mxu0 %vm1657_vm4, %v5639_v17  ;;  %9093 = vmatprep.mubr.msk.f32.mxu0 %vm9910_vm0, %v9909_v0 }
0x1ee5   : > { %9101 = vmatprep.subr.mxu0 %v9909_v0 }
0x1f01   : > { %v5242_v19 = vpop.xlane.xlu1 %5241 }
0x1f02   : > { %9540 = vrcp.f32 %v5242_v19 }
0x1f05   : > { %v5637_v20 = vpop.permute.xlu1 %5636 }
0x1f06   : > { %9094 = vmatmul.mubr.msk.f32.vlgmr.msra.gmra.mxu0 %vm1657_vm4, %v5637_v20 }
0x1f07   : > { %9103 = vmatprep.mubr.msk.f32.mxu0 %vm9910_vm0, %v9909_v0 }
0x1f0f   : > { %v9541_v21 = vpop.eup %9540 }
0x1f10   : > { %v5248_v22 = vmul.f32 %v9541_v21, %v9535_v8 }
0x1f12   : > { %9079 = vmatmul.mubr.msk.f32.vlgmr.msra.gmra.mxu1 %vm2459_vm7, %v5248_v22 }
0x1f13   : > { %9087 = vmatpush3.xpose.msk.msra.mxu1 %vm1657_vm4, %v5561_v11  ;;  %9088 = vmatprep.mubr.msk.f32.mxu1 %vm9910_vm0, %v9909_v0  ;;  %v4981_v11 = vld [vmem:[%s11284_s2] sm:$0xff] }
0x1f14   : > { %9096 = vmatprep.subr.mxu1 %v9909_v0 }
0x1f16   : > { %9089 = vmatmul.mubr.msk.f32.vlgmr.msra.gmra.mxu1 %vm1657_vm4, %v5559_v18 }
0x1f17   : > { %9098 = vmatprep.mubr.msk.f32.mxu1 %vm9910_vm0, %v9909_v0 }
0x1f9d   : > { %v10861_v23 = vpop.f32.mrf.mxu1 }
0x1f9f   : > { %v9070_v24 = vpop.f32.mrf.mxu1  ;;  %v10863_v28 = vpop.f32.mrf.mxu0 }
0x1fa0   : > { %v6067_v33 = vcombine.low %v10861_v23, %v10863_v28 }
0x1fa1   : > { %v9075_v34 = vpop.f32.mrf.mxu0 }
0x1fa3   : > { %v5554_v39 = vpop.f32.mrf.mxu0 }
0x1fa4   : > { %v5714_v40 = vmul.f32 0.35355338, %v5554_v39 }
0x1fa5   : > { %v9085_v41 = vpop.f32.mrf.mxu0 }
0x1fa6   : > { %v5717_v42 = vsel %vm2423_vm5, %v5714_v40, -inf }
0x1fa7   : > { %5718 = vmax.xlane.f32.xlu0 %v5717_v42 }
0x1fc6   : > { %v5710_v48 = vpop.f32.mrf.mxu0 }
0x1fc7   : > { %v5716_v49 = vmul.f32 0.35355338, %v5710_v48 }
0x1fc8   : > { %v9095_v50 = vpop.f32.mrf.mxu0 }
0x1fc9   : > { %v5723_v51 = vsel %vm2423_vm5, %v5716_v49, -inf }
0x1fca   : > { %5724 = vmax.xlane.f32.xlu0 %v5723_v51 }
0x1fd2   : > { %v10869_v26 = vpop.f32.mrf.mxu1 }
0x1fd4   : > { %v9080_v52 = vpop.f32.mrf.mxu1 }
0x1fd6   : > { %v5632_v53 = vpop.f32.mrf.mxu1 }
0x1fd7   : > { %v5715_v54 = vmul.f32 0.35355338, %v5632_v53 }
0x1fd8   : > { %v9090_v27 = vpop.f32.mrf.mxu1 }
0x1fd9   : > { %v5720_v55 = vsel %vm2423_vm5, %v5715_v54, -inf }
0x1fda   : > { %5721 = vmax.xlane.f32.xlu1 %v5720_v55 }
0x1feb   : > { %5750 = vrot.lane.b32.xlu1 %v10775_v43, %s9915_s20 }
0x2030   : > { %v5719_v30 = vpop.xlane.xlu0 %5718 }
0x2031   : > { %v5726_v56 = vsub.f32 %v5714_v40, %v5719_v30 }
0x2033   : > { %v5729_v57 = vmul.f32 1.442695, %v5726_v56 }
0x2035   : > { %9542 = vpow2.f32 %v5729_v57 }
0x2042   : > { %v9543_v58 = vpop.eup %9542 }
0x2043   : > { %v5735_v59 = vsel %vm2423_vm5, %v9543_v58, 0.0 }
0x2044   : > { %5736 = vadd.xlane.f32.xlu0 %v5735_v59 }
0x2053   : > { %v5725_v60 = vpop.xlane.xlu0 %5724 }
0x2054   : > { %v5728_v61 = vsub.f32 %v5716_v49, %v5725_v60 }
0x2056   : > { %v5733_v25 = vmul.f32 1.442695, %v5728_v61 }
0x2058   : > { %9544 = vpow2.f32 %v5733_v25 }
0x2063   : > { %v5722_v29 = vpop.xlane.xlu1 %5721 }
0x2064   : > { %v5727_v44 = vsub.f32 %v5715_v54, %v5722_v29 }
0x2065   : > { %v9545_v45 = vpop.eup %9544 }
0x2066   : > { %v5731_v62 = vmul.f32 1.442695, %v5727_v44  ;;  %v5741_v63 = vsel %vm2423_vm5, %v9545_v45, 0.0 }
0x2067   : > { %5742 = vadd.xlane.f32.xlu0 %v5741_v63  ;;  %v5751_v1 = vpop.permute.xlu1 %5750 }
0x2068   : > { %9546 = vpow2.f32 %v5731_v62  ;;  %9097 = vmatpush3.msk.msra.mxu1 %vm2463_vm6, %v5751_v1 }
0x2069   : > { %9106 = vmatprep.subr.mxu1 %v9909_v0 }
0x2075   : > { %v9547_v2 = vpop.eup %9546 }
0x2076   : > { %v5738_v3 = vsel %vm2423_vm5, %v9547_v2, 0.0 }
0x2077   : > { %5739 = vadd.xlane.f32.xlu1 %v5738_v3 }
0x207d   : > { %5827 = vrot.lane.b32.xlu0 %v10781_v46, %s9915_s20 }
0x2081   : > { %6230 = vrot.lane.b32.xlu0 %v10781_v46, %s9916_s18 }
0x2085   : > { %6228 = vrot.lane.b32.xlu0 %v10781_v46, %s9917_s23 }
0x2088   : > { %5904 = vrot.lane.b32.xlu1 %v10783_v47, %s9915_s20  ;;  %s11288_s20 = sld [smem:[#allocation40_spill]] }
0x2089   : > { %6306 = vrot.lane.b32.xlu0 %v10783_v47, %s9917_s23 }
0x208c   : > { %6152 = vrot.lane.b32.xlu1 %v10775_v43, %s9916_s18 }
0x2090   : > { %6150 = vrot.lane.b32.xlu1 %v10775_v43, %s9917_s23 }
0x2094   : > { %6308 = vrot.lane.b32.xlu1 %v10783_v47, %s9916_s18  ;;  %s11289_s18 = sld [smem:[#allocation41_spill]] }
0x209a   : > { %s11290_s23 = smov %s11289_s18 }
0x20cd   : > { %v5737_v4 = vpop.xlane.xlu0 %5736 }
0x20ce   : > { %9548 = vrcp.f32 %v5737_v4 }
0x20db   : > { %v9549_v5 = vpop.eup %9548 }
0x20dc   : > { %v5747_v6 = vmul.f32 %v9549_v5, %v9543_v58 }
0x20de   : > { %9099 = vmatmul.mubr.msk.f32.vlgmr.msra.gmra.mxu1 %vm2459_vm7, %v5747_v6 }
0x20df   : > { %9108 = vmatprep.mubr.msk.f32.mxu1 %vm9910_vm0, %v9909_v0 }
0x20f0   : > { %v5743_v7 = vpop.xlane.xlu0 %5742 }
0x20f1   : > { %9550 = vrcp.f32 %v5743_v7 }
0x20f4   : > { %v5828_v8 = vpop.permute.xlu0 %5827 }
0x20f5   : > { %9102 = vmatpush3.msk.msra.mxu0 %vm2463_vm6, %v5828_v8 }
0x20f6   : > { %9111 = vmatprep.subr.mxu0 %v4982_v15 }
0x20f8   : > { %v6231_v37 = vpop.permute.xlu0 %6230 }
0x20fc   : > { %v6229_v12 = vpop.permute.xlu0 %6228 }
0x20fe   : > { %v9551_v10 = vpop.eup %9550 }
0x20ff   : > { %v5749_v36 = vmul.f32 %v9551_v10, %v9545_v45 }
0x2100   : > { %v5740_v9 = vpop.xlane.xlu1 %5739  ;;  %v6307_v48 = vpop.permute.xlu0 %6306 }
0x2101   : > { %9552 = vrcp.f32 %v5740_v9 }
0x2104   : > { %v5905_v35 = vpop.permute.xlu1 %5904 }
0x2105   : > { %9107 = vmatpush3.msk.msra.mxu1 %vm2463_vm6, %v5905_v35 }
0x2106   : > { %9109 = vmatmul.mubr.msk.f32.vlgmr.msra.gmra.mxu1 %vm2459_vm7, %v5749_v36  ;;  %9116 = vmatprep.subr.mxu1 %v4981_v11 }
0x2107   : > { %9118 = vmatprep.mubr.msk.f32.mxu1 %vm1657_vm4, %v6067_v33  ;;  %9117 = vmatpush3.msra.mxu1 %v4981_v11 }
0x2108   : > { %9126 = vmatprep.subr.mxu1 %v9909_v0  ;;  %v6153_v22 = vpop.permute.xlu1 %6152 }
0x210a   : > { %9119 = vmatmul.mubr.msk.f32.vlgmr.msra.gmra.mxu1 %vm1657_vm4, %v10869_v26 }
0x210b   : > { %9127 = vmatpush3.xpose.msk.msra.mxu1 %vm1657_vm4, %v6231_v37  ;;  %9128 = vmatprep.mubr.msk.f32.mxu1 %vm9910_vm0, %v9909_v0 }
0x210c   : > { %9136 = vmatprep.subr.mxu1 %v9909_v0  ;;  %v6151_v40 = vpop.permute.xlu1 %6150 }
0x210e   : > { %v9553_v13 = vpop.eup %9552  ;;  %9129 = vmatmul.mubr.msk.f32.vlgmr.msra.gmra.mxu1 %vm1657_vm4, %v6229_v12 }
0x210f   : > { %v5748_v14 = vmul.f32 %v9553_v13, %v9547_v2  ;;  %9138 = vmatprep.mubr.msk.f32.mxu1 %vm9910_vm0, %v9909_v0 }
0x2110   : > { %v6309_v42 = vpop.permute.xlu1 %6308 }
0x2111   : > { %9104 = vmatmul.mubr.msk.f32.vlgmr.msra.gmra.mxu0 %vm2459_vm7, %v5748_v14 }
0x2112   : > { %9112 = vmatpush3.msra.mxu0 %v4982_v15 }
0x2113   : > { %9121 = vmatprep.subr.mxu0 %v9909_v0 }
0x219e   : > { %v5823_v16 = vpop.f32.mrf.mxu1 }
0x21a0   : > { %v9100_v17 = vpop.f32.mrf.mxu1 }
0x21c6   : > { %v5977_v18 = vpop.f32.mrf.mxu1 }
0x21c8   : > { %v9110_v19 = vpop.f32.mrf.mxu1 }
0x21ca   : > { %v10919_v20 = vpop.f32.mrf.mxu1 }
0x21cc   : > { %v10921_v21 = vpop.f32.mrf.mxu1 }
0x21ce   : > { %v6302_v23 = vpop.f32.mrf.mxu1 }
0x21cf   : > { %v6385_v24 = vmul.f32 0.35355338, %v6302_v23  ;;  %v4983_v23 = vld [vmem:[%s11284_s2 + $0x10] sm:$0xff] }
0x21d0   : > { %v9130_v28 = vpop.f32.mrf.mxu1 }
0x21d1   : > { %v5900_v33 = vpop.f32.mrf.mxu0  ;;  %v6390_v34 = vsel %vm2423_vm5, %v6385_v24, -inf }
0x21d2   : > { %v5984_v39 = vcombine.low %v5823_v16, %v5900_v33  ;;  %6391 = vmax.xlane.f32.xlu0 %v6390_v34 }
0x21d3   : > { %v9105_v41 = vpop.f32.mrf.mxu0 }
0x21d4   : > { %9113 = vmatprep.mubr.msk.f32.mxu0 %vm1657_vm4, %v5984_v39 }
0x21d5   : > { %9114 = vmatmul.mubr.msk.f32.vlgmr.msra.gmra.mxu0 %vm1657_vm4, %v5977_v18 }
0x21d6   : > { %9122 = vmatpush3.xpose.msk.msra.mxu0 %vm1657_vm4, %v6153_v22  ;;  %9123 = vmatprep.mubr.msk.f32.mxu0 %vm9910_vm0, %v9909_v0 }
0x21d7   : > { %9131 = vmatprep.subr.mxu0 %v9909_v0 }
0x21d9   : > { %9124 = vmatmul.mubr.msk.f32.vlgmr.msra.gmra.mxu0 %vm1657_vm4, %v6151_v40 }
0x21da   : > { %9132 = vmatpush3.xpose.msk.msra.mxu0 %vm1657_vm4, %v6309_v42  ;;  %9133 = vmatprep.mubr.msk.f32.mxu0 %vm9910_vm0, %v9909_v0 }
0x21db   : > { %9141 = vmatprep.subr.mxu0 %v9909_v0 }
0x21dd   : > { %9134 = vmatmul.mubr.msk.f32.vlgmr.msra.gmra.mxu0 %vm1657_vm4, %v6307_v48 }
0x21de   : > { %9143 = vmatprep.mubr.msk.f32.mxu0 %vm9910_vm0, %v9909_v0 }
0x225b   : > { %v6392_v49 = vpop.xlane.xlu0 %6391 }
0x225c   : > { %v6397_v50 = vsub.f32 %v6385_v24, %v6392_v49 }
0x225e   : > { %v6401_v51 = vmul.f32 1.442695, %v6397_v50 }
0x2260   : > { %9554 = vpow2.f32 %v6401_v51 }
0x226d   : > { %v9555_v59 = vpop.eup %9554 }
0x226e   : > { %v6408_v60 = vsel %vm2423_vm5, %v9555_v59, 0.0 }
0x2295   : > { %v10938_v26 = vpop.f32.mrf.mxu0 }
0x2297   : > { %v10940_v52 = vpop.f32.mrf.mxu0 }
0x2299   : > { %v6224_v53 = vpop.f32.mrf.mxu0 }
0x229a   : > { %v6384_v54 = vmul.f32 0.35355338, %v6224_v53 }
0x229b   : > { %v9125_v27 = vpop.f32.mrf.mxu0 }
0x229c   : > { %v6387_v55 = vsel %vm2423_vm5, %v6384_v54, -inf }
0x229d   : > { %6388 = vmax.xlane.f32.xlu1 %v6387_v55  ;;  %v6380_v30 = vpop.f32.mrf.mxu0 }
0x229e   : > { %v6386_v56 = vmul.f32 0.35355338, %v6380_v30 }
0x229f   : > { %v9135_v57 = vpop.f32.mrf.mxu0 }
0x22a0   : > { %v6393_v58 = vsel %vm2423_vm5, %v6386_v56, -inf }
0x22a1   : > { %6394 = vmax.xlane.f32.xlu0 %v6393_v58 }
0x22a5   : > { %6409 = vadd.xlane.f32.xlu0 %v6408_v60 }
0x22ae   : > { %6497 = vrot.lane.b32.xlu1 %v10781_v46, %s9918_s11 }
0x22bb   : > { %6420 = vrot.lane.b32.xlu0 %v10775_v43, %s9918_s11 }
0x22bf   : > { %6742 = vrot.lane.b32.xlu0 %v10775_v43, %s11285_s17 }
0x22c3   : > { %6740 = vrot.lane.b32.xlu0 %v10775_v43, %s11286_s0 }
0x22c7   : > { %6898 = vrot.lane.b32.xlu0 %v10783_v47, %s11285_s17 }
0x2326   : > { %v6389_v61 = vpop.xlane.xlu1 %6388 }
0x2327   : > { %v6396_v25 = vsub.f32 %v6384_v54, %v6389_v61 }
0x2329   : > { %v6399_v29 = vmul.f32 1.442695, %v6396_v25  ;;  %v6144_v25 = vadd.f32 %v10919_v20, %v10938_v26 }
0x232a   : > { %v6498_v44 = vpop.permute.xlu1 %6497  ;;  %v6395_v45 = vpop.xlane.xlu0 %6394 }
0x232b   : > { %9556 = vpow2.f32 %v6399_v29  ;;  %v6398_v62 = vsub.f32 %v6386_v56, %v6395_v45  ;;  %9142 = vmatpush3.msk.msra.mxu0 %vm2463_vm6, %v6498_v44  ;;  %v6139_v29 = vadd.f32 %v10921_v21, %v10940_v52 }
0x232c   : > { %9151 = vmatprep.subr.mxu0 %v4983_v23 }
0x232d   : > { %v6403_v63 = vmul.f32 1.442695, %v6398_v62 }
0x232e   : > { %v6410_v1 = vpop.xlane.xlu0 %6409 }
0x232f   : > { %9558 = vpow2.f32 %v6403_v63  ;;  %v6148_v63 = vcombine.high %v6139_v29, %v6139_v29 }
0x2330   : > { %9560 = vrcp.f32 %v6410_v1 }
0x2332   : > { %v6421_v2 = vpop.permute.xlu0 %6420 }
0x2333   : > { %9137 = vmatpush3.msk.msra.mxu1 %vm2463_vm6, %v6421_v2 }
0x2334   : > { %9146 = vmatprep.subr.mxu1 %v9909_v0 }
0x2336   : > { %v6743_v35 = vpop.permute.xlu0 %6742 }
0x2338   : > { %v9557_v3 = vpop.eup %9556 }
0x2339   : > { %v6405_v4 = vsel %vm2423_vm5, %v9557_v3, 0.0 }
0x233a   : > { %6406 = vadd.xlane.f32.xlu1 %v6405_v4  ;;  %v6741_v14 = vpop.permute.xlu0 %6740 }
0x233c   : > { %v9559_v5 = vpop.eup %9558 }
0x233d   : > { %v9561_v6 = vpop.eup %9560  ;;  %v6411_v7 = vsel %vm2423_vm5, %v9559_v5, 0.0 }
0x233e   : > { %6412 = vadd.xlane.f32.xlu1 %v6411_v7  ;;  %v6418_v8 = vmul.f32 %v9561_v6, %v9555_v59  ;;  %v6899_v17 = vpop.permute.xlu0 %6898 }
0x2340   : > { %9144 = vmatmul.mubr.msk.f32.vlgmr.msra.gmra.mxu0 %vm2459_vm7, %v6418_v8 }
0x2341   : > { %9152 = vmatpush3.msra.mxu0 %v4983_v23 }
0x2342   : > { %9161 = vmatprep.subr.mxu0 %v9909_v0 }
0x234f   : > { %6574 = vrot.lane.b32.xlu1 %v10783_v47, %s9918_s11  ;;  %s11291_s11 = sld [smem:[#allocation43_spill]] }
0x2353   : > { %6820 = vrot.lane.b32.xlu1 %v10781_v46, %s11285_s17  ;;  %s11295_s17 = sld [smem:[#allocation44_spill]] }
0x2357   : > { %6818 = vrot.lane.b32.xlu1 %v10781_v46, %s11286_s0 }
0x235b   : > { %6896 = vrot.lane.b32.xlu1 %v10783_v47, %s11286_s0  ;;  %s11296_s0 = sld [smem:[#allocation49_spill]] }
0x23c3   : > { %v6407_v9 = vpop.xlane.xlu1 %6406 }
0x23c4   : > { %9562 = vrcp.f32 %v6407_v9 }
0x23c7   : > { %v6413_v10 = vpop.xlane.xlu1 %6412 }
0x23c8   : > { %9564 = vrcp.f32 %v6413_v10 }
0x23cb   : > { %v6575_v11 = vpop.permute.xlu1 %6574 }
0x23cf   : > { %v6821_v12 = vpop.permute.xlu1 %6820 }
0x23d1   : > { %v9563_v36 = vpop.eup %9562 }
0x23d2   : > { %v6417_v37 = vmul.f32 %v9563_v36, %v9557_v3 }
0x23d3   : > { %v6819_v16 = vpop.permute.xlu1 %6818 }
0x23d4   : > { %9139 = vmatmul.mubr.msk.f32.vlgmr.msra.gmra.mxu1 %vm2459_vm7, %v6417_v37 }
0x23d5   : > { %v9565_v13 = vpop.eup %9564  ;;  %9147 = vmatpush3.msk.msra.mxu1 %vm2463_vm6, %v6575_v11  ;;  %9148 = vmatprep.mubr.msk.f32.mxu1 %vm9910_vm0, %v9909_v0 }
0x23d6   : > { %9156 = vmatprep.subr.mxu1 %v9909_v0  ;;  %v6419_v15 = vmul.f32 %v9565_v13, %v9559_v5 }
0x23d7   : > { %v6897_v18 = vpop.permute.xlu1 %6896 }
0x23d8   : > { %9149 = vmatmul.mubr.msk.f32.vlgmr.msra.gmra.mxu1 %vm2459_vm7, %v6419_v15 }
0x23d9   : > { %9157 = vmatpush3.xpose.msk.msra.mxu1 %vm1657_vm4, %v6743_v35  ;;  %9158 = vmatprep.mubr.msk.f32.mxu1 %vm9910_vm0, %v9909_v0 }
0x23da   : > { %9166 = vmatprep.subr.mxu1 %v9909_v0 }
0x23dc   : > { %9159 = vmatmul.mubr.msk.f32.vlgmr.msra.gmra.mxu1 %vm1657_vm4, %v6741_v14 }
0x23dd   : > { %9167 = vmatpush3.xpose.msk.msra.mxu1 %vm1657_vm4, %v6899_v17  ;;  %9168 = vmatprep.mubr.msk.f32.mxu1 %vm9910_vm0, %v9909_v0 }
0x23de   : > { %9176 = vmatprep.subr.mxu1 %v9909_v0 }
0x23e0   : > { %9169 = vmatmul.mubr.msk.f32.vlgmr.msra.gmra.mxu1 %vm1657_vm4, %v6897_v18  ;;  %v4984_v18 = vld [vmem:[%s11284_s2 + $0x18] sm:$0xff] }
0x23e1   : > { %9178 = vmatprep.mubr.msk.f32.mxu1 %vm9910_vm0, %v9909_v0 }
0x2400   : > { %v6570_v19 = vpop.f32.mrf.mxu0 }
0x2402   : > { %v9145_v22 = vpop.f32.mrf.mxu0 }
0x2494   : > { %v6493_v24 = vpop.f32.mrf.mxu1 }
0x2495   : > { %v6654_v28 = vcombine.low %v6493_v24, %v6570_v19 }
0x2496   : > { %v9140_v33 = vpop.f32.mrf.mxu1 }
0x2497   : > { %9153 = vmatprep.mubr.msk.f32.mxu0 %vm1657_vm4, %v6654_v28 }
0x2498   : > { %v6647_v34 = vpop.f32.mrf.mxu1 }
0x2499   : > { %9154 = vmatmul.mubr.msk.f32.vlgmr.msra.gmra.mxu0 %vm1657_vm4, %v6647_v34 }
0x249a   : > { %9162 = vmatpush3.xpose.msk.msra.mxu0 %vm1657_vm4, %v6821_v12  ;;  %v9150_v39 = vpop.f32.mrf.mxu1  ;;  %9163 = vmatprep.mubr.msk.f32.mxu0 %vm9910_vm0, %v9909_v0 }
0x249b   : > { %9171 = vmatprep.subr.mxu0 %v9909_v0 }
0x249c   : > { %v6814_v40 = vpop.f32.mrf.mxu1 }
0x249d   : > { %v6974_v41 = vmul.f32 0.35355338, %v6814_v40  ;;  %9164 = vmatmul.mubr.msk.f32.vlgmr.msra.gmra.mxu0 %vm1657_vm4, %v6819_v16 }
0x249e   : > { %v9160_v42 = vpop.f32.mrf.mxu1  ;;  %9173 = vmatprep.mubr.msk.f32.mxu0 %vm9910_vm0, %v9909_v0 }
0x249f   : > { %v6977_v48 = vsel %vm2423_vm5, %v6974_v41, -inf }
0x24a0   : > { %6978 = vmax.xlane.f32.xlu0 %v6977_v48  ;;  %v6970_v49 = vpop.f32.mrf.mxu1 }
0x24a1   : > { %v6976_v50 = vmul.f32 0.35355338, %v6970_v49 }
0x24a2   : > { %v9170_v51 = vpop.f32.mrf.mxu1 }
0x24a3   : > { %v6983_v53 = vsel %vm2423_vm5, %v6976_v50, -inf }
0x24a4   : > { %6984 = vmax.xlane.f32.xlu0 %v6983_v53 }
0x2529   : > { %v6979_v54 = vpop.xlane.xlu0 %6978 }
0x252a   : > { %v6986_v27 = vsub.f32 %v6974_v41, %v6979_v54  ;;  %v8544_v41 = vld [vmem:[%s11288_s20] ss:$0 sm:$0xff]  ;;  %s11298_s20 = sld [smem:[#allocation48_spill]] }
0x252c   : > { %v6989_v55 = vmul.f32 1.442695, %v6986_v27 }
0x252d   : > { %v6985_v30 = vpop.xlane.xlu0 %6984 }
0x252e   : > { %9566 = vpow2.f32 %v6989_v55  ;;  %v6988_v56 = vsub.f32 %v6976_v50, %v6985_v30 }
0x2530   : > { %v6993_v57 = vmul.f32 1.442695, %v6988_v56 }
0x2532   : > { %9568 = vpow2.f32 %v6993_v57 }
0x253b   : > { %v9567_v58 = vpop.eup %9566 }
0x253c   : > { %v6995_v59 = vsel %vm2423_vm5, %v9567_v58, 0.0 }
0x253d   : > { %6996 = vadd.xlane.f32.xlu0 %v6995_v59 }
0x253f   : > { %v9569_v60 = vpop.eup %9568 }
0x2540   : > { %v7001_v61 = vsel %vm2423_vm5, %v9569_v60, 0.0 }
0x2541   : > { %7002 = vadd.xlane.f32.xlu0 %v7001_v61 }
0x2557   : > { %7087 = vrot.lane.b32.xlu0 %v10781_v46, %s11287_s1 }
0x2559   : > { %v9155_v44 = vpop.f32.mrf.mxu0 }
0x255a   : > { %v6739_v45 = vadd.f32 %v9155_v44, %v6144_v25 }
0x255b   : > { %v6725_v62 = vpop.f32.mrf.mxu0 }
0x255c   : > { %v6735_v1 = vcombine.high %v6725_v62, %v6725_v62  ;;  %v6737_v2 = vadd.f32 %v6725_v62, %v6139_v29 }
0x255d   : > { %v6892_v3 = vpop.f32.mrf.mxu0 }
0x255e   : > { %v6738_v4 = vadd.f32 %v6735_v1, %v6148_v63  ;;  %v6975_v5 = vmul.f32 0.35355338, %v6892_v3  ;;  %v7405_v1 = vld [vmem:[%s11289_s18 + $0x18] sm:$0xff]  ;;  %v7403_v3 = vld [vmem:[%s11290_s23 + $0x8] sm:$0xff]  ;;  %s11299_s18 = sld [smem:[#allocation51_spill]] }
0x255f   : > { %v9165_v6 = vpop.f32.mrf.mxu0 }
0x2560   : > { %v6980_v7 = vsel %vm2423_vm5, %v6975_v5, -inf  ;;  %v7510_v6 = vld [vmem:[%s11291_s11 + $0x30] sm:$0xff] }
0x2561   : > { %6981 = vmax.xlane.f32.xlu1 %v6980_v7 }
0x2572   : > { %7010 = vrot.lane.b32.xlu1 %v10775_v43, %s11287_s1 }
0x25c6   : > { %v6997_v46 = vpop.xlane.xlu0 %6996 }
0x25c7   : > { %9570 = vrcp.f32 %v6997_v46 }
0x25ca   : > { %v7003_v20 = vpop.xlane.xlu0 %7002 }
0x25ce   : > { %v7088_v26 = vpop.permute.xlu0 %7087 }
0x25cf   : > { %9177 = vmatpush3.msk.msra.mxu1 %vm2463_vm6, %v7088_v26 }
0x25d0   : > { %9186 = vmatprep.subr.mxu1 %v4984_v18 }
0x25d4   : > { %v9571_v52 = vpop.eup %9570 }
0x25d5   : > { %v7007_v11 = vmul.f32 %v9571_v52, %v9567_v58 }
0x25ea   : > { %v6982_v21 = vpop.xlane.xlu1 %6981 }
0x25eb   : > { %v6987_v8 = vsub.f32 %v6975_v5, %v6982_v21  ;;  %v7511_v5 = vld [vmem:[%s11291_s11 + $0x38] sm:$0xff] }
0x25ed   : > { %v6991_v9 = vmul.f32 1.442695, %v6987_v8 }
0x25ee   : > { %v7011_v10 = vpop.permute.xlu1 %7010 }
0x25ef   : > { %9572 = vpow2.f32 %v6991_v9  ;;  %9172 = vmatpush3.msk.msra.mxu0 %vm2463_vm6, %v7011_v10 }
0x25f0   : > { %9174 = vmatmul.mubr.msk.f32.vlgmr.msra.gmra.mxu0 %vm2459_vm7, %v7007_v11  ;;  %9181 = vmatprep.subr.mxu0 %v9909_v0  ;;  %9574 = vrcp.f32 %v7003_v20 }
0x25f1   : > { %9183 = vmatprep.mubr.msk.f32.mxu0 %vm9910_vm0, %v9909_v0 }
0x25fc   : > { %v9573_v43 = vpop.eup %9572 }
0x25fd   : > { %v6998_v35 = vsel %vm2423_vm5, %v9573_v43, 0.0  ;;  %v9575_v37 = vpop.eup %9574 }
0x25fe   : > { %6999 = vadd.xlane.f32.xlu1 %v6998_v35  ;;  %v7009_v13 = vmul.f32 %v9575_v37, %v9569_v60 }
0x260f   : > { %7164 = vrot.lane.b32.xlu1 %v10783_v47, %s11287_s1  ;;  %s11297_s1 = sld [smem:[#allocation47_spill]] }
0x2687   : > { %v7000_v36 = vpop.xlane.xlu1 %6999 }
0x2688   : > { %9576 = vrcp.f32 %v7000_v36 }
0x268b   : > { %v7165_v12 = vpop.permute.xlu1 %7164 }
0x268c   : > { %9182 = vmatpush3.msk.msra.mxu0 %vm2463_vm6, %v7165_v12 }
0x268d   : > { %9184 = vmatmul.mubr.msk.f32.vlgmr.msra.gmra.mxu0 %vm2459_vm7, %v7009_v13  ;;  %9191 = vmatprep.subr.mxu0 %v7405_v1  ;;  %v8546_v13 = vld [vmem:[%s11293_s3] ss:$0 sm:$0xff]  ;;  %s11301_s3 = sld [smem:[#allocation53_spill]] }
0x268e   : > { %9192 = vmatpush3.msra.mxu0 %v7405_v1 }
0x2695   : > { %v9577_v14 = vpop.eup %9576 }
0x2696   : > { %v7008_v15 = vmul.f32 %v9577_v14, %v9573_v43  ;;  %v8545_v43 = vld [vmem:[%s11292_s25] ss:$0 sm:$0xff]  ;;  %s11300_s25 = smov %s11299_s18 }
0x2698   : > { %9179 = vmatmul.mubr.msk.f32.vlgmr.msra.gmra.mxu1 %vm2459_vm7, %v7008_v15 }
0x2699   : > { %9187 = vmatpush3.msra.mxu1 %v4984_v18 }
0x269a   : > { %9202 = vmatprep.subr.mxu1 %v7511_v5 }
0x26b0   : > { %v7083_v16 = vpop.f32.mrf.mxu0 }
0x26b2   : > { %v9175_v17 = vpop.f32.mrf.mxu0 }
0x274d   : > { %v7237_v47 = vpop.f32.mrf.mxu0 }
0x274f   : > { %v9185_v19 = vpop.f32.mrf.mxu0 }
0x2758   : > { %v7160_v22 = vpop.f32.mrf.mxu1 }
0x2759   : > { %v7244_v23 = vcombine.low %v7083_v16, %v7160_v22 }
0x275a   : > { %v9180_v24 = vpop.f32.mrf.mxu1 }
0x275b   : > { %9188 = vmatprep.mubr.msk.f32.mxu1 %vm1657_vm4, %v7244_v23  ;;  %v7509_v23 = vld [vmem:[%s11291_s11 + $0x28] sm:$0xff]  ;;  %v7508_v24 = vld [vmem:[%s11291_s11 + $0x20] sm:$0xff] }
0x275c   : > { %9189 = vmatmul.mubr.msk.f32.vlgmr.msra.gmra.mxu1 %vm1657_vm4, %v7237_v47 }
0x275d   : > { %9203 = vmatpush3.msra.mxu1 %v7511_v5 }
0x275e   : > { %9204 = vmatprep.subr.mxu1 %v7510_v6 }
0x275f   : > { %9205 = vmatpush3.msra.mxu1 %v7510_v6 }
0x2760   : > { %9206 = vmatprep.subr.mxu1 %v7509_v23 }
0x2761   : > { %9207 = vmatpush3.msra.mxu1 %v7509_v23 }
0x2762   : > { %9208 = vmatprep.subr.mxu1 %v7508_v24 }
0x2763   : > { %9209 = vmatpush3.msra.mxu1 %v7508_v24 }
0x281c   : > { %v9190_v28 = vpop.f32.mrf.mxu1 }
0x281d   : > { %v7329_v34 = vadd.f32 %v9190_v28, %v6739_v45  ;;  %v7507_v28 = vld [vmem:[%s11291_s11 + $0x18] sm:$0xff] }
0x281e   : > { %v7315_v33 = vpop.f32.mrf.mxu1  ;;  %9210 = vmatprep.subr.mxu1 %v7507_v28 }
0x281f   : > { %v7325_v39 = vcombine.high %v7315_v33, %v7315_v33  ;;  %v7327_v40 = vadd.f32 %v7315_v33, %v6737_v2  ;;  %v7339_v49 = vadd.f32 %v8544_v41, %v7329_v34  ;;  %v7404_v2 = vld [vmem:[%s11290_s23 + $0x10] sm:$0xff]  ;;  %9211 = vmatpush3.msra.mxu1 %v7507_v28  ;;  %v7505_v34 = vld [vmem:[%s11291_s11 + $0x8] sm:$0xff] }
0x2820   : > { %9193 = vmatprep.subr.mxu0 %v7404_v2  ;;  %v7506_v33 = vld [vmem:[%s11291_s11 + $0x10] sm:$0xff] }
0x2821   : > { %v7328_v42 = vadd.f32 %v7325_v39, %v6738_v4  ;;  %v7337_v48 = vadd.f32 %v8544_v41, %v7327_v40  ;;  %v7342_v55 = vadd.f32 %v7339_v49, %v10767_v38  ;;  %9194 = vmatpush3.msra.mxu0 %v7404_v2  ;;  %v7402_v4 = vld [vmem:[%s11290_s23] sm:$0xff]  ;;  %9212 = vmatprep.subr.mxu1 %v7506_v33 }
0x2822   : > { %9195 = vmatprep.subr.mxu0 %v7403_v3  ;;  %9213 = vmatpush3.msra.mxu1 %v7506_v33  ;;  %v7504_v39 = vld [vmem:[%s11291_s11] sm:$0xff] }
0x2823   : > { %v7340_v50 = vadd.f32 %v7337_v48, %v10761_v31  ;;  %v7338_v51 = vadd.f32 %v8544_v41, %v7328_v42  ;;  %v7349_v30 = vsel %vm4553_vm8, %v7342_v55, 0.0  ;;  %9196 = vmatpush3.msra.mxu0 %v7403_v3  ;;  %9214 = vmatprep.subr.mxu1 %v7505_v34  ;;  %v8547_v40 = vld [vmem:[%s11294_s12] ss:$0 sm:$0xff]  ;;  %s11302_s12 = sld [smem:[#allocation50_spill]] }
0x2824   : > { %9197 = vmatprep.subr.mxu0 %v7402_v4  ;;  %9215 = vmatpush3.msra.mxu1 %v7505_v34  ;;  %v7417_v41 = vcombine.low %v8547_v40, %v8547_v40 }
0x2825   : > { %v7343_v53 = vsel %vm4553_vm8, %v7340_v50, 0.0  ;;  %v7341_v54 = vadd.f32 %v7338_v51, %v10763_v32  ;;  %9198 = vmatpush3.msra.mxu0 %v7402_v4  ;;  %9216 = vmatprep.subr.mxu1 %v7504_v39 }
0x2826   : > { %7344 = vadd.xlane.f32.xlu1 %v7343_v53  ;;  %9221 = vmatprep.subr.mxu0 %v9909_v0 }
0x2827   : > { %v7346_v27 = vsel %vm4553_vm8, %v7341_v54, 0.0  ;;  %9217 = vmatpush3.msra.mxu1 %v7504_v39 }
0x2828   : > { %7347 = vadd.xlane.f32.xlu0 %v7346_v27  ;;  %9251 = vmatprep.subr.mxu1 %v9909_v0 }
0x282c   : > { %7350 = vadd.xlane.f32.xlu0 %v7349_v30  ;;  %v8550_v30 = vld [vmem:[%s11295_s17] ss:$0 sm:$0xff]  ;;  %s11303_s17 = sld [smem:[#allocation52_spill]] }
0x28af   : > { %v7345_v56 = vpop.xlane.xlu1 %7344 }
0x28b0   : > { %v7352_v57 = vmul.f32 0.03125, %v7345_v56  ;;  %v7523_v56 = vcombine.low %v8550_v30, %v8550_v30 }
0x28b1   : > { %v7348_v58 = vpop.xlane.xlu0 %7347 }
0x28b2   : > { %v7355_v59 = vsub.f32 %v7340_v50, %v7352_v57  ;;  %v7353_v31 = vmul.f32 0.03125, %v7348_v58 }
0x28b4   : > { %v7356_v60 = vsub.f32 %v7341_v54, %v7353_v31  ;;  %v7358_v61 = vmul.f32 %v7355_v59, %v7355_v59 }
0x28b5   : > { %v7351_v32 = vpop.xlane.xlu0 %7350 }
0x28b6   : > { %v7354_v25 = vmul.f32 0.03125, %v7351_v32  ;;  %v7361_v29 = vsel %vm4553_vm8, %v7358_v61, 0.0  ;;  %v7359_v38 = vmul.f32 %v7356_v60, %v7356_v60 }
0x28b7   : > { %7362 = vadd.xlane.f32.xlu1 %v7361_v29 }
0x28b8   : > { %v7357_v44 = vsub.f32 %v7342_v55, %v7354_v25  ;;  %v7364_v45 = vsel %vm4553_vm8, %v7359_v38, 0.0 }
0x28b9   : > { %7365 = vadd.xlane.f32.xlu0 %v7364_v45 }
0x28ba   : > { %v7360_v62 = vmul.f32 %v7357_v44, %v7357_v44 }
0x28bc   : > { %v7367_v63 = vsel %vm4553_vm8, %v7360_v62, 0.0 }
0x28bd   : > { %7368 = vadd.xlane.f32.xlu1 %v7367_v63 }
0x2940   : > { %v7363_v7 = vpop.xlane.xlu1 %7362 }
0x2941   : > { %v7370_v46 = vmul.f32 0.03125, %v7363_v7 }
0x2942   : > { %v7366_v20 = vpop.xlane.xlu0 %7365 }
0x2943   : > { %v7373_v26 = vadd.f32 1e-05, %v7370_v46  ;;  %v7371_v21 = vmul.f32 0.03125, %v7366_v20 }
0x2945   : > { %9578 = vrsqrt.f32 %v7373_v26  ;;  %v7374_v52 = vadd.f32 1e-05, %v7371_v21 }
0x2946   : > { %v7369_v8 = vpop.xlane.xlu1 %7368 }
0x2947   : > { %9580 = vrsqrt.f32 %v7374_v52  ;;  %v7372_v9 = vmul.f32 0.03125, %v7369_v8  ;;  %v7697_v8 = vld [vmem:[%s11296_s0 + $0x18] sm:$0xff] }
0x2949   : > { %v7375_v10 = vadd.f32 1e-05, %v7372_v9  ;;  %v7696_v9 = vld [vmem:[%s11296_s0 + $0x10] sm:$0xff] }
0x294b   : > { %9582 = vrsqrt.f32 %v7375_v10  ;;  %v7695_v10 = vld [vmem:[%s11296_s0 + $0x8] sm:$0xff] }
0x2952   : > { %v9579_v11 = vpop.eup %9578 }
0x2953   : > { %v7379_v35 = vmul.f32 %v9579_v11, %v7355_v59  ;;  %v7694_v11 = vld [vmem:[%s11296_s0] sm:$0xff]  ;;  %s1382_s0 = scalar_lea.vmem [#allocation14], %s10334_s24 }
0x2954   : > { %v9581_v36 = vpop.eup %9580  ;;  %s8205_s2 = sshll.u32 %s1382_s0, 4  ;;  %s8206_s2 = int_to_ptr.vmem [resolvable:$true] %s8205_s2 }
0x2955   : > { %v7380_v37 = vmul.f32 %v9581_v36, %v7356_v60  ;;  %v7389_v12 = vmul.f32 %v8545_v43, %v7379_v35  ;;  %s9776_s5 = scalar_lea.vmem %s8206_s2, 16  ;;  %p9783_p2 = scmp.lt.s32.totalorder %s8206_s2, %s9781_s8 }
0x2956   : > { %p9777_p6 = scmp.ne.s32.totalorder %s8206_s2, %s9776_s5 }
0x2957   : > { %v7390_v14 = vmul.f32 %v8545_v43, %v7380_v37  ;;  %v7399_v17 = vadd.f32 %v8546_v13, %v7389_v12 }
0x2958   : > { %v9583_v15 = vpop.eup %9582  ;;  %p9778_p3 = pnand %p9777_p6, %p11308_p12 }
0x2959   : > { %v7381_v16 = vmul.f32 %v9583_v15, %v7357_v44  ;;  %v7400_v18 = vadd.f32 %v8546_v13, %v7390_v14 }
0x295a   : > { %p9779_p7 = pneg %p9778_p3 }
0x295b   : > { %v7416_v47 = vcombine.low %v7399_v17, %v7400_v18  ;;  %v7391_v19 = vmul.f32 %v8545_v43, %v7381_v16 }
0x295d   : > { %9199 = vmatprep.mubr.msk.f32.mxu0 %vm1395_vm1, %v7416_v47  ;;  %v7401_v22 = vadd.f32 %v8546_v13, %v7391_v19 }
0x295f   : > { %9200 = vmatmul.mubr.msk.f32.vlgmr.msra.gmra.mxu0 %vm1395_vm1, %v7401_v22 }
0x2960   : > { %9229 = vmatprep.mubr.msk.f32.mxu0 %vm9910_vm0, %v9909_v0  ;;  %9222 = vmatpush3.msra.mxu0 %v7697_v8 }
0x2961   : > { %9223 = vmatprep.subr.mxu0 %v9909_v0 }
0x2962   : > { %9224 = vmatpush3.msra.mxu0 %v7696_v9 }
0x2963   : > { %9225 = vmatprep.subr.mxu0 %v9909_v0 }
0x2964   : > { %9226 = vmatpush3.msra.mxu0 %v7695_v10 }
0x2965   : > { %9227 = vmatprep.subr.mxu0 %v9909_v0 }
0x2966   : > { %9228 = vmatpush3.msra.mxu0 %v7694_v11 }
0x2967   : > { %9232 = vmatprep.subr.mxu0 %v9909_v0 }
0x2a1f   : > { %v9201_v42 = vpop.f32.mrf.mxu0 }
0x2a20   : > { %v7495_v51 = vadd.f32 %v9201_v42, %v8547_v40 }
0x2a21   : > { %v7489_v48 = vpop.f32.mrf.mxu0 }
0x2a22   : > { %v7490_v49 = vadd.f32 %v7489_v48, %v7417_v41  ;;  %v7503_v55 = vmax.f32 %v7495_v51, 0.0 }
0x2a24   : > { %v7499_v50 = vcombine.high %v7490_v49, %v7490_v49  ;;  %v7501_v53 = vmax.f32 %v7490_v49, 0.0 }
0x2a26   : > { %v7502_v54 = vmax.f32 %v7499_v50, 0.0 }
0x2a28   : > { %v7522_v27 = vcombine.low %v7501_v53, %v7502_v54 }
0x2a2a   : > { %9218 = vmatprep.mubr.msk.f32.mxu1 %vm4737_vm9, %v7522_v27 }
0x2a2b   : > { %9219 = vmatmul.mubr.msk.f32.vlgmr.msra.gmra.mxu1 %vm4737_vm9, %v7503_v55 }
0x2a2c   : > { %9259 = vmatprep.mubr.msk.f32.mxu1 %vm9910_vm0, %v9909_v0 }
0x2aeb   : > { %v9220_v57 = vpop.f32.mrf.mxu1 }
0x2aec   : > { %v7601_v59 = vadd.f32 %v9220_v57, %v8550_v30 }
0x2aed   : > { %v7595_v58 = vpop.f32.mrf.mxu1 }
0x2aee   : > { %v7596_v31 = vadd.f32 %v7595_v58, %v7523_v56  ;;  %v7609_v32 = vadd.f32 %v7601_v59, %v7401_v22  ;;  %v8554_v22 = vld [vmem:[%s11298_s20] ss:$0 sm:$0xff]  ;;  %s11305_s20 = sld [smem:[#allocation55_spill]] }
0x2af0   : > { %v7605_v60 = vcombine.high %v7596_v31, %v7596_v31  ;;  %v7607_v61 = vadd.f32 %v7596_v31, %v7399_v17  ;;  %v7616_v44 = vsel %vm4553_vm8, %v7609_v32, 0.0 }
0x2af2   : > { %v7610_v25 = vsel %vm4553_vm8, %v7607_v61, 0.0  ;;  %v7608_v29 = vadd.f32 %v7605_v60, %v7400_v18  ;;  %v8553_v18 = vld [vmem:[%s11297_s1] ss:$0 sm:$0xff]  ;;  %s11304_s1 = sld [smem:[#allocation54_spill]] }
0x2af3   : > { %7611 = vadd.xlane.f32.xlu0 %v7610_v25 }
0x2af4   : > { %v7613_v38 = vsel %vm4553_vm8, %v7608_v29, 0.0 }
0x2af5   : > { %7614 = vadd.xlane.f32.xlu1 %v7613_v38 }
0x2af7   : > { %7617 = vadd.xlane.f32.xlu0 %v7616_v44 }
0x2b7c   : > { %v7612_v45 = vpop.xlane.xlu0 %7611 }
0x2b7d   : > { %v7619_v62 = vmul.f32 0.03125, %v7612_v45 }
0x2b7e   : > { %v7615_v63 = vpop.xlane.xlu1 %7614 }
0x2b7f   : > { %v7622_v1 = vsub.f32 %v7607_v61, %v7619_v62  ;;  %v7620_v2 = vmul.f32 0.03125, %v7615_v63 }
0x2b80   : > { %v7618_v3 = vpop.xlane.xlu0 %7617 }
0x2b81   : > { %v7623_v4 = vsub.f32 %v7608_v29, %v7620_v2  ;;  %v7621_v5 = vmul.f32 0.03125, %v7618_v3  ;;  %v7625_v6 = vmul.f32 %v7622_v1, %v7622_v1  ;;  %v7792_v2 = vld [vmem:[%s11299_s18 + $0x38] sm:$0xff]  ;;  %s11306_s18 = sld [smem:[#allocation56_spill]] }
0x2b83   : > { %v7624_v7 = vsub.f32 %v7609_v32, %v7621_v5  ;;  %v7628_v46 = vsel %vm4553_vm8, %v7625_v6, 0.0  ;;  %v7626_v20 = vmul.f32 %v7623_v4, %v7623_v4  ;;  %v7790_v5 = vld [vmem:[%s11300_s25 + $0x28] sm:$0xff]  ;;  %v7789_v6 = vld [vmem:[%s11300_s25 + $0x20] sm:$0xff] }
0x2b84   : > { %7629 = vadd.xlane.f32.xlu1 %v7628_v46  ;;  %v7787_v46 = vld [vmem:[%s11300_s25 + $0x10] sm:$0xff] }
0x2b85   : > { %v7631_v26 = vsel %vm4553_vm8, %v7626_v20, 0.0  ;;  %v7627_v21 = vmul.f32 %v7624_v7, %v7624_v7  ;;  %v7786_v20 = vld [vmem:[%s11300_s25 + $0x8] sm:$0xff] }
0x2b86   : > { %7632 = vadd.xlane.f32.xlu0 %v7631_v26  ;;  %v7785_v26 = vld [vmem:[%s11300_s25] sm:$0xff] }
0x2b87   : > { %v7634_v52 = vsel %vm4553_vm8, %v7627_v21, 0.0  ;;  %v7881_v21 = vld [vmem:[%s11301_s3 + $0x38] sm:$0xff] }
0x2b88   : > { %7635 = vadd.xlane.f32.xlu1 %v7634_v52  ;;  %9252 = vmatpush3.msra.mxu1 %v7881_v21  ;;  %v8555_v52 = vld [vmem:[%s11302_s12] ss:$0 sm:$0xff]  ;;  %s11307_s12 = smov %s11306_s18 }
0x2b89   : > { %9253 = vmatprep.subr.mxu1 %v9909_v0 }
0x2c0d   : > { %v7630_v43 = vpop.xlane.xlu1 %7629 }
0x2c0e   : > { %v7637_v35 = vmul.f32 0.03125, %v7630_v43  ;;  %v8031_v43 = vld [vmem:[%s11301_s3 + $0x58] sm:$0xff] }
0x2c0f   : > { %v7633_v36 = vpop.xlane.xlu0 %7632 }
0x2c10   : > { %v7640_v37 = vadd.f32 1e-05, %v7637_v35  ;;  %v7638_v12 = vmul.f32 0.03125, %v7633_v36  ;;  %v7880_v35 = vld [vmem:[%s11301_s3 + $0x30] sm:$0xff] }
0x2c11   : > { %v7636_v13 = vpop.xlane.xlu1 %7635  ;;  %9254 = vmatpush3.msra.mxu1 %v7880_v35  ;;  %v8030_v36 = vld [vmem:[%s11301_s3 + $0x50] sm:$0xff] }
0x2c12   : > { %9584 = vrsqrt.f32 %v7640_v37  ;;  %v7641_v14 = vadd.f32 1e-05, %v7638_v12  ;;  %v7639_v15 = vmul.f32 0.03125, %v7636_v13  ;;  %9255 = vmatprep.subr.mxu1 %v9909_v0  ;;  %v7879_v37 = vld [vmem:[%s11301_s3 + $0x28] sm:$0xff]  ;;  %v7878_v13 = vld [vmem:[%s11301_s3 + $0x20] sm:$0xff] }
0x2c13   : > { %9256 = vmatpush3.msra.mxu1 %v7879_v37  ;;  %v8029_v12 = vld [vmem:[%s11301_s3 + $0x48] sm:$0xff] }
0x2c14   : > { %9586 = vrsqrt.f32 %v7641_v14  ;;  %v7642_v16 = vadd.f32 1e-05, %v7639_v15  ;;  %9257 = vmatprep.subr.mxu1 %v9909_v0  ;;  %v8028_v14 = vld [vmem:[%s11301_s3 + $0x40] sm:$0xff] }
0x2c15   : > { %9258 = vmatpush3.msra.mxu1 %v7878_v13  ;;  %v8557_v15 = vld [vmem:[%s11303_s17] ss:$0 sm:$0xff]  ;;  %s8563_s17 = sshll.u32 %s10164_s26, 4  ;;  %s9782_s26 = scalar_lea.vmem %s9781_s8, 32 }
0x2c16   : > { %9588 = vrsqrt.f32 %v7642_v16  ;;  %9262 = vmatprep.subr.mxu1 %v9909_v0  ;;  %p9784_p11 = scmp.lt.s32.totalorder %s9782_s26, %s9776_s5 }
0x2c18   : > { %p9785_p13 = por %p9784_p11, %p9783_p2 }
0x2c1a   : > { %p9786_p1 = pnand %p9785_p13, %p9779_p7 }
0x2c1f   : > { %v9585_v17 = vpop.eup %9584 }
0x2c20   : > { %v7646_v47 = vmul.f32 %v9585_v17, %v7622_v1 }
0x2c21   : > { %v9587_v19 = vpop.eup %9586 }
0x2c22   : > { %v7656_v23 = vmul.f32 %v8553_v18, %v7646_v47  ;;  %v7647_v24 = vmul.f32 %v9587_v19, %v7623_v4  ;;  %v7791_v4 = vld [vmem:[%s11300_s25 + $0x30] sm:$0xff] }
0x2c23   : > { %v9589_v28 = vpop.eup %9588 }
0x2c24   : > { %v7666_v33 = vadd.f32 %v8554_v22, %v7656_v23  ;;  %v7657_v34 = vmul.f32 %v8553_v18, %v7647_v24  ;;  %v7648_v39 = vmul.f32 %v9589_v28, %v7624_v7  ;;  %v7788_v7 = vld [vmem:[%s11300_s25 + $0x18] sm:$0xff]  ;;  %v7876_v24 = vld [vmem:[%s11301_s3 + $0x10] sm:$0xff]  ;;  %v7875_v28 = vld [vmem:[%s11301_s3 + $0x8] sm:$0xff] }
0x2c25   : > { %v7877_v23 = vld [vmem:[%s11301_s3 + $0x18] sm:$0xff] }
0x2c26   : > { %v7667_v40 = vadd.f32 %v8554_v22, %v7657_v34  ;;  %v7658_v41 = vmul.f32 %v8553_v18, %v7648_v39  ;;  %v7669_v42 = vsel %vm4553_vm8, %v7666_v33, 0.0  ;;  %v7874_v33 = vld [vmem:[%s11301_s3] sm:$0xff]  ;;  %v8114_v34 = vld [vmem:[%s10131_s27 + $0x28] sm:$0xff]  ;;  %s11151_s3 = scalar_lea.hbm %s11306_s18, %s8563_s17 }
0x2c27   : > { %v7670_v48 = vrot.slane %v7669_v42, 4  ;;  %v8113_v39 = vld [vmem:[%s10131_s27 + $0x20] sm:$0xff] }
0x2c28   : > { %v7668_v49 = vadd.f32 %v8554_v22, %v7658_v41  ;;  %v7676_v50 = vsel %vm4553_vm8, %v7667_v40, 0.0  ;;  %v8112_v40 = vld [vmem:[%s10131_s27 + $0x18] sm:$0xff]  ;;  %v8111_v41 = vld [vmem:[%s10131_s27 + $0x10] sm:$0xff] }
0x2c29   : > { %v7671_v51 = vadd.f32 %v7670_v48, %v7669_v42  ;;  %v7677_v53 = vrot.slane %v7676_v50, 4  ;;  %v8110_v42 = vld [vmem:[%s10131_s27 + $0x8] sm:$0xff]  ;;  %v8109_v48 = vld [vmem:[%s10131_s27] sm:$0xff] }
0x2c2a   : > { %v7683_v54 = vsel %vm4553_vm8, %v7668_v49, 0.0 }
0x2c2b   : > { %v7672_v27 = vrot.slane %v7671_v51, 2  ;;  %v7678_v55 = vadd.f32 %v7677_v53, %v7676_v50  ;;  %v7684_v30 = vrot.slane %v7683_v54, 4 }
0x2c2d   : > { %v7673_v56 = vadd.f32 %v7672_v27, %v7671_v51  ;;  %v7679_v57 = vrot.slane %v7678_v55, 2  ;;  %v7685_v58 = vadd.f32 %v7684_v30, %v7683_v54 }
0x2c2f   : > { %v7674_v59 = vrot.slane %v7673_v56, 1  ;;  %v7680_v31 = vadd.f32 %v7679_v57, %v7678_v55  ;;  %v7686_v60 = vrot.slane %v7685_v58, 2  ;;  %v8106_v55 = vld [vmem:[%s11304_s1] sm:$0x1]  ;;  %s8193_s1 = scalar_lea.sflag [#allocation4], %s10334_s24 }
0x2c31   : > { %v7675_v61 = vadd.f32 %v7674_v59, %v7673_v56  ;;  %v7681_v32 = vrot.slane %v7680_v31, 1  ;;  %v7687_v25 = vadd.f32 %v7686_v60, %v7685_v58 }
0x2c33   : > { %v7682_v29 = vadd.f32 %v7681_v32, %v7680_v31  ;;  %v7688_v38 = vrot.slane %v7687_v25, 1  ;;  %v7691_v45 = vmul.f32 0.25, %v7675_v61 }
0x2c35   : > { %v7689_v44 = vadd.f32 %v7688_v38, %v7687_v25  ;;  %v7692_v62 = vmul.f32 0.25, %v7682_v29 }
0x2c37   : > { %v7693_v63 = vmul.f32 0.25, %v7689_v44  ;;  %v7709_v1 = vsel %vm7708_vm10, %v7692_v62, %v7691_v45 }
0x2c39   : > { %v7711_v3 = vsel %vm7710_vm11, %v7693_v63, %v7709_v1 }
0x2c3a   : > { %9230 = vmatmul.mubr.msk.f32.vlgmr.msra.gmra.mxu0 %vm1395_vm1, %v7711_v3 }
0x2c3b   : > { %9233 = vmatpush3.msra.mxu0 %v7792_v2  ;;  %9248 = vmatprep.mubr.msk.f32.mxu0 %vm9910_vm0, %v9909_v0 }
0x2c3c   : > { %9234 = vmatprep.subr.mxu0 %v9909_v0 }
0x2c3d   : > { %9235 = vmatpush3.msra.mxu0 %v7791_v4 }
0x2c3e   : > { %9236 = vmatprep.subr.mxu0 %v9909_v0 }
0x2c3f   : > { %9237 = vmatpush3.msra.mxu0 %v7790_v5 }
0x2c40   : > { %9238 = vmatprep.subr.mxu0 %v9909_v0 }
0x2c41   : > { %9239 = vmatpush3.msra.mxu0 %v7789_v6 }
0x2c42   : > { %9240 = vmatprep.subr.mxu0 %v9909_v0 }
0x2c43   : > { %9241 = vmatpush3.msra.mxu0 %v7788_v7 }
0x2c44   : > { %9242 = vmatprep.subr.mxu0 %v9909_v0 }
0x2c45   : > { %9243 = vmatpush3.msra.mxu0 %v7787_v46 }
0x2c46   : > { %9244 = vmatprep.subr.mxu0 %v9909_v0 }
0x2c47   : > { %9245 = vmatpush3.msra.mxu0 %v7786_v20 }
0x2c48   : > { %9246 = vmatprep.subr.mxu0 %v9909_v0 }
0x2c49   : > { %9247 = vmatpush3.msra.mxu0 %v7785_v26 }
0x2c4a   : > { %9273 = vmatprep.subr.mxu0 %v9909_v0 }
0x2cfa   : > { %v7780_v8 = vpop.f32.mrf.mxu0 }
0x2cfb   : > { %v7781_v9 = vadd.f32 %v8555_v52, %v7780_v8 }
0x2cfc   : > { %v9231_v10 = vpop.f32.mrf.mxu0 }
0x2cfd   : > { %v7784_v11 = vmax.f32 %v7781_v9, 0.0 }
0x2cff   : > { %9249 = vmatmul.mubr.msk.f32.vlgmr.msra.gmra.mxu0 %vm4737_vm9, %v7784_v11 }
0x2d00   : > { %9281 = vmatprep.mubr.msk.f32.mxu0 %vm9910_vm0, %v9909_v0  ;;  %9274 = vmatpush3.msra.mxu0 %v8031_v43 }
0x2d01   : > { %9275 = vmatprep.subr.mxu0 %v9909_v0 }
0x2d02   : > { %9276 = vmatpush3.msra.mxu0 %v8030_v36 }
0x2d03   : > { %9277 = vmatprep.subr.mxu0 %v9909_v0 }
0x2d04   : > { %9278 = vmatpush3.msra.mxu0 %v8029_v12 }
0x2d05   : > { %9279 = vmatprep.subr.mxu0 %v9909_v0 }
0x2d06   : > { %9280 = vmatpush3.msra.mxu0 %v8028_v14 }
0x2dbf   : > { %v7869_v16 = vpop.f32.mrf.mxu0 }
0x2dc0   : > { %v7870_v17 = vadd.f32 %v8557_v15, %v7869_v16 }
0x2dc1   : > { %v9250_v18 = vpop.f32.mrf.mxu0 }
0x2dc2   : > { %v7873_v47 = vmax.f32 %v7870_v17, 0.0 }
0x2dc4   : > { %v7883_v19 = vrot.slane %v7873_v47, 1  ;;  %v8032_v22 = vrot.slane %v7873_v47, 2 }
0x2dc6   : > { %9260 = vmatmul.mubr.msk.f32.vlgmr.msra.gmra.mxu1 %vm1395_vm1, %v7883_v19  ;;  %9282 = vmatmul.mubr.msk.f32.vlgmr.msra.gmra.mxu0 %vm1395_vm1, %v8032_v22 }
0x2dc7   : > { %9263 = vmatpush3.msra.mxu1 %v7877_v23  ;;  %9270 = vmatprep.mubr.msk.f32.mxu1 %vm9910_vm0, %v9909_v0 }
0x2dc8   : > { %9264 = vmatprep.subr.mxu1 %v9909_v0 }
0x2dc9   : > { %9265 = vmatpush3.msra.mxu1 %v7876_v24 }
0x2dca   : > { %9266 = vmatprep.subr.mxu1 %v9909_v0 }
0x2dcb   : > { %9267 = vmatpush3.msra.mxu1 %v7875_v28 }
0x2dcc   : > { %9268 = vmatprep.subr.mxu1 %v9909_v0 }
0x2dcd   : > { %9269 = vmatpush3.msra.mxu1 %v7874_v33 }
0x2dce   : > { %9271 = vmatmul.mubr.msk.f32.vlgmr.msra.gmra.mxu1 %vm1395_vm1, %v7873_v47  ;;  %9284 = vmatprep.subr.mxu1 %v9909_v0 }
0x2dcf   : > { %9296 = vmatprep.mubr.msk.f32.mxu1 %vm9910_vm0, %v9909_v0  ;;  %9285 = vmatpush3.msra.mxu1 %v8114_v34 }
0x2dd0   : > { %9286 = vmatprep.subr.mxu1 %v9909_v0 }
0x2dd1   : > { %9287 = vmatpush3.msra.mxu1 %v8113_v39 }
0x2dd2   : > { %9288 = vmatprep.subr.mxu1 %v9909_v0 }
0x2dd3   : > { %9289 = vmatpush3.msra.mxu1 %v8112_v40 }
0x2dd4   : > { %9290 = vmatprep.subr.mxu1 %v9909_v0 }
0x2dd5   : > { %9291 = vmatpush3.msra.mxu1 %v8111_v41 }
0x2dd6   : > { %9292 = vmatprep.subr.mxu1 %v9909_v0 }
0x2dd7   : > { %9293 = vmatpush3.msra.mxu1 %v8110_v42 }
0x2dd8   : > { %9294 = vmatprep.subr.mxu1 %v9909_v0  ;;  %v8115_v0 = vld [vmem:[%s11305_s20] sm:$0x1] }
0x2dd9   : > { %9295 = vmatpush3.msra.mxu1 %v8109_v48 }
0x2e86   : > { %v7952_v49 = vpop.f32.mrf.mxu1  ;;  %v8101_v50 = vpop.f32.mrf.mxu0 }
0x2e88   : > { %v9261_v51 = vpop.f32.mrf.mxu1  ;;  %v9283_v53 = vpop.f32.mrf.mxu0 }
0x2e8e   : > { %v8024_v54 = vpop.f32.mrf.mxu1 }
0x2e8f   : > { %v8025_v27 = vadd.f32 %v8024_v54, %v7952_v49 }
0x2e90   : > { %v9272_v30 = vpop.f32.mrf.mxu1 }
0x2e91   : > { %v8105_v56 = vadd.f32 %v8101_v50, %v8025_v27 }
0x2e93   : > { %v8107_v57 = vadd.f32 %v8106_v55, %v8105_v56 }
0x2e95   : > { %v8108_v58 = vmax.f32 %v8107_v57, 0.0 }
0x2e97   : > { %9297 = vmatmul.mubr.msk.f32.vlgmr.msra.gmra.mxu1 %vm8116_vm12, %v8108_v58 }
0x2f57   : > { %v8186_v59 = vpop.f32.mrf.mxu1 }
0x2f58   : > { %v8187_v31 = vadd.f32 %v8186_v59, %v8115_v0 }
0x2f59   : > { %v9298_v60 = vpop.f32.mrf.mxu1 }
0x2f5a   : > { %8191 = vst.msk [vmem:[%s1382_s0] sm:$0x1] %vm8190_vm13, %v8187_v31 }
0x2f5b   : > { %9789 = shalt.err (!%p9786_p1)
}
0x2f5c   : > { %s9790_s24 = scalar_lea.hbm %s11151_s3, 16  ;;  %s9794_s0 = scalar_lea.hbm %s11307_s12, 32 }
0x2f5d   : > { %p9791_p10 = scmp.ne.s32.totalorder %s11151_s3, %s9790_s24  ;;  %p9795_p5 = scmp.lt.s32.totalorder %s11151_s3, %s11307_s12 }
0x2f5e   : > { %p9796_p8 = scmp.lt.s32.totalorder %s9794_s0, %s9790_s24 }
0x2f5f   : > { %p9792_p4 = pnand %p9791_p10, %p11308_p12 }
0x2f60   : > { %p9797_p9 = por %p9796_p8, %p9795_p5 }
0x2f61   : > { %p9793_p0 = pneg %p9792_p4 }
0x2f63   : > { %p9798_p6 = pnand %p9797_p9, %p9793_p0 }
0x2f65   : > { %9801 = shalt.err (!%p9798_p6)
}
0x2f66   : > { %9326 = dma.vmem_to_hbm [thread:$0]  (%p11308_p12), %s8206_s2, 16, %s11151_s3, %s8193_s1  }
0x2f67 PF: > { %s8217_s8 = sand.u32 1, %s9844_s15   ;;  %p11309_p3 = scmp.ne.s32.totalorder %s11262_s10, 0 }
0x2f68   : > { %p11310_p7 = scmp.ge.s32.totalorder %s9856_s22, 2  ;;  %s8218_s6 = scalar_lea.sflag [#allocation4], %s8217_s8 }
0x2f6a   : > { %p9352_p2 = pnand %p11310_p7, %p11309_p3 }
0x2f6c   : > { %p9353_p11 = pneg %p9352_p2 }
0x2f6e   : > { %9839 = dma.done.wait (%p9353_p11), %s8218_s6, 16  }
0x2f6f   : > { %9841 = vsyncadd (%p9353_p11), %s8218_s6, 4294967280  ;;  %s11311_s5 = sld [smem:[#allocation57_spill]]  ;;  %p103_p13 = scmp.ge.s32.totalorder %s10234_s4, 4  }
0x2f70   : > { %s11312_s18 = sld [smem:[#allocation58_spill]]  ;;  %s11313_s15 = smov %s9848_s16 }
0x2f71   : > { %s11315_s22 = smov %s10234_s4  ;;  %105 = sbr.rel (!%p103_p13) target bundleno = 98 (0x62), region = 308 }
0x2f75   : > { %s11314_s16 = smov %s11311_s5 }
0x2f76   :  { %8222 = vsyncpa [#allocation3], 1 }
0x2f77   :  { %8224 = vsyncpa [#allocation3 + $0x1], 1 }
0x2f78   :  { %8225 = vsyncpa [#allocation6], 1 }
0x2f79   :  { %8227 = vsyncpa [#allocation6 + $0x1], 1 }
0x2f7a   :  { %8228 = vsyncpa [#allocation9], 1 }
0x2f7b   :  { %8229 = vsyncpa [#allocation12], 1 }
0x2f7c   :  { %8230 = vsyncpa [#allocation4], 1 }
0x2f7d   :  { %8232 = vsyncpa [#allocation4 + $0x1], 1 }

</bundles_post_ra>
